<compile_context>
chip_gen: v7x
topology: tpu7x:2x2x1
jax: 0.10.0
libtpu: 0.0.40
codegen_flags: <defaults>
</compile_context>

<pallas_src>
import functools

import numpy as np
import jax
import jax.numpy as jnp
from jax import lax
from jax.experimental import pallas as pl
from jax.experimental.pallas import tpu as pltpu

F32 = jnp.float32

WIN = (7, 7, 7)          # SwinUNETR 3-D window size
SHIFT = (3, 3, 3)        # window // 2
HEADS = (3, 6, 12, 24)
FEATURE_SIZE = 24
LRELU_SLOPE = 0.01
EPS = 1e-5
VMEM_LIMIT = 48 * 1024 * 1024


def _round_up(x, m):
    return -(-x // m) * m


def _cp(sem):
    return pltpu.CompilerParams(dimension_semantics=sem,
                                vmem_limit_bytes=VMEM_LIMIT)


def _gelu_exact(x):
    # erf-based GELU (PyTorch nn.GELU default); Abramowitz-Stegun 7.1.26
    # polynomial (|erf error| < 1.5e-7) -- exp/mul only, lowers on all TPUs.
    z = x * 0.7071067811865476
    a = jnp.abs(z)
    t = 1.0 / (1.0 + 0.3275911 * a)
    poly = t * (0.254829592 + t * (-0.284496736 + t * (1.421413741
               + t * (-1.453152027 + t * 1.061405429))))
    erf_a = 1.0 - poly * jnp.exp(-a * a)
    erf = jnp.where(z >= 0, erf_a, -erf_a)
    return 0.5 * x * (1.0 + erf)


# ----------------------------------------------------------------------------
# Pallas kernels
# ----------------------------------------------------------------------------
def _matmul_kernel(a_ref, b_ref, bias_ref, o_ref, *, act):
    acc = jnp.dot(a_ref[...], b_ref[...], preferred_element_type=jnp.float32)
    acc = acc + bias_ref[...]
    if act == "gelu":
        acc = _gelu_exact(acc)
    o_ref[...] = acc.astype(o_ref.dtype)


def _pick_tiles(M, K, N):
    """Full-K blocks; tile M (and N only when the weight panel is too big)."""
    a_budget = 12 * 1024 * 1024          # double-buffered A bytes
    b_budget = 12 * 1024 * 1024          # double-buffered B bytes
    tn = 128 if (8 * K * N > b_budget and N % 128 == 0) else N
    tm_max = max(8, min(8192, (a_budget // (8 * K)) // 8 * 8))
    Mp8 = _round_up(M, 8)
    if Mp8 <= tm_max:
        return Mp8, Mp8, tn
    t = tm_max
    while t >= 8:                        # prefer a tile that divides M (no pad)
        if Mp8 % t == 0:
            return t, Mp8, tn
        t -= 8
    return tm_max, _round_up(Mp8, tm_max), tn


@functools.partial(jax.jit, static_argnames=("act",))
def matmul_bias(a, b, bias, act="none"):
    """a:(M,K) @ b:(K,N) + bias:(N,) -> (M,N); f32 accumulation, fused act."""
    M, K = a.shape
    _, N = b.shape
    tm, Mp, tn = _pick_tiles(M, K, N)
    a_p = a if Mp == M else jnp.pad(a, ((0, Mp - M), (0, 0)))
    out = pl.pallas_call(
        functools.partial(_matmul_kernel, act=act),
        out_shape=jax.ShapeDtypeStruct((Mp, N), jnp.float32),
        grid=(Mp // tm, N // tn),
        in_specs=[
            pl.BlockSpec((tm, K), lambda i, j: (i, 0)),
            pl.BlockSpec((K, tn), lambda i, j: (0, j)),
            pl.BlockSpec((1, tn), lambda i, j: (0, j)),
        ],
        out_specs=pl.BlockSpec((tm, tn), lambda i, j: (i, j)),
        compiler_params=_cp(("parallel", "parallel")),
    )(a_p, b, bias.reshape(1, N))
    return out if Mp == M else out[:M]


def matmul(a, b):
    return matmul_bias(a, b, jnp.zeros((b.shape[1],), F32))


def _layernorm_kernel(x_ref, g_ref, b_ref, o_ref):
    x = x_ref[...].astype(jnp.float32)
    mu = jnp.mean(x, axis=-1, keepdims=True)
    var = jnp.mean(jnp.square(x - mu), axis=-1, keepdims=True)
    y = (x - mu) * lax.rsqrt(var + EPS)
    o_ref[...] = (y * g_ref[...] + b_ref[...]).astype(o_ref.dtype)


@jax.jit
def layer_norm(x2d, gamma, beta):
    M, C = x2d.shape
    rb = M
    if M * C * 4 > (2 << 20):            # bound per-block footprint
        for cand in (2048, 1024, 512, 256, 128, 64, 32, 16, 8):
            if M % cand == 0:
                rb = cand
                break
    return pl.pallas_call(
        _layernorm_kernel,
        out_shape=jax.ShapeDtypeStruct((M, C), x2d.dtype),
        grid=(M // rb,),
        in_specs=[pl.BlockSpec((rb, C), lambda i: (i, 0)),
                  pl.BlockSpec((1, C), lambda i: (0, 0)),
                  pl.BlockSpec((1, C), lambda i: (0, 0))],
        out_specs=pl.BlockSpec((rb, C), lambda i: (i, 0)),
        compiler_params=_cp(("parallel",)),
    )(x2d, gamma.reshape(1, C), beta.reshape(1, C))


def _instnorm_kernel(x_ref, o_ref, *, act):
    x = x_ref[...].astype(jnp.float32)
    mu = jnp.mean(x, axis=-1, keepdims=True)
    var = jnp.mean(jnp.square(x - mu), axis=-1, keepdims=True)
    y = (x - mu) * lax.rsqrt(var + EPS)
    if act:
        y = jnp.where(y >= 0, y, LRELU_SLOPE * y)
    o_ref[...] = y.astype(o_ref.dtype)


def _instnorm_add_lrelu_kernel(x_ref, r_ref, o_ref):
    x = x_ref[...].astype(jnp.float32)
    mu = jnp.mean(x, axis=-1, keepdims=True)
    var = jnp.mean(jnp.square(x - mu), axis=-1, keepdims=True)
    y = (x - mu) * lax.rsqrt(var + EPS) + r_ref[...].astype(jnp.float32)
    o_ref[...] = jnp.where(y >= 0, y, LRELU_SLOPE * y).astype(o_ref.dtype)


def _pick_row_block(R, L):
    budget = 2 << 20
    if R * L * 4 <= budget:
        return R
    for cand in (64, 32, 16, 8):
        if R % cand == 0 and cand * L * 4 <= budget:
            return cand
    return 8 if R % 8 == 0 else R


@functools.partial(jax.jit, static_argnames=("act",))
def instance_norm_rows(x2d, *, act):
    R, L = x2d.shape
    rb = _pick_row_block(R, L)
    return pl.pallas_call(
        functools.partial(_instnorm_kernel, act=act),
        out_shape=jax.ShapeDtypeStruct((R, L), x2d.dtype),
        grid=(R // rb,),
        in_specs=[pl.BlockSpec((rb, L), lambda i: (i, 0))],
        out_specs=pl.BlockSpec((rb, L), lambda i: (i, 0)),
        compiler_params=_cp(("parallel",)),
    )(x2d)


@jax.jit
def instance_norm_add_lrelu_rows(x2d, r2d):
    R, L = x2d.shape
    rb = _pick_row_block(R, L)
    return pl.pallas_call(
        _instnorm_add_lrelu_kernel,
        out_shape=jax.ShapeDtypeStruct((R, L), x2d.dtype),
        grid=(R // rb,),
        in_specs=[pl.BlockSpec((rb, L), lambda i: (i, 0)),
                  pl.BlockSpec((rb, L), lambda i: (i, 0))],
        out_specs=pl.BlockSpec((rb, L), lambda i: (i, 0)),
        compiler_params=_cp(("parallel",)),
    )(x2d, r2d)


def _attn_kernel(q_ref, k_ref, v_ref, bias_ref, mask_ref, o_ref, *, heads):
    dh = q_ref.shape[-1]
    scale = float(dh) ** -0.5
    mask = mask_ref[0]
    for h in range(heads):                       # all heads of one window
        q = q_ref[0, h] * scale
        k = k_ref[0, h]
        v = v_ref[0, h]
        s = lax.dot_general(q, k, (((1,), (1,)), ((), ())),
                            preferred_element_type=jnp.float32)
        s = s + bias_ref[h] + mask
        s = s - jnp.max(s, axis=-1, keepdims=True)
        p = jnp.exp(s)
        p = p / jnp.sum(p, axis=-1, keepdims=True)
        o_ref[0, h] = jnp.dot(p, v, preferred_element_type=jnp.float32
                              ).astype(o_ref.dtype)


@jax.jit
def window_attention_core(q, k, v, bias, mask):
    """q,k,v: (B_,H,N,Dh); bias: (H,N,N); mask: (nW,N,N) -> (B_,H,N,Dh)."""
    B_, H, N, Dh = q.shape
    nW = mask.shape[0]
    qspec = pl.BlockSpec((1, H, N, Dh), lambda b: (b, 0, 0, 0))
    return pl.pallas_call(
        functools.partial(_attn_kernel, heads=H),
        out_shape=jax.ShapeDtypeStruct((B_, H, N, Dh), jnp.float32),
        grid=(B_,),
        in_specs=[
            qspec, qspec, qspec,
            pl.BlockSpec((H, N, N), lambda b: (0, 0, 0)),       # bias resident
            pl.BlockSpec((1, N, N), lambda b: (b % nW, 0, 0)),
        ],
        out_specs=pl.BlockSpec((1, H, N, Dh), lambda b: (b, 0, 0, 0)),
        compiler_params=_cp(("parallel",)),
    )(q, k, v, bias, mask)


# ----------------------------------------------------------------------------
# Convolutions via (tap-major) im2col + Pallas matmul   (NCDHW at boundaries)
# ----------------------------------------------------------------------------
def _im2col_k3(x_cl):
    """x_cl:(B,D,H,W,C) -> (B*D*H*W, 27*C); column order (kd,kh,kw,c)."""
    B, D, H, W, C = x_cl.shape
    xp = jnp.pad(x_cl, ((0, 0), (1, 1), (1, 1), (1, 1), (0, 0)))
    taps = [xp[:, kd:kd + D, kh:kh + H, kw:kw + W, :]
            for kd in range(3) for kh in range(3) for kw in range(3)]
    cols = jnp.concatenate(taps, axis=-1)
    return cols.reshape(B * D * H * W, 27 * C)


def conv3d_k3(x, w):
    """3x3x3 conv, stride 1, pad 1, no bias.  x: NCDHW, w:(Co,Ci,3,3,3)."""
    B, C, D, H, W = x.shape
    Co = w.shape[0]
    cols = _im2col_k3(x.transpose(0, 2, 3, 4, 1))
    w2 = w.transpose(2, 3, 4, 1, 0).reshape(27 * C, Co)   # rows (kd,kh,kw,ci)
    y = matmul(cols, w2)
    return y.reshape(B, D, H, W, Co).transpose(0, 4, 1, 2, 3)


def conv3d_k1(x, w, b=None):
    """1x1x1 conv.  w:(Co,Ci,1,1,1)."""
    B, C, D, H, W = x.shape
    Co = w.shape[0]
    xm = x.transpose(0, 2, 3, 4, 1).reshape(-1, C)
    bias = b if b is not None else jnp.zeros((Co,), F32)
    y = matmul_bias(xm, w.reshape(Co, C).T, bias)
    return y.reshape(B, D, H, W, Co).transpose(0, 4, 1, 2, 3)


def patch_embed_conv(x, w, b):
    """Conv3d kernel=2 stride=2 (patch embedding).  w:(Co,Ci,2,2,2)."""
    B, C, D, H, W = x.shape
    Co = w.shape[0]
    xr = x.reshape(B, C, D // 2, 2, H // 2, 2, W // 2, 2)
    xr = xr.transpose(0, 2, 4, 6, 1, 3, 5, 7)
    cols = xr.reshape(B * (D // 2) * (H // 2) * (W // 2), C * 8)
    y = matmul_bias(cols, w.reshape(Co, C * 8).T, b)
    return y.reshape(B, D // 2, H // 2, W // 2, Co).transpose(0, 4, 1, 2, 3)


def transp_conv_k2(x, w):
    """ConvTranspose3d kernel=2 stride=2, no bias.  w:(Ci,Co,2,2,2)."""
    B, C, D, H, W = x.shape
    Co = w.shape[1]
    xm = x.transpose(0, 2, 3, 4, 1).reshape(-1, C)
    y = matmul(xm, w.reshape(C, Co * 8))
    y = y.reshape(B, D, H, W, Co, 2, 2, 2)
    y = y.transpose(0, 4, 1, 5, 2, 6, 3, 7).reshape(B, Co, 2 * D, 2 * H, 2 * W)
    return y


def instance_norm(x, act):
    B, C = x.shape[:2]
    y = instance_norm_rows(x.reshape(B * C, -1), act=act)
    return y.reshape(x.shape)


def instance_norm_add_lrelu(x, res):
    B, C = x.shape[:2]
    y = instance_norm_add_lrelu_rows(x.reshape(B * C, -1),
                                     res.reshape(B * C, -1))
    return y.reshape(x.shape)


# ----------------------------------------------------------------------------
# Swin transformer (encoder) helpers
# ----------------------------------------------------------------------------
def _rel_pos_index_np(ws):
    wd, wh, ww = ws
    coords = np.stack(np.meshgrid(np.arange(wd), np.arange(wh), np.arange(ww),
                                  indexing="ij"))
    cf = coords.reshape(3, -1)
    rel = (cf[:, :, None] - cf[:, None, :]).transpose(1, 2, 0).astype(np.int64)
    rel[:, :, 0] += wd - 1
    rel[:, :, 1] += wh - 1
    rel[:, :, 2] += ww - 1
    rel[:, :, 0] *= (2 * wh - 1) * (2 * ww - 1)
    rel[:, :, 1] *= (2 * ww - 1)
    return rel.sum(-1)


REL_INDEX_FULL = _rel_pos_index_np(WIN)   # (343, 343), sliced [:n,:n] per stage


def get_window_size(x_size, window_size, shift_size):
    ws, ss = list(window_size), list(shift_size)
    for i in range(3):
        if x_size[i] <= window_size[i]:
            ws[i] = x_size[i]
            ss[i] = 0
    return tuple(ws), tuple(ss)


def window_partition(x, ws):
    b, d, h, w, c = x.shape
    x = x.reshape(b, d // ws[0], ws[0], h // ws[1], ws[1], w // ws[2], ws[2], c)
    return x.transpose(0, 1, 3, 5, 2, 4, 6, 7).reshape(-1, ws[0] * ws[1] * ws[2], c)


def window_reverse(wins, ws, dims):
    b, d, h, w = dims
    x = wins.reshape(b, d // ws[0], h // ws[1], w // ws[2], ws[0], ws[1], ws[2], -1)
    return x.transpose(0, 1, 4, 2, 5, 3, 6, 7).reshape(b, d, h, w, -1)


def _window_partition_np(x, ws):
    b, d, h, w, c = x.shape
    x = x.reshape(b, d // ws[0], ws[0], h // ws[1], ws[1], w // ws[2], ws[2], c)
    return x.transpose(0, 1, 3, 5, 2, 4, 6, 7).reshape(-1, ws[0] * ws[1] * ws[2], c)


def compute_mask_np(dims, ws, ss):
    d, h, w = dims
    img_mask = np.zeros((1, d, h, w, 1), np.float32)
    cnt = 0
    for ds_ in (slice(-ws[0]), slice(-ws[0], -ss[0]), slice(-ss[0], None)):
        for hs_ in (slice(-ws[1]), slice(-ws[1], -ss[1]), slice(-ss[1], None)):
            for ws_ in (slice(-ws[2]), slice(-ws[2], -ss[2]), slice(-ss[2], None)):
                img_mask[:, ds_, hs_, ws_, :] = cnt
                cnt += 1
    mw = _window_partition_np(img_mask, ws).squeeze(-1)          # (nW, N)
    am = mw[:, None, :] - mw[:, :, None]
    return np.where(am != 0, -100.0, 0.0).astype(np.float32)


def window_attention(xw, p, num_heads, mask_np):
    B_, N, C = xw.shape
    Dh = C // num_heads
    qkv = matmul_bias(xw.reshape(-1, C), p["qkv_w"], p["qkv_b"])
    qkv = qkv.reshape(B_, N, 3, num_heads, Dh).transpose(2, 0, 3, 1, 4)
    q, k, v = qkv[0], qkv[1], qkv[2]

    idx = np.asarray(REL_INDEX_FULL[:N, :N].reshape(-1), np.int32)
    bias = p["rel_table"][idx].reshape(N, N, num_heads).transpose(2, 0, 1)

    mask = jnp.zeros((1, N, N), F32) if mask_np is None else jnp.asarray(mask_np)

    o = window_attention_core(q, k, v, bias, mask)        # (B_,H,N,Dh)
    o = o.transpose(0, 2, 1, 3).reshape(B_, N, C)
    o = matmul_bias(o.reshape(-1, C), p["proj_w"], p["proj_b"]).reshape(B_, N, C)
    return o


def swin_block(x, p, num_heads, ws, ss, mask_np):
    B, D, H, W, C = x.shape
    shortcut = x
    h = layer_norm(x.reshape(-1, C), p["n1_g"], p["n1_b"]).reshape(B, D, H, W, C)

    pad_d, pad_h, pad_w = (-D) % ws[0], (-H) % ws[1], (-W) % ws[2]
    hp = jnp.pad(h, ((0, 0), (0, pad_d), (0, pad_h), (0, pad_w), (0, 0)))
    Dp, Hp, Wp = D + pad_d, H + pad_h, W + pad_w

    if any(ss):
        shifted = jnp.roll(hp, shift=(-ss[0], -ss[1], -ss[2]), axis=(1, 2, 3))
    else:
        shifted = hp

    wins = window_partition(shifted, ws)
    attn = window_attention(wins, p, num_heads, mask_np if any(ss) else None)
    shifted = window_reverse(attn, ws, (B, Dp, Hp, Wp))

    if any(ss):
        shifted = jnp.roll(shifted, shift=ss, axis=(1, 2, 3))
    xa = shifted[:, :D, :H, :W, :]

    x = shortcut + xa                          # drop_path rate 0 -> identity

    h2 = layer_norm(x.reshape(-1, C), p["n2_g"], p["n2_b"])
    h2 = matmul_bias(h2, p["fc1_w"], p["fc1_b"], act="gelu")   # fused GELU
    h2 = matmul_bias(h2, p["fc2_w"], p["fc2_b"])
    return x + h2.reshape(B, D, H, W, C)


def patch_merging(x, p):
    B, D, H, W, C = x.shape
    x = jnp.pad(x, ((0, 0), (0, D % 2), (0, H % 2), (0, W % 2), (0, 0)))
    # TODO(synk): concat order follows MONAI's legacy PatchMerging ("merging"),
    #             which repeats the x2/x3 slices.
    x0 = x[:, 0::2, 0::2, 0::2, :]
    x1 = x[:, 1::2, 0::2, 0::2, :]
    x2 = x[:, 0::2, 1::2, 0::2, :]
    x3 = x[:, 0::2, 0::2, 1::2, :]
    x4 = x[:, 1::2, 0::2, 1::2, :]
    x5 = x[:, 0::2, 1::2, 0::2, :]
    x6 = x[:, 0::2, 0::2, 1::2, :]
    x7 = x[:, 1::2, 1::2, 1::2, :]
    xc = jnp.concatenate([x0, x1, x2, x3, x4, x5, x6, x7], axis=-1)
    B2, D2, H2, W2, C8 = xc.shape
    y = layer_norm(xc.reshape(-1, C8), p["n_g"], p["n_b"])
    y = matmul(y, p["red_w"])
    return y.reshape(B2, D2, H2, W2, -1)


def basic_layer(x, p, num_heads):
    B, D, H, W, C = x.shape
    ws, ss = get_window_size((D, H, W), WIN, SHIFT)
    Dp = -(-D // ws[0]) * ws[0]
    Hp = -(-H // ws[1]) * ws[1]
    Wp = -(-W // ws[2]) * ws[2]
    mask_np = compute_mask_np((Dp, Hp, Wp), ws, ss) if any(ss) else None
    for i, blk in enumerate(p["blocks"]):
        ss_blk = (0, 0, 0) if i % 2 == 0 else ss
        x = swin_block(x, blk, num_heads, ws, ss_blk, mask_np)
    return patch_merging(x, p["merge"])


def proj_out(x_cl):
    """LayerNorm over channels (no affine), return NCDHW."""
    B, D, H, W, C = x_cl.shape
    y = layer_norm(x_cl.reshape(-1, C), jnp.ones((C,), F32), jnp.zeros((C,), F32))
    return y.reshape(B, D, H, W, C).transpose(0, 4, 1, 2, 3)


def swin_vit(x, p):
    x0 = patch_embed_conv(x, p["pe_w"], p["pe_b"])        # (B,24,D/2,H/2,W/2)
    xc = x0.transpose(0, 2, 3, 4, 1)                      # channels-last
    outs = [proj_out(xc)]
    for li in range(4):
        xc = basic_layer(xc, p["layers"][li], HEADS[li])
        outs.append(proj_out(xc))
    return outs


# ----------------------------------------------------------------------------
# UNETR-style decoder blocks
# ----------------------------------------------------------------------------
def unet_res_block(x, p):
    out = conv3d_k3(x, p["conv1_w"])
    out = instance_norm(out, act=True)           # InstanceNorm + LeakyReLU
    out = conv3d_k3(out, p["conv2_w"])
    if "conv3_w" in p:
        res = conv3d_k1(x, p["conv3_w"])
        res = instance_norm(res, act=False)
    else:
        res = x
    return instance_norm_add_lrelu(out, res)     # fused norm + add + LeakyReLU


def up_block(x, skip, p):
    up = transp_conv_k2(x, p["transp_w"])
    cat = jnp.concatenate([up, skip], axis=1)
    return unet_res_block(cat, p["res"])


def swin_unetr_forward(x, params):
    hs = swin_vit(x, params["swinViT"])
    enc0 = unet_res_block(x, params["encoder1"])
    enc1 = unet_res_block(hs[0], params["encoder2"])
    enc2 = unet_res_block(hs[1], params["encoder3"])
    enc3 = unet_res_block(hs[2], params["encoder4"])
    dec4 = unet_res_block(hs[4], params["encoder10"])
    dec3 = up_block(dec4, hs[3], params["decoder5"])
    dec2 = up_block(dec3, enc3, params["decoder4"])
    dec1 = up_block(dec2, enc2, params["decoder3"])
    dec0 = up_block(dec1, enc1, params["decoder2"])
    outb = up_block(dec0, enc0, params["decoder1"])
    return conv3d_k1(outb, params["out_w"], params["out_b"])


# ----------------------------------------------------------------------------
# Deterministic synthetic parameter initialization
# ----------------------------------------------------------------------------
def init_params(key, in_ch, out_ch, fs=FEATURE_SIZE):
    counter = [0]

    def nxt():
        counter[0] += 1
        return jax.random.fold_in(key, counter[0])

    def normal(shape, std=0.02):
        return jax.random.normal(nxt(), shape, F32) * std

    def ln(dim):
        return jnp.ones((dim,), F32), jnp.zeros((dim,), F32)

    def block_params(dim, heads):
        g1, b1 = ln(dim)
        g2, b2 = ln(dim)
        return dict(
            n1_g=g1, n1_b=b1,
            qkv_w=normal((dim, 3 * dim)), qkv_b=jnp.zeros((3 * dim,), F32),
            rel_table=normal(((2 * WIN[0] - 1) ** 3, heads)),
            proj_w=normal((dim, dim)), proj_b=jnp.zeros((dim,), F32),
            n2_g=g2, n2_b=b2,
            fc1_w=normal((dim, 4 * dim)), fc1_b=jnp.zeros((4 * dim,), F32),
            fc2_w=normal((4 * dim, dim)), fc2_b=jnp.zeros((dim,), F32),
        )

    def layer_params(dim, heads):
        gm, bm = ln(8 * dim)
        return dict(blocks=[block_params(dim, heads) for _ in range(2)],
                    merge=dict(n_g=gm, n_b=bm, red_w=normal((8 * dim, 2 * dim))))

    def res_block(cin, cout):
        p = dict(conv1_w=normal((cout, cin, 3, 3, 3)),
                 conv2_w=normal((cout, cout, 3, 3, 3)))
        if cin != cout:
            p["conv3_w"] = normal((cout, cin, 1, 1, 1))
        return p

    def up(cin, cout):
        return dict(transp_w=normal((cin, cout, 2, 2, 2)),
                    res=res_block(2 * cout, cout))

    swin = dict(pe_w=normal((fs, in_ch, 2, 2, 2)),
                pe_b=jnp.zeros((fs,), F32),
                layers=[layer_params(fs * (2 ** i), HEADS[i]) for i in range(4)])

    return dict(
        swinViT=swin,
        encoder1=res_block(in_ch, fs),
        encoder2=res_block(fs, fs),
        encoder3=res_block(2 * fs, 2 * fs),
        encoder4=res_block(4 * fs, 4 * fs),
        encoder10=res_block(16 * fs, 16 * fs),
        decoder5=up(16 * fs, 8 * fs),
        decoder4=up(8 * fs, 4 * fs),
        decoder3=up(4 * fs, 2 * fs),
        decoder2=up(2 * fs, fs),
        decoder1=up(fs, fs),
        out_w=normal((out_ch, fs, 1, 1, 1)),
        out_b=jnp.zeros((out_ch,), F32),
    )


# ----------------------------------------------------------------------------
if __name__ == "__main__":
    key = jax.random.PRNGKey(0)
    in_channels, out_channels, img = 2, 3, 32   # img_size must be divisible by 32
    x = jax.random.normal(jax.random.fold_in(key, 12345),
                          (1, in_channels, img, img, img), F32)
    params = init_params(key, in_channels, out_channels)

    logits = swin_unetr_forward(x, params)
    logits = jax.block_until_ready(logits)
    assert logits.shape == (1, out_channels, img, img, img), logits.shape
    assert bool(jnp.all(jnp.isfinite(logits)))
    print("KERNEL_OK")
</pallas_src>

<mosaic_0001>
module attributes {stable_mosaic.version = 11 : i64} {
  func.func @_matmul_kernel(%arg0: i32, %arg1: i32, %arg2: memref<4096x16xf32, #tpu.memory_space<vmem>>, %arg3: memref<16x24xf32, #tpu.memory_space<vmem>>, %arg4: memref<1x24xf32, #tpu.memory_space<vmem>>, %arg5: memref<4096x24xf32, #tpu.memory_space<vmem>>) attributes {dimension_semantics = [#tpu.dimension_semantics<parallel>, #tpu.dimension_semantics<parallel>], iteration_bounds = array<i64: 1, 1>, scalar_prefetch = 0 : i64, scratch_operands = 0 : i64, tpu.core_type = #tpu.core_type<tc>, window_params = [{transform_indices = @transform_0, window_bounds = array<i64: 4096, 16>}, {transform_indices = @transform_1, window_bounds = array<i64: 16, 24>}, {transform_indices = @transform_2, window_bounds = array<i64: 1, 24>}, {transform_indices = @transform_3, window_bounds = array<i64: 4096, 24>}]} {
    %c0 = arith.constant 0 : index
    %c0_0 = arith.constant 0 : index
    %0 = vector.load %arg2[%c0, %c0_0] : memref<4096x16xf32, #tpu.memory_space<vmem>>, vector<4096x16xf32>
    %c0_1 = arith.constant 0 : index
    %c0_2 = arith.constant 0 : index
    %1 = vector.load %arg3[%c0_1, %c0_2] : memref<16x24xf32, #tpu.memory_space<vmem>>, vector<16x24xf32>
    %cst = arith.constant dense<0.000000e+00> : vector<4096x24xf32>
    %2 = tpu.matmul %0, %1, %cst {dimension_numbers = #tpu.dot_dimension_numbers<[1], [0], [0], [1], [0, 0, 1, 1], [], []>} : vector<4096x16xf32>, vector<16x24xf32>, vector<4096x24xf32> -> vector<4096x24xf32>
    %c0_3 = arith.constant 0 : index
    %c0_4 = arith.constant 0 : index
    %3 = vector.load %arg4[%c0_3, %c0_4] : memref<1x24xf32, #tpu.memory_space<vmem>>, vector<1x24xf32>
    %4 = vector.broadcast %3 : vector<1x24xf32> to vector<4096x24xf32>
    %5 = arith.addf %2, %4 : vector<4096x24xf32>
    %c0_5 = arith.constant 0 : index
    %c0_6 = arith.constant 0 : index
    %6 = vector.load %arg5[%c0_5, %c0_6] : memref<4096x24xf32, #tpu.memory_space<vmem>>, vector<4096x24xf32>
    tpu.vector_store %arg5[%c0_5, %c0_6], %5 {strides = array<i32>} : memref<4096x24xf32, #tpu.memory_space<vmem>>, vector<4096x24xf32>,
    return
  }
  func.func @transform_0(%arg0: i32, %arg1: i32) -> (i32, i32) {
    %c0_i32 = arith.constant 0 : i32
    %c0_i32_0 = arith.constant 0 : i32
    return %arg0, %c0_i32 : i32, i32
  }
  func.func @transform_1(%arg0: i32, %arg1: i32) -> (i32, i32) {
    %c0_i32 = arith.constant 0 : i32
    %c0_i32_0 = arith.constant 0 : i32
    return %c0_i32, %arg1 : i32, i32
  }
  func.func @transform_2(%arg0: i32, %arg1: i32) -> (i32, i32) {
    %c0_i32 = arith.constant 0 : i32
    %c0_i32_0 = arith.constant 0 : i32
    return %c0_i32, %arg1 : i32, i32
  }
  func.func @transform_3(%arg0: i32, %arg1: i32) -> (i32, i32) {
    %c0_i32 = arith.constant 0 : i32
    return %arg0, %arg1 : i32, i32
  }
}

</mosaic_0001>

<bundles_post_ra>
// kernel: matmul_bias.1
= control target key start
LH: loop header
LB: loop body
LE: loop exit
PB: predicated region body
PF: predicated region fallthrough
CT: control target
= control target key end

     0   :  { %vm535_vm0 = vcmask 130048   ;;  %vm4697_vm1 = vcmask 195584   ;;  %s11682_s1 = inlined_call_operand.vmem [shape: f32[16,24], index: 1, kind: input, shape index: {}]   ;;  %s11683_s0 = inlined_call_operand.vmem [shape: f32[4096,16], index: 0, kind: input, shape index: {}]   ;;  %s11684_s2 = inlined_call_operand.vmem [shape: f32[1,24], index: 2, kind: input, shape index: {}]   ;;  %s11685_s3 = inlined_call_operand.vmem [shape: f32[4096,24], index: 3, kind: output, shape index: {}]  }
   0x1   :  { %v526_v0 = vld [vmem:[%s11682_s1] sm:$0xff]  ;;  %v527_v1 = vld [vmem:[%s11682_s1 + $0x8] sm:$0xff]  ;;  %v16_v7 = vld [vmem:[%s11683_s0 + $0x10] sm:$0xff] }
   0x2   :  { %v14_v2 = vld [vmem:[%s11683_s0] sm:$0xff]  ;;  %v7013_v3 = vpack.c.bf16 %v527_v1, %v526_v0  ;;  %v15_v5 = vld [vmem:[%s11683_s0 + $0x8] sm:$0xff]  ;;  %v272_v8 = vld [vmem:[%s11683_s0 + $0x810] sm:$0xff] }
   0x3   :  { %6245 = vmatprep.mubr.msk.f32.mxu0 %vm535_vm0, %v14_v2  ;;  %v270_v4 = vld [vmem:[%s11683_s0 + $0x800] sm:$0xff]  ;;  %v271_v6 = vld [vmem:[%s11683_s0 + $0x808] sm:$0xff]  ;;  %v17_v9 = vld [vmem:[%s11683_s0 + $0x18] sm:$0xff] }
   0x4   :  { %6629 = vmatprep.mubr.msk.f32.mxu1 %vm535_vm0, %v270_v4  ;;  %7014 = vmatprep.subr.bf16.mxu0 %v7013_v3  ;;  %v273_v10 = vld [vmem:[%s11683_s0 + $0x818] sm:$0xff]  ;;  %v18_v11 = vld [vmem:[%s11683_s0 + $0x20] sm:$0xff]  ;;  %v19_v13 = vld [vmem:[%s11683_s0 + $0x28] sm:$0xff] }
   0x5   :  { %7017 = vmatprep.subr.bf16.mxu1 %v7013_v3  ;;  %7016 = vmatpush3.bf16.msra.mxu0 %v7013_v3  ;;  %v274_v12 = vld [vmem:[%s11683_s0 + $0x820] sm:$0xff]  ;;  %v275_v14 = vld [vmem:[%s11683_s0 + $0x828] sm:$0xff]  ;;  %v20_v15 = vld [vmem:[%s11683_s0 + $0x30] sm:$0xff] }
   0x6   :  { %7018 = vmatpush3.bf16.msra.mxu1 %v7013_v3  ;;  %v276_v16 = vld [vmem:[%s11683_s0 + $0x830] sm:$0xff]  ;;  %v21_v17 = vld [vmem:[%s11683_s0 + $0x38] sm:$0xff]  ;;  %v22_v19 = vld [vmem:[%s11683_s0 + $0x40] sm:$0xff] }
   0x7   :  { %v277_v18 = vld [vmem:[%s11683_s0 + $0x838] sm:$0xff]  ;;  %v278_v20 = vld [vmem:[%s11683_s0 + $0x840] sm:$0xff]  ;;  %v23_v21 = vld [vmem:[%s11683_s0 + $0x48] sm:$0xff] }
   0x8   :  { %6246 = vmatmul.mubr.msk.f32.vlgmr.msra.gmra.mrb[0].mxu0 %vm535_vm0, %v15_v5  ;;  %v279_v22 = vld [vmem:[%s11683_s0 + $0x848] sm:$0xff]  ;;  %v24_v23 = vld [vmem:[%s11683_s0 + $0x50] sm:$0xff]  ;;  %v25_v25 = vld [vmem:[%s11683_s0 + $0x58] sm:$0xff] }
   0x9   :  { %6630 = vmatmul.mubr.msk.f32.vlgmr.msra.gmra.mrb[0].mxu1 %vm535_vm0, %v271_v6  ;;  %6248 = vmatprep.mubr.msk.f32.mxu0 %vm535_vm0, %v16_v7  ;;  %v280_v24 = vld [vmem:[%s11683_s0 + $0x850] sm:$0xff]  ;;  %v281_v26 = vld [vmem:[%s11683_s0 + $0x858] sm:$0xff]  ;;  %v26_v27 = vld [vmem:[%s11683_s0 + $0x60] sm:$0xff] }
   0xa   :  { %6632 = vmatprep.mubr.msk.f32.mxu1 %vm535_vm0, %v272_v8  ;;  %v282_v28 = vld [vmem:[%s11683_s0 + $0x860] sm:$0xff]  ;;  %v27_v29 = vld [vmem:[%s11683_s0 + $0x68] sm:$0xff]  ;;  %v28_v31 = vld [vmem:[%s11683_s0 + $0x70] sm:$0xff] }
   0xb   :  { %v283_v30 = vld [vmem:[%s11683_s0 + $0x868] sm:$0xff]  ;;  %v284_v32 = vld [vmem:[%s11683_s0 + $0x870] sm:$0xff]  ;;  %v29_v33 = vld [vmem:[%s11683_s0 + $0x78] sm:$0xff] }
   0xc   :  { %6249 = vmatmul.mubr.msk.f32.gmra.mrb[2].mxu0 %vm535_vm0, %v17_v9  ;;  %v285_v34 = vld [vmem:[%s11683_s0 + $0x878] sm:$0xff]  ;;  %v30_v35 = vld [vmem:[%s11683_s0 + $0x80] sm:$0xff]  ;;  %v31_v37 = vld [vmem:[%s11683_s0 + $0x88] sm:$0xff] }
   0xd   :  { %6633 = vmatmul.mubr.msk.f32.gmra.mrb[2].mxu1 %vm535_vm0, %v273_v10  ;;  %6251 = vmatprep.mubr.msk.f32.mxu0 %vm535_vm0, %v18_v11  ;;  %v286_v36 = vld [vmem:[%s11683_s0 + $0x880] sm:$0xff]  ;;  %v287_v38 = vld [vmem:[%s11683_s0 + $0x888] sm:$0xff]  ;;  %v32_v39 = vld [vmem:[%s11683_s0 + $0x90] sm:$0xff] }
   0xe   :  { %6635 = vmatprep.mubr.msk.f32.mxu1 %vm535_vm0, %v274_v12  ;;  %v288_v40 = vld [vmem:[%s11683_s0 + $0x890] sm:$0xff]  ;;  %v33_v41 = vld [vmem:[%s11683_s0 + $0x98] sm:$0xff]  ;;  %v34_v43 = vld [vmem:[%s11683_s0 + $0xa0] sm:$0xff] }
   0xf   :  { %v289_v42 = vld [vmem:[%s11683_s0 + $0x898] sm:$0xff]  ;;  %v290_v44 = vld [vmem:[%s11683_s0 + $0x8a0] sm:$0xff]  ;;  %v35_v45 = vld [vmem:[%s11683_s0 + $0xa8] sm:$0xff] }
  0x10   :  { %6252 = vmatmul.mubr.msk.f32.gmra.mrb[4].mxu0 %vm535_vm0, %v19_v13  ;;  %v291_v46 = vld [vmem:[%s11683_s0 + $0x8a8] sm:$0xff]  ;;  %v36_v47 = vld [vmem:[%s11683_s0 + $0xb0] sm:$0xff]  ;;  %v37_v49 = vld [vmem:[%s11683_s0 + $0xb8] sm:$0xff] }
  0x11   :  { %6636 = vmatmul.mubr.msk.f32.gmra.mrb[4].mxu1 %vm535_vm0, %v275_v14  ;;  %6254 = vmatprep.mubr.msk.f32.mxu0 %vm535_vm0, %v20_v15  ;;  %v292_v48 = vld [vmem:[%s11683_s0 + $0x8b0] sm:$0xff]  ;;  %v293_v50 = vld [vmem:[%s11683_s0 + $0x8b8] sm:$0xff]  ;;  %v38_v51 = vld [vmem:[%s11683_s0 + $0xc0] sm:$0xff] }
  0x12   :  { %6638 = vmatprep.mubr.msk.f32.mxu1 %vm535_vm0, %v276_v16  ;;  %v294_v52 = vld [vmem:[%s11683_s0 + $0x8c0] sm:$0xff]  ;;  %v39_v53 = vld [vmem:[%s11683_s0 + $0xc8] sm:$0xff]  ;;  %v40_v55 = vld [vmem:[%s11683_s0 + $0xd0] sm:$0xff] }
  0x13   :  { %v295_v54 = vld [vmem:[%s11683_s0 + $0x8c8] sm:$0xff]  ;;  %v296_v56 = vld [vmem:[%s11683_s0 + $0x8d0] sm:$0xff]  ;;  %v41_v57 = vld [vmem:[%s11683_s0 + $0xd8] sm:$0xff] }
  0x14   :  { %6255 = vmatmul.mubr.msk.f32.gmra.mrb[6].mxu0 %vm535_vm0, %v21_v17  ;;  %v297_v58 = vld [vmem:[%s11683_s0 + $0x8d8] sm:$0xff]  ;;  %v42_v59 = vld [vmem:[%s11683_s0 + $0xe0] sm:$0xff]  ;;  %v43_v61 = vld [vmem:[%s11683_s0 + $0xe8] sm:$0xff] }
  0x15   :  { %6639 = vmatmul.mubr.msk.f32.gmra.mrb[6].mxu1 %vm535_vm0, %v277_v18  ;;  %6257 = vmatprep.mubr.msk.f32.mxu0 %vm535_vm0, %v22_v19  ;;  %v298_v60 = vld [vmem:[%s11683_s0 + $0x8e0] sm:$0xff]  ;;  %v299_v62 = vld [vmem:[%s11683_s0 + $0x8e8] sm:$0xff]  ;;  %v44_v63 = vld [vmem:[%s11683_s0 + $0xf0] sm:$0xff] }
  0x16   :  { %6641 = vmatprep.mubr.msk.f32.mxu1 %vm535_vm0, %v278_v20  ;;  %v300_v0 = vld [vmem:[%s11683_s0 + $0x8f0] sm:$0xff]  ;;  %v45_v1 = vld [vmem:[%s11683_s0 + $0xf8] sm:$0xff]  ;;  %v46_v3 = vld [vmem:[%s11683_s0 + $0x100] sm:$0xff] }
  0x17   :  { %v301_v2 = vld [vmem:[%s11683_s0 + $0x8f8] sm:$0xff]  ;;  %v302_v4 = vld [vmem:[%s11683_s0 + $0x900] sm:$0xff]  ;;  %v47_v5 = vld [vmem:[%s11683_s0 + $0x108] sm:$0xff] }
  0x18   :  { %6258 = vmatmul.mubr.msk.f32.gmra.mrb[8].mxu0 %vm535_vm0, %v23_v21  ;;  %v303_v6 = vld [vmem:[%s11683_s0 + $0x908] sm:$0xff]  ;;  %v48_v7 = vld [vmem:[%s11683_s0 + $0x110] sm:$0xff]  ;;  %v49_v9 = vld [vmem:[%s11683_s0 + $0x118] sm:$0xff] }
  0x19   :  { %6642 = vmatmul.mubr.msk.f32.gmra.mrb[8].mxu1 %vm535_vm0, %v279_v22  ;;  %6260 = vmatprep.mubr.msk.f32.mxu0 %vm535_vm0, %v24_v23  ;;  %v304_v8 = vld [vmem:[%s11683_s0 + $0x910] sm:$0xff]  ;;  %v305_v10 = vld [vmem:[%s11683_s0 + $0x918] sm:$0xff]  ;;  %v50_v11 = vld [vmem:[%s11683_s0 + $0x120] sm:$0xff] }
  0x1a   :  { %6644 = vmatprep.mubr.msk.f32.mxu1 %vm535_vm0, %v280_v24  ;;  %v306_v12 = vld [vmem:[%s11683_s0 + $0x920] sm:$0xff]  ;;  %v51_v13 = vld [vmem:[%s11683_s0 + $0x128] sm:$0xff]  ;;  %v52_v15 = vld [vmem:[%s11683_s0 + $0x130] sm:$0xff] }
  0x1b   :  { %v307_v14 = vld [vmem:[%s11683_s0 + $0x928] sm:$0xff]  ;;  %v308_v16 = vld [vmem:[%s11683_s0 + $0x930] sm:$0xff]  ;;  %v53_v17 = vld [vmem:[%s11683_s0 + $0x138] sm:$0xff] }
  0x1c   :  { %6261 = vmatmul.mubr.msk.f32.gmra.mrb[10].mxu0 %vm535_vm0, %v25_v25  ;;  %v309_v18 = vld [vmem:[%s11683_s0 + $0x938] sm:$0xff]  ;;  %v54_v19 = vld [vmem:[%s11683_s0 + $0x140] sm:$0xff]  ;;  %v55_v21 = vld [vmem:[%s11683_s0 + $0x148] sm:$0xff] }
  0x1d   :  { %6645 = vmatmul.mubr.msk.f32.gmra.mrb[10].mxu1 %vm535_vm0, %v281_v26  ;;  %6263 = vmatprep.mubr.msk.f32.mxu0 %vm535_vm0, %v26_v27  ;;  %v310_v20 = vld [vmem:[%s11683_s0 + $0x940] sm:$0xff]  ;;  %v311_v22 = vld [vmem:[%s11683_s0 + $0x948] sm:$0xff]  ;;  %v56_v23 = vld [vmem:[%s11683_s0 + $0x150] sm:$0xff] }
  0x1e   :  { %6647 = vmatprep.mubr.msk.f32.mxu1 %vm535_vm0, %v282_v28  ;;  %v312_v24 = vld [vmem:[%s11683_s0 + $0x950] sm:$0xff]  ;;  %v57_v25 = vld [vmem:[%s11683_s0 + $0x158] sm:$0xff]  ;;  %v58_v27 = vld [vmem:[%s11683_s0 + $0x160] sm:$0xff] }
  0x1f   :  { %v313_v26 = vld [vmem:[%s11683_s0 + $0x958] sm:$0xff]  ;;  %v314_v28 = vld [vmem:[%s11683_s0 + $0x960] sm:$0xff] }
  0x20   :  { %6264 = vmatmul.mubr.msk.f32.gmra.mrb[12].mxu0 %vm535_vm0, %v27_v29  ;;  %v59_v29 = vld [vmem:[%s11683_s0 + $0x168] sm:$0xff] }
  0x21   :  { %6648 = vmatmul.mubr.msk.f32.gmra.mrb[12].mxu1 %vm535_vm0, %v283_v30  ;;  %6266 = vmatprep.mubr.msk.f32.mxu0 %vm535_vm0, %v28_v31  ;;  %v315_v30 = vld [vmem:[%s11683_s0 + $0x968] sm:$0xff]  ;;  %v60_v31 = vld [vmem:[%s11683_s0 + $0x170] sm:$0xff] }
  0x22   :  { %6650 = vmatprep.mubr.msk.f32.mxu1 %vm535_vm0, %v284_v32  ;;  %v316_v32 = vld [vmem:[%s11683_s0 + $0x970] sm:$0xff] }
  0x24   :  { %6267 = vmatmul.mubr.msk.f32.gmra.mrb[14].mxu0 %vm535_vm0, %v29_v33  ;;  %v61_v33 = vld [vmem:[%s11683_s0 + $0x178] sm:$0xff] }
  0x25   :  { %6651 = vmatmul.mubr.msk.f32.gmra.mrb[14].mxu1 %vm535_vm0, %v285_v34  ;;  %6269 = vmatprep.mubr.msk.f32.mxu0 %vm535_vm0, %v30_v35  ;;  %v317_v34 = vld [vmem:[%s11683_s0 + $0x978] sm:$0xff]  ;;  %v62_v35 = vld [vmem:[%s11683_s0 + $0x180] sm:$0xff] }
  0x26   :  { %6653 = vmatprep.mubr.msk.f32.mxu1 %vm535_vm0, %v286_v36  ;;  %v318_v36 = vld [vmem:[%s11683_s0 + $0x980] sm:$0xff] }
  0x28   :  { %6270 = vmatmul.mubr.msk.f32.gmra.mrb[16].mxu0 %vm535_vm0, %v31_v37  ;;  %v63_v37 = vld [vmem:[%s11683_s0 + $0x188] sm:$0xff] }
  0x29   :  { %6654 = vmatmul.mubr.msk.f32.gmra.mrb[16].mxu1 %vm535_vm0, %v287_v38  ;;  %6272 = vmatprep.mubr.msk.f32.mxu0 %vm535_vm0, %v32_v39  ;;  %v319_v38 = vld [vmem:[%s11683_s0 + $0x988] sm:$0xff]  ;;  %v64_v39 = vld [vmem:[%s11683_s0 + $0x190] sm:$0xff] }
  0x2a   :  { %6656 = vmatprep.mubr.msk.f32.mxu1 %vm535_vm0, %v288_v40  ;;  %v320_v40 = vld [vmem:[%s11683_s0 + $0x990] sm:$0xff] }
  0x2c   :  { %6273 = vmatmul.mubr.msk.f32.gmra.mrb[18].mxu0 %vm535_vm0, %v33_v41  ;;  %v65_v41 = vld [vmem:[%s11683_s0 + $0x198] sm:$0xff] }
  0x2d   :  { %6657 = vmatmul.mubr.msk.f32.gmra.mrb[18].mxu1 %vm535_vm0, %v289_v42  ;;  %6275 = vmatprep.mubr.msk.f32.mxu0 %vm535_vm0, %v34_v43  ;;  %v321_v42 = vld [vmem:[%s11683_s0 + $0x998] sm:$0xff]  ;;  %v66_v43 = vld [vmem:[%s11683_s0 + $0x1a0] sm:$0xff] }
  0x2e   :  { %6659 = vmatprep.mubr.msk.f32.mxu1 %vm535_vm0, %v290_v44  ;;  %v322_v44 = vld [vmem:[%s11683_s0 + $0x9a0] sm:$0xff] }
  0x30   :  { %6276 = vmatmul.mubr.msk.f32.gmra.mrb[20].mxu0 %vm535_vm0, %v35_v45  ;;  %v67_v45 = vld [vmem:[%s11683_s0 + $0x1a8] sm:$0xff] }
  0x31   :  { %6660 = vmatmul.mubr.msk.f32.gmra.mrb[20].mxu1 %vm535_vm0, %v291_v46  ;;  %6278 = vmatprep.mubr.msk.f32.mxu0 %vm535_vm0, %v36_v47  ;;  %v323_v46 = vld [vmem:[%s11683_s0 + $0x9a8] sm:$0xff]  ;;  %v68_v47 = vld [vmem:[%s11683_s0 + $0x1b0] sm:$0xff] }
  0x32   :  { %6662 = vmatprep.mubr.msk.f32.mxu1 %vm535_vm0, %v292_v48  ;;  %v324_v48 = vld [vmem:[%s11683_s0 + $0x9b0] sm:$0xff] }
  0x34   :  { %6279 = vmatmul.mubr.msk.f32.gmra.mrb[22].mxu0 %vm535_vm0, %v37_v49  ;;  %v69_v49 = vld [vmem:[%s11683_s0 + $0x1b8] sm:$0xff] }
  0x35   :  { %6663 = vmatmul.mubr.msk.f32.gmra.mrb[22].mxu1 %vm535_vm0, %v293_v50  ;;  %6281 = vmatprep.mubr.msk.f32.mxu0 %vm535_vm0, %v38_v51  ;;  %v325_v50 = vld [vmem:[%s11683_s0 + $0x9b8] sm:$0xff]  ;;  %v70_v51 = vld [vmem:[%s11683_s0 + $0x1c0] sm:$0xff] }
  0x36   :  { %6665 = vmatprep.mubr.msk.f32.mxu1 %vm535_vm0, %v294_v52  ;;  %v326_v52 = vld [vmem:[%s11683_s0 + $0x9c0] sm:$0xff] }
  0x38   :  { %6282 = vmatmul.mubr.msk.f32.gmra.mrb[24].mxu0 %vm535_vm0, %v39_v53  ;;  %v71_v53 = vld [vmem:[%s11683_s0 + $0x1c8] sm:$0xff] }
  0x39   :  { %6666 = vmatmul.mubr.msk.f32.gmra.mrb[24].mxu1 %vm535_vm0, %v295_v54  ;;  %6284 = vmatprep.mubr.msk.f32.mxu0 %vm535_vm0, %v40_v55  ;;  %v327_v54 = vld [vmem:[%s11683_s0 + $0x9c8] sm:$0xff]  ;;  %v72_v55 = vld [vmem:[%s11683_s0 + $0x1d0] sm:$0xff] }
  0x3a   :  { %6668 = vmatprep.mubr.msk.f32.mxu1 %vm535_vm0, %v296_v56  ;;  %v328_v56 = vld [vmem:[%s11683_s0 + $0x9d0] sm:$0xff] }
  0x3c   :  { %6285 = vmatmul.mubr.msk.f32.gmra.mrb[26].mxu0 %vm535_vm0, %v41_v57  ;;  %v73_v57 = vld [vmem:[%s11683_s0 + $0x1d8] sm:$0xff] }
  0x3d   :  { %6669 = vmatmul.mubr.msk.f32.gmra.mrb[26].mxu1 %vm535_vm0, %v297_v58  ;;  %6287 = vmatprep.mubr.msk.f32.mxu0 %vm535_vm0, %v42_v59  ;;  %v329_v58 = vld [vmem:[%s11683_s0 + $0x9d8] sm:$0xff]  ;;  %v74_v59 = vld [vmem:[%s11683_s0 + $0x1e0] sm:$0xff] }
  0x3e   :  { %6671 = vmatprep.mubr.msk.f32.mxu1 %vm535_vm0, %v298_v60  ;;  %v330_v60 = vld [vmem:[%s11683_s0 + $0x9e0] sm:$0xff] }
  0x40   :  { %6288 = vmatmul.mubr.msk.f32.gmra.mrb[28].mxu0 %vm535_vm0, %v43_v61  ;;  %v75_v61 = vld [vmem:[%s11683_s0 + $0x1e8] sm:$0xff] }
  0x41   :  { %6672 = vmatmul.mubr.msk.f32.gmra.mrb[28].mxu1 %vm535_vm0, %v299_v62  ;;  %6290 = vmatprep.mubr.msk.f32.mxu0 %vm535_vm0, %v44_v63  ;;  %v331_v62 = vld [vmem:[%s11683_s0 + $0x9e8] sm:$0xff]  ;;  %v76_v63 = vld [vmem:[%s11683_s0 + $0x1f0] sm:$0xff] }
  0x42   :  { %6674 = vmatprep.mubr.msk.f32.mxu1 %vm535_vm0, %v300_v0  ;;  %v332_v0 = vld [vmem:[%s11683_s0 + $0x9f0] sm:$0xff] }
  0x44   :  { %6291 = vmatmul.mubr.msk.f32.gmra.mrb[30].mxu0 %vm535_vm0, %v45_v1  ;;  %v77_v1 = vld [vmem:[%s11683_s0 + $0x1f8] sm:$0xff] }
  0x45   :  { %6675 = vmatmul.mubr.msk.f32.gmra.mrb[30].mxu1 %vm535_vm0, %v301_v2  ;;  %6293 = vmatprep.mubr.msk.f32.mxu0 %vm535_vm0, %v46_v3  ;;  %v333_v2 = vld [vmem:[%s11683_s0 + $0x9f8] sm:$0xff]  ;;  %v78_v3 = vld [vmem:[%s11683_s0 + $0x200] sm:$0xff] }
  0x46   :  { %6677 = vmatprep.mubr.msk.f32.mxu1 %vm535_vm0, %v302_v4  ;;  %v334_v4 = vld [vmem:[%s11683_s0 + $0xa00] sm:$0xff] }
  0x48   :  { %6294 = vmatmul.mubr.msk.f32.gmra.mrb[32].mxu0 %vm535_vm0, %v47_v5  ;;  %v79_v5 = vld [vmem:[%s11683_s0 + $0x208] sm:$0xff] }
  0x49   :  { %6678 = vmatmul.mubr.msk.f32.gmra.mrb[32].mxu1 %vm535_vm0, %v303_v6  ;;  %6296 = vmatprep.mubr.msk.f32.mxu0 %vm535_vm0, %v48_v7  ;;  %v335_v6 = vld [vmem:[%s11683_s0 + $0xa08] sm:$0xff]  ;;  %v80_v7 = vld [vmem:[%s11683_s0 + $0x210] sm:$0xff] }
  0x4a   :  { %6680 = vmatprep.mubr.msk.f32.mxu1 %vm535_vm0, %v304_v8  ;;  %v336_v8 = vld [vmem:[%s11683_s0 + $0xa10] sm:$0xff] }
  0x4c   :  { %6297 = vmatmul.mubr.msk.f32.gmra.mrb[34].mxu0 %vm535_vm0, %v49_v9  ;;  %v81_v9 = vld [vmem:[%s11683_s0 + $0x218] sm:$0xff] }
  0x4d   :  { %6681 = vmatmul.mubr.msk.f32.gmra.mrb[34].mxu1 %vm535_vm0, %v305_v10  ;;  %6299 = vmatprep.mubr.msk.f32.mxu0 %vm535_vm0, %v50_v11  ;;  %v337_v10 = vld [vmem:[%s11683_s0 + $0xa18] sm:$0xff]  ;;  %v82_v11 = vld [vmem:[%s11683_s0 + $0x220] sm:$0xff] }
  0x4e   :  { %6683 = vmatprep.mubr.msk.f32.mxu1 %vm535_vm0, %v306_v12  ;;  %v338_v12 = vld [vmem:[%s11683_s0 + $0xa20] sm:$0xff] }
  0x50   :  { %6300 = vmatmul.mubr.msk.f32.gmra.mrb[36].mxu0 %vm535_vm0, %v51_v13  ;;  %v83_v13 = vld [vmem:[%s11683_s0 + $0x228] sm:$0xff] }
  0x51   :  { %6684 = vmatmul.mubr.msk.f32.gmra.mrb[36].mxu1 %vm535_vm0, %v307_v14  ;;  %6302 = vmatprep.mubr.msk.f32.mxu0 %vm535_vm0, %v52_v15  ;;  %v339_v14 = vld [vmem:[%s11683_s0 + $0xa28] sm:$0xff]  ;;  %v84_v15 = vld [vmem:[%s11683_s0 + $0x230] sm:$0xff] }
  0x52   :  { %6686 = vmatprep.mubr.msk.f32.mxu1 %vm535_vm0, %v308_v16  ;;  %v340_v16 = vld [vmem:[%s11683_s0 + $0xa30] sm:$0xff] }
  0x54   :  { %6303 = vmatmul.mubr.msk.f32.gmra.mrb[38].mxu0 %vm535_vm0, %v53_v17  ;;  %v85_v17 = vld [vmem:[%s11683_s0 + $0x238] sm:$0xff] }
  0x55   :  { %6687 = vmatmul.mubr.msk.f32.gmra.mrb[38].mxu1 %vm535_vm0, %v309_v18  ;;  %6305 = vmatprep.mubr.msk.f32.mxu0 %vm535_vm0, %v54_v19  ;;  %v341_v18 = vld [vmem:[%s11683_s0 + $0xa38] sm:$0xff]  ;;  %v86_v19 = vld [vmem:[%s11683_s0 + $0x240] sm:$0xff] }
  0x56   :  { %6689 = vmatprep.mubr.msk.f32.mxu1 %vm535_vm0, %v310_v20  ;;  %v342_v20 = vld [vmem:[%s11683_s0 + $0xa40] sm:$0xff] }
  0x58   :  { %6306 = vmatmul.mubr.msk.f32.gmra.mrb[40].mxu0 %vm535_vm0, %v55_v21  ;;  %v87_v21 = vld [vmem:[%s11683_s0 + $0x248] sm:$0xff] }
  0x59   :  { %6690 = vmatmul.mubr.msk.f32.gmra.mrb[40].mxu1 %vm535_vm0, %v311_v22  ;;  %6308 = vmatprep.mubr.msk.f32.mxu0 %vm535_vm0, %v56_v23  ;;  %v343_v22 = vld [vmem:[%s11683_s0 + $0xa48] sm:$0xff]  ;;  %v88_v23 = vld [vmem:[%s11683_s0 + $0x250] sm:$0xff] }
  0x5a   :  { %6692 = vmatprep.mubr.msk.f32.mxu1 %vm535_vm0, %v312_v24  ;;  %v344_v24 = vld [vmem:[%s11683_s0 + $0xa50] sm:$0xff] }
  0x5c   :  { %6309 = vmatmul.mubr.msk.f32.gmra.mrb[42].mxu0 %vm535_vm0, %v57_v25  ;;  %v89_v25 = vld [vmem:[%s11683_s0 + $0x258] sm:$0xff] }
  0x5d   :  { %6693 = vmatmul.mubr.msk.f32.gmra.mrb[42].mxu1 %vm535_vm0, %v313_v26  ;;  %6311 = vmatprep.mubr.msk.f32.mxu0 %vm535_vm0, %v58_v27  ;;  %v345_v26 = vld [vmem:[%s11683_s0 + $0xa58] sm:$0xff]  ;;  %v90_v27 = vld [vmem:[%s11683_s0 + $0x260] sm:$0xff] }
  0x5e   :  { %6695 = vmatprep.mubr.msk.f32.mxu1 %vm535_vm0, %v314_v28  ;;  %v346_v28 = vld [vmem:[%s11683_s0 + $0xa60] sm:$0xff] }
  0x60   :  { %6312 = vmatmul.mubr.msk.f32.gmra.mrb[44].mxu0 %vm535_vm0, %v59_v29  ;;  %v91_v29 = vld [vmem:[%s11683_s0 + $0x268] sm:$0xff] }
  0x61   :  { %6696 = vmatmul.mubr.msk.f32.gmra.mrb[44].mxu1 %vm535_vm0, %v315_v30  ;;  %6314 = vmatprep.mubr.msk.f32.mxu0 %vm535_vm0, %v60_v31  ;;  %v347_v30 = vld [vmem:[%s11683_s0 + $0xa68] sm:$0xff]  ;;  %v92_v31 = vld [vmem:[%s11683_s0 + $0x270] sm:$0xff] }
  0x62   :  { %6698 = vmatprep.mubr.msk.f32.mxu1 %vm535_vm0, %v316_v32  ;;  %v348_v32 = vld [vmem:[%s11683_s0 + $0xa70] sm:$0xff] }
  0x64   :  { %6315 = vmatmul.mubr.msk.f32.gmra.mrb[46].mxu0 %vm535_vm0, %v61_v33  ;;  %v93_v33 = vld [vmem:[%s11683_s0 + $0x278] sm:$0xff] }
  0x65   :  { %6699 = vmatmul.mubr.msk.f32.gmra.mrb[46].mxu1 %vm535_vm0, %v317_v34  ;;  %6317 = vmatprep.mubr.msk.f32.mxu0 %vm535_vm0, %v62_v35  ;;  %v349_v34 = vld [vmem:[%s11683_s0 + $0xa78] sm:$0xff]  ;;  %v94_v35 = vld [vmem:[%s11683_s0 + $0x280] sm:$0xff] }
  0x66   :  { %6701 = vmatprep.mubr.msk.f32.mxu1 %vm535_vm0, %v318_v36  ;;  %v350_v36 = vld [vmem:[%s11683_s0 + $0xa80] sm:$0xff] }
  0x68   :  { %6318 = vmatmul.mubr.msk.f32.gmra.mrb[48].mxu0 %vm535_vm0, %v63_v37  ;;  %v95_v37 = vld [vmem:[%s11683_s0 + $0x288] sm:$0xff] }
  0x69   :  { %6702 = vmatmul.mubr.msk.f32.gmra.mrb[48].mxu1 %vm535_vm0, %v319_v38  ;;  %6320 = vmatprep.mubr.msk.f32.mxu0 %vm535_vm0, %v64_v39  ;;  %v351_v38 = vld [vmem:[%s11683_s0 + $0xa88] sm:$0xff]  ;;  %v96_v39 = vld [vmem:[%s11683_s0 + $0x290] sm:$0xff] }
  0x6a   :  { %6704 = vmatprep.mubr.msk.f32.mxu1 %vm535_vm0, %v320_v40  ;;  %v352_v40 = vld [vmem:[%s11683_s0 + $0xa90] sm:$0xff] }
  0x6c   :  { %6321 = vmatmul.mubr.msk.f32.gmra.mrb[50].mxu0 %vm535_vm0, %v65_v41  ;;  %v97_v41 = vld [vmem:[%s11683_s0 + $0x298] sm:$0xff] }
  0x6d   :  { %6705 = vmatmul.mubr.msk.f32.gmra.mrb[50].mxu1 %vm535_vm0, %v321_v42  ;;  %6323 = vmatprep.mubr.msk.f32.mxu0 %vm535_vm0, %v66_v43  ;;  %v353_v42 = vld [vmem:[%s11683_s0 + $0xa98] sm:$0xff]  ;;  %v98_v43 = vld [vmem:[%s11683_s0 + $0x2a0] sm:$0xff] }
  0x6e   :  { %6707 = vmatprep.mubr.msk.f32.mxu1 %vm535_vm0, %v322_v44  ;;  %v354_v44 = vld [vmem:[%s11683_s0 + $0xaa0] sm:$0xff] }
  0x70   :  { %6324 = vmatmul.mubr.msk.f32.gmra.mrb[52].mxu0 %vm535_vm0, %v67_v45  ;;  %v99_v45 = vld [vmem:[%s11683_s0 + $0x2a8] sm:$0xff] }
  0x71   :  { %6708 = vmatmul.mubr.msk.f32.gmra.mrb[52].mxu1 %vm535_vm0, %v323_v46  ;;  %6326 = vmatprep.mubr.msk.f32.mxu0 %vm535_vm0, %v68_v47  ;;  %v355_v46 = vld [vmem:[%s11683_s0 + $0xaa8] sm:$0xff]  ;;  %v100_v47 = vld [vmem:[%s11683_s0 + $0x2b0] sm:$0xff] }
  0x72   :  { %6710 = vmatprep.mubr.msk.f32.mxu1 %vm535_vm0, %v324_v48  ;;  %v356_v48 = vld [vmem:[%s11683_s0 + $0xab0] sm:$0xff] }
  0x74   :  { %6327 = vmatmul.mubr.msk.f32.gmra.mrb[54].mxu0 %vm535_vm0, %v69_v49  ;;  %v101_v49 = vld [vmem:[%s11683_s0 + $0x2b8] sm:$0xff] }
  0x75   :  { %6711 = vmatmul.mubr.msk.f32.gmra.mrb[54].mxu1 %vm535_vm0, %v325_v50  ;;  %6329 = vmatprep.mubr.msk.f32.mxu0 %vm535_vm0, %v70_v51  ;;  %v357_v50 = vld [vmem:[%s11683_s0 + $0xab8] sm:$0xff]  ;;  %v102_v51 = vld [vmem:[%s11683_s0 + $0x2c0] sm:$0xff] }
  0x76   :  { %6713 = vmatprep.mubr.msk.f32.mxu1 %vm535_vm0, %v326_v52  ;;  %v358_v52 = vld [vmem:[%s11683_s0 + $0xac0] sm:$0xff] }
  0x78   :  { %6330 = vmatmul.mubr.msk.f32.gmra.mrb[56].mxu0 %vm535_vm0, %v71_v53  ;;  %v103_v53 = vld [vmem:[%s11683_s0 + $0x2c8] sm:$0xff] }
  0x79   :  { %6714 = vmatmul.mubr.msk.f32.gmra.mrb[56].mxu1 %vm535_vm0, %v327_v54  ;;  %6332 = vmatprep.mubr.msk.f32.mxu0 %vm535_vm0, %v72_v55  ;;  %v359_v54 = vld [vmem:[%s11683_s0 + $0xac8] sm:$0xff]  ;;  %v104_v55 = vld [vmem:[%s11683_s0 + $0x2d0] sm:$0xff] }
  0x7a   :  { %6716 = vmatprep.mubr.msk.f32.mxu1 %vm535_vm0, %v328_v56  ;;  %v360_v56 = vld [vmem:[%s11683_s0 + $0xad0] sm:$0xff] }
  0x7c   :  { %6333 = vmatmul.mubr.msk.f32.gmra.mrb[58].mxu0 %vm535_vm0, %v73_v57  ;;  %v105_v57 = vld [vmem:[%s11683_s0 + $0x2d8] sm:$0xff] }
  0x7d   :  { %6717 = vmatmul.mubr.msk.f32.gmra.mrb[58].mxu1 %vm535_vm0, %v329_v58  ;;  %6335 = vmatprep.mubr.msk.f32.mxu0 %vm535_vm0, %v74_v59  ;;  %v361_v58 = vld [vmem:[%s11683_s0 + $0xad8] sm:$0xff]  ;;  %v106_v59 = vld [vmem:[%s11683_s0 + $0x2e0] sm:$0xff] }
  0x7e   :  { %6719 = vmatprep.mubr.msk.f32.mxu1 %vm535_vm0, %v330_v60  ;;  %v362_v60 = vld [vmem:[%s11683_s0 + $0xae0] sm:$0xff] }
  0x80   :  { %6336 = vmatmul.mubr.msk.f32.gmra.mrb[60].mxu0 %vm535_vm0, %v75_v61  ;;  %v107_v61 = vld [vmem:[%s11683_s0 + $0x2e8] sm:$0xff] }
  0x81   :  { %6720 = vmatmul.mubr.msk.f32.gmra.mrb[60].mxu1 %vm535_vm0, %v331_v62  ;;  %6338 = vmatprep.mubr.msk.f32.mxu0 %vm535_vm0, %v76_v63  ;;  %v363_v62 = vld [vmem:[%s11683_s0 + $0xae8] sm:$0xff]  ;;  %v108_v63 = vld [vmem:[%s11683_s0 + $0x2f0] sm:$0xff] }
  0x82   :  { %6722 = vmatprep.mubr.msk.f32.mxu1 %vm535_vm0, %v332_v0  ;;  %v364_v0 = vld [vmem:[%s11683_s0 + $0xaf0] sm:$0xff] }
  0x84   :  { %6339 = vmatmul.mubr.msk.f32.gmra.mrb[62].mxu0 %vm535_vm0, %v77_v1  ;;  %v109_v1 = vld [vmem:[%s11683_s0 + $0x2f8] sm:$0xff] }
  0x85   :  { %6723 = vmatmul.mubr.msk.f32.gmra.mrb[62].mxu1 %vm535_vm0, %v333_v2  ;;  %6341 = vmatprep.mubr.msk.f32.mxu0 %vm535_vm0, %v78_v3  ;;  %v365_v2 = vld [vmem:[%s11683_s0 + $0xaf8] sm:$0xff]  ;;  %v110_v3 = vld [vmem:[%s11683_s0 + $0x300] sm:$0xff] }
  0x86   :  { %6725 = vmatprep.mubr.msk.f32.mxu1 %vm535_vm0, %v334_v4  ;;  %v366_v4 = vld [vmem:[%s11683_s0 + $0xb00] sm:$0xff] }
  0x88   :  { %6342 = vmatmul.mubr.msk.f32.gmra.mrb[64].mxu0 %vm535_vm0, %v79_v5  ;;  %v111_v5 = vld [vmem:[%s11683_s0 + $0x308] sm:$0xff] }
  0x89   :  { %6726 = vmatmul.mubr.msk.f32.gmra.mrb[64].mxu1 %vm535_vm0, %v335_v6  ;;  %6344 = vmatprep.mubr.msk.f32.mxu0 %vm535_vm0, %v80_v7  ;;  %v367_v6 = vld [vmem:[%s11683_s0 + $0xb08] sm:$0xff]  ;;  %v112_v7 = vld [vmem:[%s11683_s0 + $0x310] sm:$0xff] }
  0x8a   :  { %6728 = vmatprep.mubr.msk.f32.mxu1 %vm535_vm0, %v336_v8  ;;  %v368_v8 = vld [vmem:[%s11683_s0 + $0xb10] sm:$0xff] }
  0x8c   :  { %6345 = vmatmul.mubr.msk.f32.gmra.mrb[66].mxu0 %vm535_vm0, %v81_v9  ;;  %v113_v9 = vld [vmem:[%s11683_s0 + $0x318] sm:$0xff] }
  0x8d   :  { %6729 = vmatmul.mubr.msk.f32.gmra.mrb[66].mxu1 %vm535_vm0, %v337_v10  ;;  %6347 = vmatprep.mubr.msk.f32.mxu0 %vm535_vm0, %v82_v11  ;;  %v369_v10 = vld [vmem:[%s11683_s0 + $0xb18] sm:$0xff]  ;;  %v114_v11 = vld [vmem:[%s11683_s0 + $0x320] sm:$0xff] }
  0x8e   :  { %6731 = vmatprep.mubr.msk.f32.mxu1 %vm535_vm0, %v338_v12  ;;  %v370_v12 = vld [vmem:[%s11683_s0 + $0xb20] sm:$0xff] }
  0x90   :  { %6348 = vmatmul.mubr.msk.f32.gmra.mrb[68].mxu0 %vm535_vm0, %v83_v13  ;;  %v115_v13 = vld [vmem:[%s11683_s0 + $0x328] sm:$0xff] }
  0x91   :  { %6732 = vmatmul.mubr.msk.f32.gmra.mrb[68].mxu1 %vm535_vm0, %v339_v14  ;;  %6350 = vmatprep.mubr.msk.f32.mxu0 %vm535_vm0, %v84_v15  ;;  %v371_v14 = vld [vmem:[%s11683_s0 + $0xb28] sm:$0xff]  ;;  %v116_v15 = vld [vmem:[%s11683_s0 + $0x330] sm:$0xff] }
  0x92   :  { %6734 = vmatprep.mubr.msk.f32.mxu1 %vm535_vm0, %v340_v16  ;;  %v372_v16 = vld [vmem:[%s11683_s0 + $0xb30] sm:$0xff] }
  0x94   :  { %6351 = vmatmul.mubr.msk.f32.gmra.mrb[70].mxu0 %vm535_vm0, %v85_v17  ;;  %v117_v17 = vld [vmem:[%s11683_s0 + $0x338] sm:$0xff] }
  0x95   :  { %6735 = vmatmul.mubr.msk.f32.gmra.mrb[70].mxu1 %vm535_vm0, %v341_v18  ;;  %6353 = vmatprep.mubr.msk.f32.mxu0 %vm535_vm0, %v86_v19  ;;  %v373_v18 = vld [vmem:[%s11683_s0 + $0xb38] sm:$0xff]  ;;  %v118_v19 = vld [vmem:[%s11683_s0 + $0x340] sm:$0xff] }
  0x96   :  { %6737 = vmatprep.mubr.msk.f32.mxu1 %vm535_vm0, %v342_v20  ;;  %v374_v20 = vld [vmem:[%s11683_s0 + $0xb40] sm:$0xff] }
  0x98   :  { %6354 = vmatmul.mubr.msk.f32.gmra.mrb[72].mxu0 %vm535_vm0, %v87_v21  ;;  %v119_v21 = vld [vmem:[%s11683_s0 + $0x348] sm:$0xff] }
  0x99   :  { %6738 = vmatmul.mubr.msk.f32.gmra.mrb[72].mxu1 %vm535_vm0, %v343_v22  ;;  %6356 = vmatprep.mubr.msk.f32.mxu0 %vm535_vm0, %v88_v23  ;;  %v375_v22 = vld [vmem:[%s11683_s0 + $0xb48] sm:$0xff]  ;;  %v120_v23 = vld [vmem:[%s11683_s0 + $0x350] sm:$0xff] }
  0x9a   :  { %6740 = vmatprep.mubr.msk.f32.mxu1 %vm535_vm0, %v344_v24  ;;  %v376_v24 = vld [vmem:[%s11683_s0 + $0xb50] sm:$0xff] }
  0x9c   :  { %6357 = vmatmul.mubr.msk.f32.gmra.mrb[74].mxu0 %vm535_vm0, %v89_v25  ;;  %v7906_v25 = vld [vmem:[%s11684_s2] ss:$0 sm:$0xff] }
  0x9d   :  { %6741 = vmatmul.mubr.msk.f32.gmra.mrb[74].mxu1 %vm535_vm0, %v345_v26  ;;  %6359 = vmatprep.mubr.msk.f32.mxu0 %vm535_vm0, %v90_v27  ;;  %v121_v26 = vld [vmem:[%s11683_s0 + $0x358] sm:$0xff] }
  0x9e   :  { %6743 = vmatprep.mubr.msk.f32.mxu1 %vm535_vm0, %v346_v28  ;;  %v377_v27 = vld [vmem:[%s11683_s0 + $0xb58] sm:$0xff]  ;;  %v122_v28 = vld [vmem:[%s11683_s0 + $0x360] sm:$0xff] }
  0xa0   :  { %6360 = vmatmul.mubr.msk.f32.gmra.mrb[76].mxu0 %vm535_vm0, %v91_v29  ;;  %v378_v29 = vld [vmem:[%s11683_s0 + $0xb60] sm:$0xff] }
  0xa1   :  { %6744 = vmatmul.mubr.msk.f32.gmra.mrb[76].mxu1 %vm535_vm0, %v347_v30  ;;  %6362 = vmatprep.mubr.msk.f32.mxu0 %vm535_vm0, %v92_v31 }
  0xa2   :  { %6746 = vmatprep.mubr.msk.f32.mxu1 %vm535_vm0, %v348_v32 }
  0xa4   :  { %6363 = vmatmul.mubr.msk.f32.gmra.mrb[78].mxu0 %vm535_vm0, %v93_v33 }
  0xa5   :  { %6747 = vmatmul.mubr.msk.f32.gmra.mrb[78].mxu1 %vm535_vm0, %v349_v34  ;;  %6365 = vmatprep.mubr.msk.f32.mxu0 %vm535_vm0, %v94_v35 }
  0xa6   :  { %6749 = vmatprep.mubr.msk.f32.mxu1 %vm535_vm0, %v350_v36 }
  0xa8   :  { %6366 = vmatmul.mubr.msk.f32.gmra.mrb[80].mxu0 %vm535_vm0, %v95_v37 }
  0xa9   :  { %6750 = vmatmul.mubr.msk.f32.gmra.mrb[80].mxu1 %vm535_vm0, %v351_v38  ;;  %6368 = vmatprep.mubr.msk.f32.mxu0 %vm535_vm0, %v96_v39  ;;  %v123_v38 = vld [vmem:[%s11683_s0 + $0x368] sm:$0xff] }
  0xaa   :  { %6752 = vmatprep.mubr.msk.f32.mxu1 %vm535_vm0, %v352_v40  ;;  %v379_v39 = vld [vmem:[%s11683_s0 + $0xb68] sm:$0xff]  ;;  %v124_v40 = vld [vmem:[%s11683_s0 + $0x370] sm:$0xff] }
  0xac   :  { %6369 = vmatmul.mubr.msk.f32.gmra.mrb[82].mxu0 %vm535_vm0, %v97_v41  ;;  %v380_v41 = vld [vmem:[%s11683_s0 + $0xb70] sm:$0xff] }
  0xad   :  { %6753 = vmatmul.mubr.msk.f32.gmra.mrb[82].mxu1 %vm535_vm0, %v353_v42  ;;  %6371 = vmatprep.mubr.msk.f32.mxu0 %vm535_vm0, %v98_v43 }
  0xae   :  { %6755 = vmatprep.mubr.msk.f32.mxu1 %vm535_vm0, %v354_v44 }
  0xb0   :  { %6372 = vmatmul.mubr.msk.f32.gmra.mrb[84].mxu0 %vm535_vm0, %v99_v45 }
  0xb1   :  { %6756 = vmatmul.mubr.msk.f32.gmra.mrb[84].mxu1 %vm535_vm0, %v355_v46  ;;  %6374 = vmatprep.mubr.msk.f32.mxu0 %vm535_vm0, %v100_v47 }
  0xb2   :  { %6758 = vmatprep.mubr.msk.f32.mxu1 %vm535_vm0, %v356_v48 }
  0xb4   :  { %6375 = vmatmul.mubr.msk.f32.gmra.mrb[86].mxu0 %vm535_vm0, %v101_v49 }
  0xb5   :  { %6759 = vmatmul.mubr.msk.f32.gmra.mrb[86].mxu1 %vm535_vm0, %v357_v50  ;;  %6377 = vmatprep.mubr.msk.f32.mxu0 %vm535_vm0, %v102_v51  ;;  %v125_v50 = vld [vmem:[%s11683_s0 + $0x378] sm:$0xff] }
  0xb6   :  { %6761 = vmatprep.mubr.msk.f32.mxu1 %vm535_vm0, %v358_v52  ;;  %v381_v51 = vld [vmem:[%s11683_s0 + $0xb78] sm:$0xff]  ;;  %v126_v52 = vld [vmem:[%s11683_s0 + $0x380] sm:$0xff] }
  0xb8   :  { %6378 = vmatmul.mubr.msk.f32.gmra.mrb[88].mxu0 %vm535_vm0, %v103_v53  ;;  %v382_v53 = vld [vmem:[%s11683_s0 + $0xb80] sm:$0xff] }
  0xb9   :  { %6762 = vmatmul.mubr.msk.f32.gmra.mrb[88].mxu1 %vm535_vm0, %v359_v54  ;;  %6380 = vmatprep.mubr.msk.f32.mxu0 %vm535_vm0, %v104_v55 }
  0xba   :  { %6764 = vmatprep.mubr.msk.f32.mxu1 %vm535_vm0, %v360_v56 }
  0xbc   :  { %6381 = vmatmul.mubr.msk.f32.gmra.mrb[90].mxu0 %vm535_vm0, %v105_v57 }
  0xbd   :  { %6765 = vmatmul.mubr.msk.f32.gmra.mrb[90].mxu1 %vm535_vm0, %v361_v58  ;;  %6383 = vmatprep.mubr.msk.f32.mxu0 %vm535_vm0, %v106_v59 }
  0xbe   :  { %6767 = vmatprep.mubr.msk.f32.mxu1 %vm535_vm0, %v362_v60 }
  0xc0   :  { %6384 = vmatmul.mubr.msk.f32.gmra.mrb[92].mxu0 %vm535_vm0, %v107_v61 }
  0xc1   :  { %6768 = vmatmul.mubr.msk.f32.gmra.mrb[92].mxu1 %vm535_vm0, %v363_v62  ;;  %6386 = vmatprep.mubr.msk.f32.mxu0 %vm535_vm0, %v108_v63  ;;  %v127_v62 = vld [vmem:[%s11683_s0 + $0x388] sm:$0xff] }
  0xc2   :  { %6770 = vmatprep.mubr.msk.f32.mxu1 %vm535_vm0, %v364_v0  ;;  %v383_v63 = vld [vmem:[%s11683_s0 + $0xb88] sm:$0xff]  ;;  %v128_v0 = vld [vmem:[%s11683_s0 + $0x390] sm:$0xff] }
  0xc4   :  { %6387 = vmatmul.mubr.msk.f32.gmra.mrb[94].mxu0 %vm535_vm0, %v109_v1  ;;  %v384_v1 = vld [vmem:[%s11683_s0 + $0xb90] sm:$0xff] }
  0xc5   :  { %6771 = vmatmul.mubr.msk.f32.gmra.mrb[94].mxu1 %vm535_vm0, %v365_v2  ;;  %6389 = vmatprep.mubr.msk.f32.mxu0 %vm535_vm0, %v110_v3 }
  0xc6   :  { %6773 = vmatprep.mubr.msk.f32.mxu1 %vm535_vm0, %v366_v4 }
  0xc8   :  { %6390 = vmatmul.mubr.msk.f32.gmra.mrb[96].mxu0 %vm535_vm0, %v111_v5 }
  0xc9   :  { %6774 = vmatmul.mubr.msk.f32.gmra.mrb[96].mxu1 %vm535_vm0, %v367_v6  ;;  %6392 = vmatprep.mubr.msk.f32.mxu0 %vm535_vm0, %v112_v7 }
  0xca   :  { %6776 = vmatprep.mubr.msk.f32.mxu1 %vm535_vm0, %v368_v8 }
  0xcc   :  { %6393 = vmatmul.mubr.msk.f32.gmra.mrb[98].mxu0 %vm535_vm0, %v113_v9 }
  0xcd   :  { %6777 = vmatmul.mubr.msk.f32.gmra.mrb[98].mxu1 %vm535_vm0, %v369_v10  ;;  %6395 = vmatprep.mubr.msk.f32.mxu0 %vm535_vm0, %v114_v11  ;;  %v129_v10 = vld [vmem:[%s11683_s0 + $0x398] sm:$0xff] }
  0xce   :  { %6779 = vmatprep.mubr.msk.f32.mxu1 %vm535_vm0, %v370_v12  ;;  %v385_v11 = vld [vmem:[%s11683_s0 + $0xb98] sm:$0xff]  ;;  %v130_v12 = vld [vmem:[%s11683_s0 + $0x3a0] sm:$0xff] }
  0xd0   :  { %6396 = vmatmul.mubr.msk.f32.gmra.mrb[100].mxu0 %vm535_vm0, %v115_v13  ;;  %v386_v13 = vld [vmem:[%s11683_s0 + $0xba0] sm:$0xff] }
  0xd1   :  { %6780 = vmatmul.mubr.msk.f32.gmra.mrb[100].mxu1 %vm535_vm0, %v371_v14  ;;  %6398 = vmatprep.mubr.msk.f32.mxu0 %vm535_vm0, %v116_v15 }
  0xd2   :  { %6782 = vmatprep.mubr.msk.f32.mxu1 %vm535_vm0, %v372_v16 }
  0xd4   :  { %6399 = vmatmul.mubr.msk.f32.gmra.mrb[102].mxu0 %vm535_vm0, %v117_v17 }
  0xd5   :  { %6783 = vmatmul.mubr.msk.f32.gmra.mrb[102].mxu1 %vm535_vm0, %v373_v18  ;;  %6401 = vmatprep.mubr.msk.f32.mxu0 %vm535_vm0, %v118_v19 }
  0xd6   :  { %6785 = vmatprep.mubr.msk.f32.mxu1 %vm535_vm0, %v374_v20 }
  0xd8   :  { %6402 = vmatmul.mubr.msk.f32.gmra.mrb[104].mxu0 %vm535_vm0, %v119_v21 }
  0xd9   :  { %6786 = vmatmul.mubr.msk.f32.gmra.mrb[104].mxu1 %vm535_vm0, %v375_v22  ;;  %6404 = vmatprep.mubr.msk.f32.mxu0 %vm535_vm0, %v120_v23  ;;  %v131_v22 = vld [vmem:[%s11683_s0 + $0x3a8] sm:$0xff] }
  0xda   :  { %6788 = vmatprep.mubr.msk.f32.mxu1 %vm535_vm0, %v376_v24  ;;  %v387_v23 = vld [vmem:[%s11683_s0 + $0xba8] sm:$0xff]  ;;  %v132_v24 = vld [vmem:[%s11683_s0 + $0x3b0] sm:$0xff] }
  0xdb   :  { %v6247_v30 = vpop.f32.mrb[0].mxu0 }
  0xdc   :  { %v6631_v31 = vpop.f32.mrb[0].mxu1  ;;  %v2144_v32 = vadd.f32 %v6247_v30, %v7906_v25  ;;  %v2138_v34 = vpop.f32.mrb[1].mxu0  ;;  %6405 = vmatmul.mubr.msk.f32.gmra.mrb[106].mxu0 %vm535_vm0, %v121_v26  ;;  %v388_v26 = vld [vmem:[%s11683_s0 + $0xbb0] sm:$0xff] }
  0xdd   :  { %v3424_v33 = vadd.f32 %v6631_v31, %v7906_v25  ;;  %v3418_v35 = vpop.f32.mrb[1].mxu1  ;;  %6789 = vmatmul.mubr.msk.f32.gmra.mrb[106].mxu1 %vm535_vm0, %v377_v27  ;;  %v2139_v36 = vadd.f32 %v7906_v25, %v2138_v34  ;;  %6407 = vmatprep.mubr.msk.f32.mxu0 %vm535_vm0, %v122_v28 }
  0xde   :  { %v3419_v37 = vadd.f32 %v7906_v25, %v3418_v35  ;;  %6791 = vmatprep.mubr.msk.f32.mxu1 %vm535_vm0, %v378_v29  ;;  %4699 = vst.msk [vmem:[%s11685_s3 + $0x8] sm:$0xff] %vm4697_vm1, %v2144_v32  ;;  %v133_v35 = vld [vmem:[%s11683_s0 + $0x3b8] sm:$0xff] }
  0xdf   :  { %4955 = vst.msk [vmem:[%s11685_s3 + $0x808] sm:$0xff] %vm4697_vm1, %v3424_v33  ;;  %4698 = vst.msk [vmem:[%s11685_s3] sm:$0xff] %vm4697_vm1, %v2139_v36  ;;  %v6250_v42 = vpop.f32.mrb[2].mxu0  ;;  %v389_v36 = vld [vmem:[%s11683_s0 + $0xbb8] sm:$0xff] }
  0xe0   :  { %4954 = vst.msk [vmem:[%s11685_s3 + $0x800] sm:$0xff] %vm4697_vm1, %v3419_v37  ;;  %v6634_v43 = vpop.f32.mrb[2].mxu1  ;;  %v2154_v44 = vadd.f32 %v6250_v42, %v7906_v25  ;;  %v2148_v46 = vpop.f32.mrb[3].mxu0  ;;  %6408 = vmatmul.mubr.msk.f32.gmra.mrb[108].mxu0 %vm535_vm0, %v123_v38  ;;  %v134_v37 = vld [vmem:[%s11683_s0 + $0x3c0] sm:$0xff] }
  0xe1   :  { %v3434_v45 = vadd.f32 %v6634_v43, %v7906_v25  ;;  %v3428_v47 = vpop.f32.mrb[3].mxu1  ;;  %6792 = vmatmul.mubr.msk.f32.gmra.mrb[108].mxu1 %vm535_vm0, %v379_v39  ;;  %v2149_v48 = vadd.f32 %v7906_v25, %v2148_v46  ;;  %6410 = vmatprep.mubr.msk.f32.mxu0 %vm535_vm0, %v124_v40  ;;  %v390_v38 = vld [vmem:[%s11683_s0 + $0xbc0] sm:$0xff] }
  0xe2   :  { %v3429_v49 = vadd.f32 %v7906_v25, %v3428_v47  ;;  %6794 = vmatprep.mubr.msk.f32.mxu1 %vm535_vm0, %v380_v41  ;;  %4701 = vst.msk [vmem:[%s11685_s3 + $0x18] sm:$0xff] %vm4697_vm1, %v2154_v44  ;;  %v135_v47 = vld [vmem:[%s11683_s0 + $0x3c8] sm:$0xff] }
  0xe3   :  { %4957 = vst.msk [vmem:[%s11685_s3 + $0x818] sm:$0xff] %vm4697_vm1, %v3434_v45  ;;  %4700 = vst.msk [vmem:[%s11685_s3 + $0x10] sm:$0xff] %vm4697_vm1, %v2149_v48  ;;  %v6253_v54 = vpop.f32.mrb[4].mxu0  ;;  %v391_v48 = vld [vmem:[%s11683_s0 + $0xbc8] sm:$0xff] }
  0xe4   :  { %4956 = vst.msk [vmem:[%s11685_s3 + $0x810] sm:$0xff] %vm4697_vm1, %v3429_v49  ;;  %v6637_v55 = vpop.f32.mrb[4].mxu1  ;;  %v2164_v56 = vadd.f32 %v6253_v54, %v7906_v25  ;;  %v2158_v58 = vpop.f32.mrb[5].mxu0  ;;  %6411 = vmatmul.mubr.msk.f32.gmra.mrb[110].mxu0 %vm535_vm0, %v125_v50  ;;  %v136_v49 = vld [vmem:[%s11683_s0 + $0x3d0] sm:$0xff] }
  0xe5   :  { %v3444_v57 = vadd.f32 %v6637_v55, %v7906_v25  ;;  %v3438_v59 = vpop.f32.mrb[5].mxu1  ;;  %6795 = vmatmul.mubr.msk.f32.gmra.mrb[110].mxu1 %vm535_vm0, %v381_v51  ;;  %v2159_v60 = vadd.f32 %v7906_v25, %v2158_v58  ;;  %6413 = vmatprep.mubr.msk.f32.mxu0 %vm535_vm0, %v126_v52  ;;  %v392_v50 = vld [vmem:[%s11683_s0 + $0xbd0] sm:$0xff] }
  0xe6   :  { %v3439_v61 = vadd.f32 %v7906_v25, %v3438_v59  ;;  %6797 = vmatprep.mubr.msk.f32.mxu1 %vm535_vm0, %v382_v53  ;;  %4703 = vst.msk [vmem:[%s11685_s3 + $0x28] sm:$0xff] %vm4697_vm1, %v2164_v56  ;;  %v137_v59 = vld [vmem:[%s11683_s0 + $0x3d8] sm:$0xff] }
  0xe7   :  { %4959 = vst.msk [vmem:[%s11685_s3 + $0x828] sm:$0xff] %vm4697_vm1, %v3444_v57  ;;  %4702 = vst.msk [vmem:[%s11685_s3 + $0x20] sm:$0xff] %vm4697_vm1, %v2159_v60  ;;  %v6256_v2 = vpop.f32.mrb[6].mxu0  ;;  %v393_v60 = vld [vmem:[%s11683_s0 + $0xbd8] sm:$0xff] }
  0xe8   :  { %4958 = vst.msk [vmem:[%s11685_s3 + $0x820] sm:$0xff] %vm4697_vm1, %v3439_v61  ;;  %v6640_v3 = vpop.f32.mrb[6].mxu1  ;;  %v2174_v4 = vadd.f32 %v6256_v2, %v7906_v25  ;;  %v2168_v6 = vpop.f32.mrb[7].mxu0  ;;  %6414 = vmatmul.mubr.msk.f32.gmra.mrb[112].mxu0 %vm535_vm0, %v127_v62  ;;  %v138_v61 = vld [vmem:[%s11683_s0 + $0x3e0] sm:$0xff] }
  0xe9   :  { %v3454_v5 = vadd.f32 %v6640_v3, %v7906_v25  ;;  %v3448_v7 = vpop.f32.mrb[7].mxu1  ;;  %6798 = vmatmul.mubr.msk.f32.gmra.mrb[112].mxu1 %vm535_vm0, %v383_v63  ;;  %v2169_v8 = vadd.f32 %v7906_v25, %v2168_v6  ;;  %6416 = vmatprep.mubr.msk.f32.mxu0 %vm535_vm0, %v128_v0  ;;  %v394_v62 = vld [vmem:[%s11683_s0 + $0xbe0] sm:$0xff] }
  0xea   :  { %v3449_v9 = vadd.f32 %v7906_v25, %v3448_v7  ;;  %6800 = vmatprep.mubr.msk.f32.mxu1 %vm535_vm0, %v384_v1  ;;  %4705 = vst.msk [vmem:[%s11685_s3 + $0x38] sm:$0xff] %vm4697_vm1, %v2174_v4  ;;  %v139_v7 = vld [vmem:[%s11683_s0 + $0x3e8] sm:$0xff] }
  0xeb   :  { %4961 = vst.msk [vmem:[%s11685_s3 + $0x838] sm:$0xff] %vm4697_vm1, %v3454_v5  ;;  %4704 = vst.msk [vmem:[%s11685_s3 + $0x30] sm:$0xff] %vm4697_vm1, %v2169_v8  ;;  %v6259_v14 = vpop.f32.mrb[8].mxu0  ;;  %v395_v8 = vld [vmem:[%s11683_s0 + $0xbe8] sm:$0xff] }
  0xec   :  { %4960 = vst.msk [vmem:[%s11685_s3 + $0x830] sm:$0xff] %vm4697_vm1, %v3449_v9  ;;  %v6643_v15 = vpop.f32.mrb[8].mxu1  ;;  %v2184_v16 = vadd.f32 %v6259_v14, %v7906_v25  ;;  %v2178_v18 = vpop.f32.mrb[9].mxu0  ;;  %6417 = vmatmul.mubr.msk.f32.gmra.mrb[114].mxu0 %vm535_vm0, %v129_v10  ;;  %v140_v9 = vld [vmem:[%s11683_s0 + $0x3f0] sm:$0xff] }
  0xed   :  { %v3464_v17 = vadd.f32 %v6643_v15, %v7906_v25  ;;  %v3458_v19 = vpop.f32.mrb[9].mxu1  ;;  %6801 = vmatmul.mubr.msk.f32.gmra.mrb[114].mxu1 %vm535_vm0, %v385_v11  ;;  %v2179_v20 = vadd.f32 %v7906_v25, %v2178_v18  ;;  %6419 = vmatprep.mubr.msk.f32.mxu0 %vm535_vm0, %v130_v12  ;;  %v396_v10 = vld [vmem:[%s11683_s0 + $0xbf0] sm:$0xff] }
  0xee   :  { %v3459_v21 = vadd.f32 %v7906_v25, %v3458_v19  ;;  %6803 = vmatprep.mubr.msk.f32.mxu1 %vm535_vm0, %v386_v13  ;;  %4707 = vst.msk [vmem:[%s11685_s3 + $0x48] sm:$0xff] %vm4697_vm1, %v2184_v16  ;;  %v141_v19 = vld [vmem:[%s11683_s0 + $0x3f8] sm:$0xff] }
  0xef   :  { %4963 = vst.msk [vmem:[%s11685_s3 + $0x848] sm:$0xff] %vm4697_vm1, %v3464_v17  ;;  %4706 = vst.msk [vmem:[%s11685_s3 + $0x40] sm:$0xff] %vm4697_vm1, %v2179_v20  ;;  %v6262_v27 = vpop.f32.mrb[10].mxu0  ;;  %v397_v20 = vld [vmem:[%s11683_s0 + $0xbf8] sm:$0xff] }
  0xf0   :  { %4962 = vst.msk [vmem:[%s11685_s3 + $0x840] sm:$0xff] %vm4697_vm1, %v3459_v21  ;;  %v6646_v28 = vpop.f32.mrb[10].mxu1  ;;  %v2194_v29 = vadd.f32 %v6262_v27, %v7906_v25  ;;  %v2188_v31 = vpop.f32.mrb[11].mxu0  ;;  %6420 = vmatmul.mubr.msk.f32.gmra.mrb[116].mxu0 %vm535_vm0, %v131_v22  ;;  %v142_v21 = vld [vmem:[%s11683_s0 + $0x400] sm:$0xff] }
  0xf1   :  { %v3474_v30 = vadd.f32 %v6646_v28, %v7906_v25  ;;  %v3468_v32 = vpop.f32.mrb[11].mxu1  ;;  %6804 = vmatmul.mubr.msk.f32.gmra.mrb[116].mxu1 %vm535_vm0, %v387_v23  ;;  %v2189_v33 = vadd.f32 %v7906_v25, %v2188_v31  ;;  %6422 = vmatprep.mubr.msk.f32.mxu0 %vm535_vm0, %v132_v24  ;;  %v398_v22 = vld [vmem:[%s11683_s0 + $0xc00] sm:$0xff] }
  0xf2   :  { %v3469_v34 = vadd.f32 %v7906_v25, %v3468_v32  ;;  %6806 = vmatprep.mubr.msk.f32.mxu1 %vm535_vm0, %v388_v26  ;;  %4709 = vst.msk [vmem:[%s11685_s3 + $0x58] sm:$0xff] %vm4697_vm1, %v2194_v29  ;;  %v143_v32 = vld [vmem:[%s11683_s0 + $0x408] sm:$0xff] }
  0xf3   :  { %4965 = vst.msk [vmem:[%s11685_s3 + $0x858] sm:$0xff] %vm4697_vm1, %v3474_v30  ;;  %4708 = vst.msk [vmem:[%s11685_s3 + $0x50] sm:$0xff] %vm4697_vm1, %v2189_v33  ;;  %v6265_v39 = vpop.f32.mrb[12].mxu0  ;;  %v399_v33 = vld [vmem:[%s11683_s0 + $0xc08] sm:$0xff] }
  0xf4   :  { %4964 = vst.msk [vmem:[%s11685_s3 + $0x850] sm:$0xff] %vm4697_vm1, %v3469_v34  ;;  %v6649_v40 = vpop.f32.mrb[12].mxu1  ;;  %v2204_v41 = vadd.f32 %v6265_v39, %v7906_v25  ;;  %v2198_v43 = vpop.f32.mrb[13].mxu0  ;;  %6423 = vmatmul.mubr.msk.f32.gmra.mrb[118].mxu0 %vm535_vm0, %v133_v35  ;;  %v144_v34 = vld [vmem:[%s11683_s0 + $0x410] sm:$0xff] }
  0xf5   :  { %v3484_v42 = vadd.f32 %v6649_v40, %v7906_v25  ;;  %v3478_v44 = vpop.f32.mrb[13].mxu1  ;;  %6807 = vmatmul.mubr.msk.f32.gmra.mrb[118].mxu1 %vm535_vm0, %v389_v36  ;;  %v2199_v45 = vadd.f32 %v7906_v25, %v2198_v43  ;;  %6425 = vmatprep.mubr.msk.f32.mxu0 %vm535_vm0, %v134_v37  ;;  %v400_v35 = vld [vmem:[%s11683_s0 + $0xc10] sm:$0xff] }
  0xf6   :  { %v3479_v46 = vadd.f32 %v7906_v25, %v3478_v44  ;;  %6809 = vmatprep.mubr.msk.f32.mxu1 %vm535_vm0, %v390_v38  ;;  %4711 = vst.msk [vmem:[%s11685_s3 + $0x68] sm:$0xff] %vm4697_vm1, %v2204_v41  ;;  %v145_v44 = vld [vmem:[%s11683_s0 + $0x418] sm:$0xff] }
  0xf7   :  { %4967 = vst.msk [vmem:[%s11685_s3 + $0x868] sm:$0xff] %vm4697_vm1, %v3484_v42  ;;  %4710 = vst.msk [vmem:[%s11685_s3 + $0x60] sm:$0xff] %vm4697_vm1, %v2199_v45  ;;  %v6268_v51 = vpop.f32.mrb[14].mxu0  ;;  %v401_v45 = vld [vmem:[%s11683_s0 + $0xc18] sm:$0xff] }
  0xf8   :  { %4966 = vst.msk [vmem:[%s11685_s3 + $0x860] sm:$0xff] %vm4697_vm1, %v3479_v46  ;;  %v6652_v52 = vpop.f32.mrb[14].mxu1  ;;  %v2214_v53 = vadd.f32 %v6268_v51, %v7906_v25  ;;  %v2208_v55 = vpop.f32.mrb[15].mxu0  ;;  %6426 = vmatmul.mubr.msk.f32.gmra.mrb[120].mxu0 %vm535_vm0, %v135_v47  ;;  %v146_v46 = vld [vmem:[%s11683_s0 + $0x420] sm:$0xff] }
  0xf9   :  { %v3494_v54 = vadd.f32 %v6652_v52, %v7906_v25  ;;  %v3488_v56 = vpop.f32.mrb[15].mxu1  ;;  %6810 = vmatmul.mubr.msk.f32.gmra.mrb[120].mxu1 %vm535_vm0, %v391_v48  ;;  %v2209_v57 = vadd.f32 %v7906_v25, %v2208_v55  ;;  %6428 = vmatprep.mubr.msk.f32.mxu0 %vm535_vm0, %v136_v49  ;;  %v402_v47 = vld [vmem:[%s11683_s0 + $0xc20] sm:$0xff] }
  0xfa   :  { %v3489_v58 = vadd.f32 %v7906_v25, %v3488_v56  ;;  %6812 = vmatprep.mubr.msk.f32.mxu1 %vm535_vm0, %v392_v50  ;;  %4713 = vst.msk [vmem:[%s11685_s3 + $0x78] sm:$0xff] %vm4697_vm1, %v2214_v53  ;;  %v147_v56 = vld [vmem:[%s11683_s0 + $0x428] sm:$0xff] }
  0xfb   :  { %4969 = vst.msk [vmem:[%s11685_s3 + $0x878] sm:$0xff] %vm4697_vm1, %v3494_v54  ;;  %4712 = vst.msk [vmem:[%s11685_s3 + $0x70] sm:$0xff] %vm4697_vm1, %v2209_v57  ;;  %v6271_v63 = vpop.f32.mrb[16].mxu0  ;;  %v403_v57 = vld [vmem:[%s11683_s0 + $0xc28] sm:$0xff] }
  0xfc   :  { %4968 = vst.msk [vmem:[%s11685_s3 + $0x870] sm:$0xff] %vm4697_vm1, %v3489_v58  ;;  %v6655_v0 = vpop.f32.mrb[16].mxu1  ;;  %v2224_v1 = vadd.f32 %v6271_v63, %v7906_v25  ;;  %v2218_v3 = vpop.f32.mrb[17].mxu0  ;;  %6429 = vmatmul.mubr.msk.f32.gmra.mrb[122].mxu0 %vm535_vm0, %v137_v59  ;;  %v148_v58 = vld [vmem:[%s11683_s0 + $0x430] sm:$0xff] }
  0xfd   :  { %v3504_v2 = vadd.f32 %v6655_v0, %v7906_v25  ;;  %v3498_v4 = vpop.f32.mrb[17].mxu1  ;;  %6813 = vmatmul.mubr.msk.f32.gmra.mrb[122].mxu1 %vm535_vm0, %v393_v60  ;;  %v2219_v5 = vadd.f32 %v7906_v25, %v2218_v3  ;;  %6431 = vmatprep.mubr.msk.f32.mxu0 %vm535_vm0, %v138_v61  ;;  %v404_v59 = vld [vmem:[%s11683_s0 + $0xc30] sm:$0xff] }
  0xfe   :  { %v3499_v6 = vadd.f32 %v7906_v25, %v3498_v4  ;;  %6815 = vmatprep.mubr.msk.f32.mxu1 %vm535_vm0, %v394_v62  ;;  %4715 = vst.msk [vmem:[%s11685_s3 + $0x88] sm:$0xff] %vm4697_vm1, %v2224_v1  ;;  %v149_v4 = vld [vmem:[%s11683_s0 + $0x438] sm:$0xff] }
  0xff   :  { %4971 = vst.msk [vmem:[%s11685_s3 + $0x888] sm:$0xff] %vm4697_vm1, %v3504_v2  ;;  %4714 = vst.msk [vmem:[%s11685_s3 + $0x80] sm:$0xff] %vm4697_vm1, %v2219_v5  ;;  %v6274_v11 = vpop.f32.mrb[18].mxu0  ;;  %v405_v5 = vld [vmem:[%s11683_s0 + $0xc38] sm:$0xff] }
 0x100   :  { %4970 = vst.msk [vmem:[%s11685_s3 + $0x880] sm:$0xff] %vm4697_vm1, %v3499_v6  ;;  %v6658_v12 = vpop.f32.mrb[18].mxu1  ;;  %v2234_v13 = vadd.f32 %v6274_v11, %v7906_v25  ;;  %v2228_v15 = vpop.f32.mrb[19].mxu0  ;;  %6432 = vmatmul.mubr.msk.f32.gmra.mrb[124].mxu0 %vm535_vm0, %v139_v7  ;;  %v150_v6 = vld [vmem:[%s11683_s0 + $0x440] sm:$0xff] }
 0x101   :  { %v3514_v14 = vadd.f32 %v6658_v12, %v7906_v25  ;;  %v3508_v16 = vpop.f32.mrb[19].mxu1  ;;  %6816 = vmatmul.mubr.msk.f32.gmra.mrb[124].mxu1 %vm535_vm0, %v395_v8  ;;  %v2229_v17 = vadd.f32 %v7906_v25, %v2228_v15  ;;  %6434 = vmatprep.mubr.msk.f32.mxu0 %vm535_vm0, %v140_v9  ;;  %v406_v7 = vld [vmem:[%s11683_s0 + $0xc40] sm:$0xff] }
 0x102   :  { %v3509_v18 = vadd.f32 %v7906_v25, %v3508_v16  ;;  %6818 = vmatprep.mubr.msk.f32.mxu1 %vm535_vm0, %v396_v10  ;;  %4717 = vst.msk [vmem:[%s11685_s3 + $0x98] sm:$0xff] %vm4697_vm1, %v2234_v13  ;;  %v151_v16 = vld [vmem:[%s11683_s0 + $0x448] sm:$0xff] }
 0x103   :  { %4973 = vst.msk [vmem:[%s11685_s3 + $0x898] sm:$0xff] %vm4697_vm1, %v3514_v14  ;;  %4716 = vst.msk [vmem:[%s11685_s3 + $0x90] sm:$0xff] %vm4697_vm1, %v2229_v17  ;;  %v6277_v23 = vpop.f32.mrb[20].mxu0  ;;  %v407_v17 = vld [vmem:[%s11683_s0 + $0xc48] sm:$0xff] }
 0x104   :  { %4972 = vst.msk [vmem:[%s11685_s3 + $0x890] sm:$0xff] %vm4697_vm1, %v3509_v18  ;;  %v6661_v24 = vpop.f32.mrb[20].mxu1  ;;  %v2244_v26 = vadd.f32 %v6277_v23, %v7906_v25  ;;  %v2238_v28 = vpop.f32.mrb[21].mxu0  ;;  %6435 = vmatmul.mubr.msk.f32.gmra.mrb[126].mxu0 %vm535_vm0, %v141_v19  ;;  %v152_v18 = vld [vmem:[%s11683_s0 + $0x450] sm:$0xff] }
 0x105   :  { %v3524_v27 = vadd.f32 %v6661_v24, %v7906_v25  ;;  %v3518_v29 = vpop.f32.mrb[21].mxu1  ;;  %6819 = vmatmul.mubr.msk.f32.gmra.mrb[126].mxu1 %vm535_vm0, %v397_v20  ;;  %v2239_v30 = vadd.f32 %v7906_v25, %v2238_v28  ;;  %6437 = vmatprep.mubr.msk.f32.mxu0 %vm535_vm0, %v142_v21  ;;  %v408_v19 = vld [vmem:[%s11683_s0 + $0xc50] sm:$0xff] }
 0x106   :  { %v3519_v31 = vadd.f32 %v7906_v25, %v3518_v29  ;;  %6821 = vmatprep.mubr.msk.f32.mxu1 %vm535_vm0, %v398_v22  ;;  %4719 = vst.msk [vmem:[%s11685_s3 + $0xa8] sm:$0xff] %vm4697_vm1, %v2244_v26  ;;  %v153_v29 = vld [vmem:[%s11683_s0 + $0x458] sm:$0xff] }
 0x107   :  { %4975 = vst.msk [vmem:[%s11685_s3 + $0x8a8] sm:$0xff] %vm4697_vm1, %v3524_v27  ;;  %4718 = vst.msk [vmem:[%s11685_s3 + $0xa0] sm:$0xff] %vm4697_vm1, %v2239_v30  ;;  %v6280_v36 = vpop.f32.mrb[22].mxu0  ;;  %v409_v30 = vld [vmem:[%s11683_s0 + $0xc58] sm:$0xff] }
 0x108   :  { %4974 = vst.msk [vmem:[%s11685_s3 + $0x8a0] sm:$0xff] %vm4697_vm1, %v3519_v31  ;;  %v6664_v37 = vpop.f32.mrb[22].mxu1  ;;  %v2254_v38 = vadd.f32 %v6280_v36, %v7906_v25  ;;  %v2248_v40 = vpop.f32.mrb[23].mxu0  ;;  %6438 = vmatmul.mubr.msk.f32.gmra.mrb[128].mxu0 %vm535_vm0, %v143_v32  ;;  %v154_v31 = vld [vmem:[%s11683_s0 + $0x460] sm:$0xff] }
 0x109   :  { %v3534_v39 = vadd.f32 %v6664_v37, %v7906_v25  ;;  %v3528_v41 = vpop.f32.mrb[23].mxu1  ;;  %6822 = vmatmul.mubr.msk.f32.gmra.mrb[128].mxu1 %vm535_vm0, %v399_v33  ;;  %v2249_v42 = vadd.f32 %v7906_v25, %v2248_v40  ;;  %6440 = vmatprep.mubr.msk.f32.mxu0 %vm535_vm0, %v144_v34  ;;  %v410_v32 = vld [vmem:[%s11683_s0 + $0xc60] sm:$0xff] }
 0x10a   :  { %v3529_v43 = vadd.f32 %v7906_v25, %v3528_v41  ;;  %6824 = vmatprep.mubr.msk.f32.mxu1 %vm535_vm0, %v400_v35  ;;  %4721 = vst.msk [vmem:[%s11685_s3 + $0xb8] sm:$0xff] %vm4697_vm1, %v2254_v38  ;;  %v155_v41 = vld [vmem:[%s11683_s0 + $0x468] sm:$0xff] }
 0x10b   :  { %4977 = vst.msk [vmem:[%s11685_s3 + $0x8b8] sm:$0xff] %vm4697_vm1, %v3534_v39  ;;  %4720 = vst.msk [vmem:[%s11685_s3 + $0xb0] sm:$0xff] %vm4697_vm1, %v2249_v42  ;;  %v6283_v48 = vpop.f32.mrb[24].mxu0  ;;  %v411_v42 = vld [vmem:[%s11683_s0 + $0xc68] sm:$0xff] }
 0x10c   :  { %4976 = vst.msk [vmem:[%s11685_s3 + $0x8b0] sm:$0xff] %vm4697_vm1, %v3529_v43  ;;  %v6667_v49 = vpop.f32.mrb[24].mxu1  ;;  %v2264_v50 = vadd.f32 %v6283_v48, %v7906_v25  ;;  %v2258_v52 = vpop.f32.mrb[25].mxu0  ;;  %6441 = vmatmul.mubr.msk.f32.gmra.mrb[130].mxu0 %vm535_vm0, %v145_v44  ;;  %v156_v43 = vld [vmem:[%s11683_s0 + $0x470] sm:$0xff] }
 0x10d   :  { %v3544_v51 = vadd.f32 %v6667_v49, %v7906_v25  ;;  %v3538_v53 = vpop.f32.mrb[25].mxu1  ;;  %6825 = vmatmul.mubr.msk.f32.gmra.mrb[130].mxu1 %vm535_vm0, %v401_v45  ;;  %v2259_v54 = vadd.f32 %v7906_v25, %v2258_v52  ;;  %6443 = vmatprep.mubr.msk.f32.mxu0 %vm535_vm0, %v146_v46  ;;  %v412_v44 = vld [vmem:[%s11683_s0 + $0xc70] sm:$0xff] }
 0x10e   :  { %v3539_v55 = vadd.f32 %v7906_v25, %v3538_v53  ;;  %6827 = vmatprep.mubr.msk.f32.mxu1 %vm535_vm0, %v402_v47  ;;  %4723 = vst.msk [vmem:[%s11685_s3 + $0xc8] sm:$0xff] %vm4697_vm1, %v2264_v50  ;;  %v157_v53 = vld [vmem:[%s11683_s0 + $0x478] sm:$0xff] }
 0x10f   :  { %4979 = vst.msk [vmem:[%s11685_s3 + $0x8c8] sm:$0xff] %vm4697_vm1, %v3544_v51  ;;  %4722 = vst.msk [vmem:[%s11685_s3 + $0xc0] sm:$0xff] %vm4697_vm1, %v2259_v54  ;;  %v6286_v60 = vpop.f32.mrb[26].mxu0  ;;  %v413_v54 = vld [vmem:[%s11683_s0 + $0xc78] sm:$0xff] }
 0x110   :  { %4978 = vst.msk [vmem:[%s11685_s3 + $0x8c0] sm:$0xff] %vm4697_vm1, %v3539_v55  ;;  %v6670_v61 = vpop.f32.mrb[26].mxu1  ;;  %v2274_v62 = vadd.f32 %v6286_v60, %v7906_v25  ;;  %v2268_v0 = vpop.f32.mrb[27].mxu0  ;;  %6444 = vmatmul.mubr.msk.f32.gmra.mrb[132].mxu0 %vm535_vm0, %v147_v56  ;;  %v158_v55 = vld [vmem:[%s11683_s0 + $0x480] sm:$0xff] }
 0x111   :  { %v3554_v63 = vadd.f32 %v6670_v61, %v7906_v25  ;;  %v3548_v1 = vpop.f32.mrb[27].mxu1  ;;  %6828 = vmatmul.mubr.msk.f32.gmra.mrb[132].mxu1 %vm535_vm0, %v403_v57  ;;  %v2269_v2 = vadd.f32 %v7906_v25, %v2268_v0  ;;  %6446 = vmatprep.mubr.msk.f32.mxu0 %vm535_vm0, %v148_v58  ;;  %v414_v56 = vld [vmem:[%s11683_s0 + $0xc80] sm:$0xff] }
 0x112   :  { %v3549_v3 = vadd.f32 %v7906_v25, %v3548_v1  ;;  %6830 = vmatprep.mubr.msk.f32.mxu1 %vm535_vm0, %v404_v59  ;;  %4725 = vst.msk [vmem:[%s11685_s3 + $0xd8] sm:$0xff] %vm4697_vm1, %v2274_v62  ;;  %v159_v1 = vld [vmem:[%s11683_s0 + $0x488] sm:$0xff] }
 0x113   :  { %4981 = vst.msk [vmem:[%s11685_s3 + $0x8d8] sm:$0xff] %vm4697_vm1, %v3554_v63  ;;  %4724 = vst.msk [vmem:[%s11685_s3 + $0xd0] sm:$0xff] %vm4697_vm1, %v2269_v2  ;;  %v6289_v8 = vpop.f32.mrb[28].mxu0  ;;  %v415_v2 = vld [vmem:[%s11683_s0 + $0xc88] sm:$0xff] }
 0x114   :  { %4980 = vst.msk [vmem:[%s11685_s3 + $0x8d0] sm:$0xff] %vm4697_vm1, %v3549_v3  ;;  %v6673_v9 = vpop.f32.mrb[28].mxu1  ;;  %v2284_v10 = vadd.f32 %v6289_v8, %v7906_v25  ;;  %v2278_v12 = vpop.f32.mrb[29].mxu0  ;;  %6447 = vmatmul.mubr.msk.f32.gmra.mrb[134].mxu0 %vm535_vm0, %v149_v4  ;;  %v160_v3 = vld [vmem:[%s11683_s0 + $0x490] sm:$0xff] }
 0x115   :  { %v3564_v11 = vadd.f32 %v6673_v9, %v7906_v25  ;;  %v3558_v13 = vpop.f32.mrb[29].mxu1  ;;  %6831 = vmatmul.mubr.msk.f32.gmra.mrb[134].mxu1 %vm535_vm0, %v405_v5  ;;  %v2279_v14 = vadd.f32 %v7906_v25, %v2278_v12  ;;  %6449 = vmatprep.mubr.msk.f32.mxu0 %vm535_vm0, %v150_v6  ;;  %v416_v4 = vld [vmem:[%s11683_s0 + $0xc90] sm:$0xff] }
 0x116   :  { %v3559_v15 = vadd.f32 %v7906_v25, %v3558_v13  ;;  %6833 = vmatprep.mubr.msk.f32.mxu1 %vm535_vm0, %v406_v7  ;;  %4727 = vst.msk [vmem:[%s11685_s3 + $0xe8] sm:$0xff] %vm4697_vm1, %v2284_v10  ;;  %v161_v13 = vld [vmem:[%s11683_s0 + $0x498] sm:$0xff] }
 0x117   :  { %4983 = vst.msk [vmem:[%s11685_s3 + $0x8e8] sm:$0xff] %vm4697_vm1, %v3564_v11  ;;  %4726 = vst.msk [vmem:[%s11685_s3 + $0xe0] sm:$0xff] %vm4697_vm1, %v2279_v14  ;;  %v6292_v20 = vpop.f32.mrb[30].mxu0  ;;  %v417_v14 = vld [vmem:[%s11683_s0 + $0xc98] sm:$0xff] }
 0x118   :  { %4982 = vst.msk [vmem:[%s11685_s3 + $0x8e0] sm:$0xff] %vm4697_vm1, %v3559_v15  ;;  %v6676_v21 = vpop.f32.mrb[30].mxu1  ;;  %v2294_v22 = vadd.f32 %v6292_v20, %v7906_v25  ;;  %v2288_v24 = vpop.f32.mrb[31].mxu0  ;;  %6450 = vmatmul.mubr.msk.f32.gmra.mrb[136].mxu0 %vm535_vm0, %v151_v16  ;;  %v162_v15 = vld [vmem:[%s11683_s0 + $0x4a0] sm:$0xff] }
 0x119   :  { %v3574_v23 = vadd.f32 %v6676_v21, %v7906_v25  ;;  %v3568_v26 = vpop.f32.mrb[31].mxu1  ;;  %6834 = vmatmul.mubr.msk.f32.gmra.mrb[136].mxu1 %vm535_vm0, %v407_v17  ;;  %v2289_v27 = vadd.f32 %v7906_v25, %v2288_v24  ;;  %6452 = vmatprep.mubr.msk.f32.mxu0 %vm535_vm0, %v152_v18  ;;  %v418_v16 = vld [vmem:[%s11683_s0 + $0xca0] sm:$0xff] }
 0x11a   :  { %v3569_v28 = vadd.f32 %v7906_v25, %v3568_v26  ;;  %6836 = vmatprep.mubr.msk.f32.mxu1 %vm535_vm0, %v408_v19  ;;  %4729 = vst.msk [vmem:[%s11685_s3 + $0xf8] sm:$0xff] %vm4697_vm1, %v2294_v22  ;;  %v163_v26 = vld [vmem:[%s11683_s0 + $0x4a8] sm:$0xff] }
 0x11b   :  { %4985 = vst.msk [vmem:[%s11685_s3 + $0x8f8] sm:$0xff] %vm4697_vm1, %v3574_v23  ;;  %4728 = vst.msk [vmem:[%s11685_s3 + $0xf0] sm:$0xff] %vm4697_vm1, %v2289_v27  ;;  %v6295_v33 = vpop.f32.mrb[32].mxu0  ;;  %v419_v27 = vld [vmem:[%s11683_s0 + $0xca8] sm:$0xff] }
 0x11c   :  { %4984 = vst.msk [vmem:[%s11685_s3 + $0x8f0] sm:$0xff] %vm4697_vm1, %v3569_v28  ;;  %v6679_v34 = vpop.f32.mrb[32].mxu1  ;;  %v2304_v35 = vadd.f32 %v6295_v33, %v7906_v25  ;;  %v2298_v37 = vpop.f32.mrb[33].mxu0  ;;  %6453 = vmatmul.mubr.msk.f32.gmra.mrb[138].mxu0 %vm535_vm0, %v153_v29  ;;  %v164_v28 = vld [vmem:[%s11683_s0 + $0x4b0] sm:$0xff] }
 0x11d   :  { %v3584_v36 = vadd.f32 %v6679_v34, %v7906_v25  ;;  %v3578_v38 = vpop.f32.mrb[33].mxu1  ;;  %6837 = vmatmul.mubr.msk.f32.gmra.mrb[138].mxu1 %vm535_vm0, %v409_v30  ;;  %v2299_v39 = vadd.f32 %v7906_v25, %v2298_v37  ;;  %6455 = vmatprep.mubr.msk.f32.mxu0 %vm535_vm0, %v154_v31  ;;  %v420_v29 = vld [vmem:[%s11683_s0 + $0xcb0] sm:$0xff] }
 0x11e   :  { %v3579_v40 = vadd.f32 %v7906_v25, %v3578_v38  ;;  %6839 = vmatprep.mubr.msk.f32.mxu1 %vm535_vm0, %v410_v32  ;;  %4731 = vst.msk [vmem:[%s11685_s3 + $0x108] sm:$0xff] %vm4697_vm1, %v2304_v35  ;;  %v165_v38 = vld [vmem:[%s11683_s0 + $0x4b8] sm:$0xff] }
 0x11f   :  { %4987 = vst.msk [vmem:[%s11685_s3 + $0x908] sm:$0xff] %vm4697_vm1, %v3584_v36  ;;  %4730 = vst.msk [vmem:[%s11685_s3 + $0x100] sm:$0xff] %vm4697_vm1, %v2299_v39  ;;  %v6298_v45 = vpop.f32.mrb[34].mxu0  ;;  %v421_v39 = vld [vmem:[%s11683_s0 + $0xcb8] sm:$0xff] }
 0x120   :  { %4986 = vst.msk [vmem:[%s11685_s3 + $0x900] sm:$0xff] %vm4697_vm1, %v3579_v40  ;;  %v6682_v46 = vpop.f32.mrb[34].mxu1  ;;  %v2314_v47 = vadd.f32 %v6298_v45, %v7906_v25  ;;  %v2308_v49 = vpop.f32.mrb[35].mxu0  ;;  %6456 = vmatmul.mubr.msk.f32.gmra.mrb[140].mxu0 %vm535_vm0, %v155_v41  ;;  %v166_v40 = vld [vmem:[%s11683_s0 + $0x4c0] sm:$0xff] }
 0x121   :  { %v3594_v48 = vadd.f32 %v6682_v46, %v7906_v25  ;;  %v3588_v50 = vpop.f32.mrb[35].mxu1  ;;  %6840 = vmatmul.mubr.msk.f32.gmra.mrb[140].mxu1 %vm535_vm0, %v411_v42  ;;  %v2309_v51 = vadd.f32 %v7906_v25, %v2308_v49  ;;  %6458 = vmatprep.mubr.msk.f32.mxu0 %vm535_vm0, %v156_v43  ;;  %v422_v41 = vld [vmem:[%s11683_s0 + $0xcc0] sm:$0xff] }
 0x122   :  { %v3589_v52 = vadd.f32 %v7906_v25, %v3588_v50  ;;  %6842 = vmatprep.mubr.msk.f32.mxu1 %vm535_vm0, %v412_v44  ;;  %4733 = vst.msk [vmem:[%s11685_s3 + $0x118] sm:$0xff] %vm4697_vm1, %v2314_v47  ;;  %v167_v50 = vld [vmem:[%s11683_s0 + $0x4c8] sm:$0xff] }
 0x123   :  { %4989 = vst.msk [vmem:[%s11685_s3 + $0x918] sm:$0xff] %vm4697_vm1, %v3594_v48  ;;  %4732 = vst.msk [vmem:[%s11685_s3 + $0x110] sm:$0xff] %vm4697_vm1, %v2309_v51  ;;  %v6301_v57 = vpop.f32.mrb[36].mxu0  ;;  %v423_v51 = vld [vmem:[%s11683_s0 + $0xcc8] sm:$0xff] }
 0x124   :  { %4988 = vst.msk [vmem:[%s11685_s3 + $0x910] sm:$0xff] %vm4697_vm1, %v3589_v52  ;;  %v6685_v58 = vpop.f32.mrb[36].mxu1  ;;  %v2324_v59 = vadd.f32 %v6301_v57, %v7906_v25  ;;  %v2318_v61 = vpop.f32.mrb[37].mxu0  ;;  %6459 = vmatmul.mubr.msk.f32.gmra.mrb[142].mxu0 %vm535_vm0, %v157_v53  ;;  %v168_v52 = vld [vmem:[%s11683_s0 + $0x4d0] sm:$0xff] }
 0x125   :  { %v3604_v60 = vadd.f32 %v6685_v58, %v7906_v25  ;;  %v3598_v62 = vpop.f32.mrb[37].mxu1  ;;  %6843 = vmatmul.mubr.msk.f32.gmra.mrb[142].mxu1 %vm535_vm0, %v413_v54  ;;  %v2319_v63 = vadd.f32 %v7906_v25, %v2318_v61  ;;  %6461 = vmatprep.mubr.msk.f32.mxu0 %vm535_vm0, %v158_v55  ;;  %v424_v53 = vld [vmem:[%s11683_s0 + $0xcd0] sm:$0xff] }
 0x126   :  { %v3599_v0 = vadd.f32 %v7906_v25, %v3598_v62  ;;  %6845 = vmatprep.mubr.msk.f32.mxu1 %vm535_vm0, %v414_v56  ;;  %4735 = vst.msk [vmem:[%s11685_s3 + $0x128] sm:$0xff] %vm4697_vm1, %v2324_v59  ;;  %v169_v62 = vld [vmem:[%s11683_s0 + $0x4d8] sm:$0xff] }
 0x127   :  { %4991 = vst.msk [vmem:[%s11685_s3 + $0x928] sm:$0xff] %vm4697_vm1, %v3604_v60  ;;  %4734 = vst.msk [vmem:[%s11685_s3 + $0x120] sm:$0xff] %vm4697_vm1, %v2319_v63  ;;  %v6304_v5 = vpop.f32.mrb[38].mxu0  ;;  %v425_v63 = vld [vmem:[%s11683_s0 + $0xcd8] sm:$0xff] }
 0x128   :  { %4990 = vst.msk [vmem:[%s11685_s3 + $0x920] sm:$0xff] %vm4697_vm1, %v3599_v0  ;;  %v6688_v6 = vpop.f32.mrb[38].mxu1  ;;  %v2334_v7 = vadd.f32 %v6304_v5, %v7906_v25  ;;  %v2328_v9 = vpop.f32.mrb[39].mxu0  ;;  %6462 = vmatmul.mubr.msk.f32.gmra.mrb[144].mxu0 %vm535_vm0, %v159_v1  ;;  %v170_v0 = vld [vmem:[%s11683_s0 + $0x4e0] sm:$0xff] }
 0x129   :  { %v3614_v8 = vadd.f32 %v6688_v6, %v7906_v25  ;;  %v3608_v10 = vpop.f32.mrb[39].mxu1  ;;  %6846 = vmatmul.mubr.msk.f32.gmra.mrb[144].mxu1 %vm535_vm0, %v415_v2  ;;  %v2329_v11 = vadd.f32 %v7906_v25, %v2328_v9  ;;  %6464 = vmatprep.mubr.msk.f32.mxu0 %vm535_vm0, %v160_v3  ;;  %v426_v1 = vld [vmem:[%s11683_s0 + $0xce0] sm:$0xff] }
 0x12a   :  { %v3609_v12 = vadd.f32 %v7906_v25, %v3608_v10  ;;  %6848 = vmatprep.mubr.msk.f32.mxu1 %vm535_vm0, %v416_v4  ;;  %4737 = vst.msk [vmem:[%s11685_s3 + $0x138] sm:$0xff] %vm4697_vm1, %v2334_v7  ;;  %v171_v10 = vld [vmem:[%s11683_s0 + $0x4e8] sm:$0xff] }
 0x12b   :  { %4993 = vst.msk [vmem:[%s11685_s3 + $0x938] sm:$0xff] %vm4697_vm1, %v3614_v8  ;;  %4736 = vst.msk [vmem:[%s11685_s3 + $0x130] sm:$0xff] %vm4697_vm1, %v2329_v11  ;;  %v6307_v17 = vpop.f32.mrb[40].mxu0  ;;  %v427_v11 = vld [vmem:[%s11683_s0 + $0xce8] sm:$0xff] }
 0x12c   :  { %4992 = vst.msk [vmem:[%s11685_s3 + $0x930] sm:$0xff] %vm4697_vm1, %v3609_v12  ;;  %v6691_v18 = vpop.f32.mrb[40].mxu1  ;;  %v2344_v19 = vadd.f32 %v6307_v17, %v7906_v25  ;;  %v2338_v21 = vpop.f32.mrb[41].mxu0  ;;  %6465 = vmatmul.mubr.msk.f32.gmra.mrb[146].mxu0 %vm535_vm0, %v161_v13  ;;  %v172_v12 = vld [vmem:[%s11683_s0 + $0x4f0] sm:$0xff]  ;;  %v8826_v17 = vld [vmem:[%s11684_s2] ss:$0 sm:$0xff] }
 0x12d   :  { %v3624_v20 = vadd.f32 %v6691_v18, %v7906_v25  ;;  %v3618_v22 = vpop.f32.mrb[41].mxu1  ;;  %6849 = vmatmul.mubr.msk.f32.gmra.mrb[146].mxu1 %vm535_vm0, %v417_v14  ;;  %v2339_v23 = vadd.f32 %v7906_v25, %v2338_v21  ;;  %6467 = vmatprep.mubr.msk.f32.mxu0 %vm535_vm0, %v162_v15  ;;  %v428_v13 = vld [vmem:[%s11683_s0 + $0xcf0] sm:$0xff] }
 0x12e   :  { %v3619_v24 = vadd.f32 %v7906_v25, %v3618_v22  ;;  %6851 = vmatprep.mubr.msk.f32.mxu1 %vm535_vm0, %v418_v16  ;;  %4739 = vst.msk [vmem:[%s11685_s3 + $0x148] sm:$0xff] %vm4697_vm1, %v2344_v19 }
 0x12f   :  { %4995 = vst.msk [vmem:[%s11685_s3 + $0x948] sm:$0xff] %vm4697_vm1, %v3624_v20  ;;  %4738 = vst.msk [vmem:[%s11685_s3 + $0x140] sm:$0xff] %vm4697_vm1, %v2339_v23  ;;  %v6310_v30 = vpop.f32.mrb[42].mxu0  ;;  %v429_v23 = vld [vmem:[%s11683_s0 + $0xcf8] sm:$0xff] }
 0x130   :  { %4994 = vst.msk [vmem:[%s11685_s3 + $0x940] sm:$0xff] %vm4697_vm1, %v3619_v24  ;;  %v6694_v31 = vpop.f32.mrb[42].mxu1  ;;  %v2354_v32 = vadd.f32 %v6310_v30, %v7906_v25  ;;  %v2348_v34 = vpop.f32.mrb[43].mxu0  ;;  %6468 = vmatmul.mubr.msk.f32.gmra.mrb[148].mxu0 %vm535_vm0, %v163_v26  ;;  %v174_v24 = vld [vmem:[%s11683_s0 + $0x500] sm:$0xff] }
 0x131   :  { %v3634_v33 = vadd.f32 %v6694_v31, %v7906_v25  ;;  %v3628_v35 = vpop.f32.mrb[43].mxu1  ;;  %6852 = vmatmul.mubr.msk.f32.gmra.mrb[148].mxu1 %vm535_vm0, %v419_v27  ;;  %v2349_v36 = vadd.f32 %v7906_v25, %v2348_v34  ;;  %6470 = vmatprep.mubr.msk.f32.mxu0 %vm535_vm0, %v164_v28  ;;  %v430_v26 = vld [vmem:[%s11683_s0 + $0xd00] sm:$0xff] }
 0x132   :  { %v3629_v37 = vadd.f32 %v7906_v25, %v3628_v35  ;;  %6854 = vmatprep.mubr.msk.f32.mxu1 %vm535_vm0, %v420_v29  ;;  %4741 = vst.msk [vmem:[%s11685_s3 + $0x158] sm:$0xff] %vm4697_vm1, %v2354_v32  ;;  %v175_v35 = vld [vmem:[%s11683_s0 + $0x508] sm:$0xff] }
 0x133   :  { %4997 = vst.msk [vmem:[%s11685_s3 + $0x958] sm:$0xff] %vm4697_vm1, %v3634_v33  ;;  %4740 = vst.msk [vmem:[%s11685_s3 + $0x150] sm:$0xff] %vm4697_vm1, %v2349_v36  ;;  %v6313_v42 = vpop.f32.mrb[44].mxu0  ;;  %v431_v36 = vld [vmem:[%s11683_s0 + $0xd08] sm:$0xff] }
 0x134   :  { %4996 = vst.msk [vmem:[%s11685_s3 + $0x950] sm:$0xff] %vm4697_vm1, %v3629_v37  ;;  %v6697_v43 = vpop.f32.mrb[44].mxu1  ;;  %v2364_v44 = vadd.f32 %v6313_v42, %v7906_v25  ;;  %v2358_v46 = vpop.f32.mrb[45].mxu0  ;;  %6471 = vmatmul.mubr.msk.f32.gmra.mrb[150].mxu0 %vm535_vm0, %v165_v38  ;;  %v176_v37 = vld [vmem:[%s11683_s0 + $0x510] sm:$0xff] }
 0x135   :  { %v3644_v45 = vadd.f32 %v6697_v43, %v7906_v25  ;;  %v3638_v47 = vpop.f32.mrb[45].mxu1  ;;  %6855 = vmatmul.mubr.msk.f32.gmra.mrb[150].mxu1 %vm535_vm0, %v421_v39  ;;  %v2359_v48 = vadd.f32 %v7906_v25, %v2358_v46  ;;  %6473 = vmatprep.mubr.msk.f32.mxu0 %vm535_vm0, %v166_v40  ;;  %v432_v38 = vld [vmem:[%s11683_s0 + $0xd10] sm:$0xff] }
 0x136   :  { %v3639_v49 = vadd.f32 %v7906_v25, %v3638_v47  ;;  %6857 = vmatprep.mubr.msk.f32.mxu1 %vm535_vm0, %v422_v41  ;;  %4743 = vst.msk [vmem:[%s11685_s3 + $0x168] sm:$0xff] %vm4697_vm1, %v2364_v44  ;;  %v177_v47 = vld [vmem:[%s11683_s0 + $0x518] sm:$0xff] }
 0x137   :  { %4999 = vst.msk [vmem:[%s11685_s3 + $0x968] sm:$0xff] %vm4697_vm1, %v3644_v45  ;;  %4742 = vst.msk [vmem:[%s11685_s3 + $0x160] sm:$0xff] %vm4697_vm1, %v2359_v48  ;;  %v6316_v54 = vpop.f32.mrb[46].mxu0  ;;  %v433_v48 = vld [vmem:[%s11683_s0 + $0xd18] sm:$0xff] }
 0x138   :  { %4998 = vst.msk [vmem:[%s11685_s3 + $0x960] sm:$0xff] %vm4697_vm1, %v3639_v49  ;;  %v6700_v55 = vpop.f32.mrb[46].mxu1  ;;  %v2374_v56 = vadd.f32 %v6316_v54, %v7906_v25  ;;  %v2368_v58 = vpop.f32.mrb[47].mxu0  ;;  %6474 = vmatmul.mubr.msk.f32.gmra.mrb[152].mxu0 %vm535_vm0, %v167_v50  ;;  %v178_v49 = vld [vmem:[%s11683_s0 + $0x520] sm:$0xff] }
 0x139   :  { %v3654_v57 = vadd.f32 %v6700_v55, %v7906_v25  ;;  %v3648_v59 = vpop.f32.mrb[47].mxu1  ;;  %6858 = vmatmul.mubr.msk.f32.gmra.mrb[152].mxu1 %vm535_vm0, %v423_v51  ;;  %v2369_v60 = vadd.f32 %v7906_v25, %v2368_v58  ;;  %6476 = vmatprep.mubr.msk.f32.mxu0 %vm535_vm0, %v168_v52  ;;  %v434_v50 = vld [vmem:[%s11683_s0 + $0xd20] sm:$0xff] }
 0x13a   :  { %v3649_v61 = vadd.f32 %v7906_v25, %v3648_v59  ;;  %6860 = vmatprep.mubr.msk.f32.mxu1 %vm535_vm0, %v424_v53  ;;  %4745 = vst.msk [vmem:[%s11685_s3 + $0x178] sm:$0xff] %vm4697_vm1, %v2374_v56  ;;  %v179_v59 = vld [vmem:[%s11683_s0 + $0x528] sm:$0xff] }
 0x13b   :  { %5001 = vst.msk [vmem:[%s11685_s3 + $0x978] sm:$0xff] %vm4697_vm1, %v3654_v57  ;;  %4744 = vst.msk [vmem:[%s11685_s3 + $0x170] sm:$0xff] %vm4697_vm1, %v2369_v60  ;;  %v6319_v2 = vpop.f32.mrb[48].mxu0  ;;  %v435_v60 = vld [vmem:[%s11683_s0 + $0xd28] sm:$0xff] }
 0x13c   :  { %5000 = vst.msk [vmem:[%s11685_s3 + $0x970] sm:$0xff] %vm4697_vm1, %v3649_v61  ;;  %v6703_v3 = vpop.f32.mrb[48].mxu1  ;;  %v2384_v4 = vadd.f32 %v6319_v2, %v7906_v25  ;;  %v2378_v6 = vpop.f32.mrb[49].mxu0  ;;  %6477 = vmatmul.mubr.msk.f32.gmra.mrb[154].mxu0 %vm535_vm0, %v169_v62  ;;  %v180_v61 = vld [vmem:[%s11683_s0 + $0x530] sm:$0xff] }
 0x13d   :  { %v3664_v5 = vadd.f32 %v6703_v3, %v7906_v25  ;;  %v3658_v7 = vpop.f32.mrb[49].mxu1  ;;  %6861 = vmatmul.mubr.msk.f32.gmra.mrb[154].mxu1 %vm535_vm0, %v425_v63  ;;  %v2379_v8 = vadd.f32 %v7906_v25, %v2378_v6  ;;  %6479 = vmatprep.mubr.msk.f32.mxu0 %vm535_vm0, %v170_v0  ;;  %v436_v62 = vld [vmem:[%s11683_s0 + $0xd30] sm:$0xff] }
 0x13e   :  { %v3659_v9 = vadd.f32 %v7906_v25, %v3658_v7  ;;  %6863 = vmatprep.mubr.msk.f32.mxu1 %vm535_vm0, %v426_v1  ;;  %4747 = vst.msk [vmem:[%s11685_s3 + $0x188] sm:$0xff] %vm4697_vm1, %v2384_v4  ;;  %v181_v7 = vld [vmem:[%s11683_s0 + $0x538] sm:$0xff] }
 0x13f   :  { %5003 = vst.msk [vmem:[%s11685_s3 + $0x988] sm:$0xff] %vm4697_vm1, %v3664_v5  ;;  %4746 = vst.msk [vmem:[%s11685_s3 + $0x180] sm:$0xff] %vm4697_vm1, %v2379_v8  ;;  %v6322_v14 = vpop.f32.mrb[50].mxu0  ;;  %v437_v8 = vld [vmem:[%s11683_s0 + $0xd38] sm:$0xff] }
 0x140   :  { %5002 = vst.msk [vmem:[%s11685_s3 + $0x980] sm:$0xff] %vm4697_vm1, %v3659_v9  ;;  %v6706_v15 = vpop.f32.mrb[50].mxu1  ;;  %v2394_v16 = vadd.f32 %v6322_v14, %v7906_v25  ;;  %v2388_v19 = vpop.f32.mrb[51].mxu0  ;;  %6480 = vmatmul.mubr.msk.f32.gmra.mrb[156].mxu0 %vm535_vm0, %v171_v10  ;;  %v173_v25 = vld [vmem:[%s11683_s0 + $0x4f8] sm:$0xff]  ;;  %v182_v9 = vld [vmem:[%s11683_s0 + $0x540] sm:$0xff] }
 0x141   :  { %v3674_v18 = vadd.f32 %v8826_v17, %v6706_v15  ;;  %v3668_v20 = vpop.f32.mrb[51].mxu1  ;;  %6864 = vmatmul.mubr.msk.f32.gmra.mrb[156].mxu1 %vm535_vm0, %v427_v11  ;;  %v2389_v21 = vadd.f32 %v8826_v17, %v2388_v19  ;;  %6482 = vmatprep.mubr.msk.f32.mxu0 %vm535_vm0, %v172_v12  ;;  %v438_v10 = vld [vmem:[%s11683_s0 + $0xd40] sm:$0xff] }
 0x142   :  { %v3669_v22 = vadd.f32 %v8826_v17, %v3668_v20  ;;  %6866 = vmatprep.mubr.msk.f32.mxu1 %vm535_vm0, %v428_v13  ;;  %4749 = vst.msk [vmem:[%s11685_s3 + $0x198] sm:$0xff] %vm4697_vm1, %v2394_v16  ;;  %v183_v20 = vld [vmem:[%s11683_s0 + $0x548] sm:$0xff] }
 0x143   :  { %5005 = vst.msk [vmem:[%s11685_s3 + $0x998] sm:$0xff] %vm4697_vm1, %v3674_v18  ;;  %4748 = vst.msk [vmem:[%s11685_s3 + $0x190] sm:$0xff] %vm4697_vm1, %v2389_v21  ;;  %v6325_v27 = vpop.f32.mrb[52].mxu0  ;;  %v439_v21 = vld [vmem:[%s11683_s0 + $0xd48] sm:$0xff] }
 0x144   :  { %5004 = vst.msk [vmem:[%s11685_s3 + $0x990] sm:$0xff] %vm4697_vm1, %v3669_v22  ;;  %v6709_v28 = vpop.f32.mrb[52].mxu1  ;;  %v2404_v29 = vadd.f32 %v8826_v17, %v6325_v27  ;;  %v2398_v31 = vpop.f32.mrb[53].mxu0  ;;  %6483 = vmatmul.mubr.msk.f32.gmra.mrb[158].mxu0 %vm535_vm0, %v173_v25  ;;  %v184_v22 = vld [vmem:[%s11683_s0 + $0x550] sm:$0xff] }
 0x145   :  { %v3684_v30 = vadd.f32 %v8826_v17, %v6709_v28  ;;  %v3678_v32 = vpop.f32.mrb[53].mxu1  ;;  %6867 = vmatmul.mubr.msk.f32.gmra.mrb[158].mxu1 %vm535_vm0, %v429_v23  ;;  %v2399_v33 = vadd.f32 %v8826_v17, %v2398_v31  ;;  %6485 = vmatprep.mubr.msk.f32.mxu0 %vm535_vm0, %v174_v24  ;;  %v440_v25 = vld [vmem:[%s11683_s0 + $0xd50] sm:$0xff] }
 0x146   :  { %v3679_v34 = vadd.f32 %v8826_v17, %v3678_v32  ;;  %6869 = vmatprep.mubr.msk.f32.mxu1 %vm535_vm0, %v430_v26  ;;  %4751 = vst.msk [vmem:[%s11685_s3 + $0x1a8] sm:$0xff] %vm4697_vm1, %v2404_v29  ;;  %v185_v32 = vld [vmem:[%s11683_s0 + $0x558] sm:$0xff] }
 0x147   :  { %5007 = vst.msk [vmem:[%s11685_s3 + $0x9a8] sm:$0xff] %vm4697_vm1, %v3684_v30  ;;  %4750 = vst.msk [vmem:[%s11685_s3 + $0x1a0] sm:$0xff] %vm4697_vm1, %v2399_v33  ;;  %v6328_v39 = vpop.f32.mrb[54].mxu0  ;;  %v441_v33 = vld [vmem:[%s11683_s0 + $0xd58] sm:$0xff] }
 0x148   :  { %5006 = vst.msk [vmem:[%s11685_s3 + $0x9a0] sm:$0xff] %vm4697_vm1, %v3679_v34  ;;  %v6712_v40 = vpop.f32.mrb[54].mxu1  ;;  %v2414_v41 = vadd.f32 %v8826_v17, %v6328_v39  ;;  %v2408_v43 = vpop.f32.mrb[55].mxu0  ;;  %6486 = vmatmul.mubr.msk.f32.gmra.mrb[160].mxu0 %vm535_vm0, %v175_v35  ;;  %v186_v34 = vld [vmem:[%s11683_s0 + $0x560] sm:$0xff] }
 0x149   :  { %v3694_v42 = vadd.f32 %v8826_v17, %v6712_v40  ;;  %v3688_v44 = vpop.f32.mrb[55].mxu1  ;;  %6870 = vmatmul.mubr.msk.f32.gmra.mrb[160].mxu1 %vm535_vm0, %v431_v36  ;;  %v2409_v45 = vadd.f32 %v8826_v17, %v2408_v43  ;;  %6488 = vmatprep.mubr.msk.f32.mxu0 %vm535_vm0, %v176_v37  ;;  %v442_v35 = vld [vmem:[%s11683_s0 + $0xd60] sm:$0xff] }
 0x14a   :  { %v3689_v46 = vadd.f32 %v8826_v17, %v3688_v44  ;;  %6872 = vmatprep.mubr.msk.f32.mxu1 %vm535_vm0, %v432_v38  ;;  %4753 = vst.msk [vmem:[%s11685_s3 + $0x1b8] sm:$0xff] %vm4697_vm1, %v2414_v41  ;;  %v187_v44 = vld [vmem:[%s11683_s0 + $0x568] sm:$0xff] }
 0x14b   :  { %5009 = vst.msk [vmem:[%s11685_s3 + $0x9b8] sm:$0xff] %vm4697_vm1, %v3694_v42  ;;  %4752 = vst.msk [vmem:[%s11685_s3 + $0x1b0] sm:$0xff] %vm4697_vm1, %v2409_v45  ;;  %v6331_v51 = vpop.f32.mrb[56].mxu0  ;;  %v443_v45 = vld [vmem:[%s11683_s0 + $0xd68] sm:$0xff] }
 0x14c   :  { %5008 = vst.msk [vmem:[%s11685_s3 + $0x9b0] sm:$0xff] %vm4697_vm1, %v3689_v46  ;;  %v6715_v52 = vpop.f32.mrb[56].mxu1  ;;  %v2424_v53 = vadd.f32 %v8826_v17, %v6331_v51  ;;  %v2418_v55 = vpop.f32.mrb[57].mxu0  ;;  %6489 = vmatmul.mubr.msk.f32.gmra.mrb[162].mxu0 %vm535_vm0, %v177_v47  ;;  %v188_v46 = vld [vmem:[%s11683_s0 + $0x570] sm:$0xff] }
 0x14d   :  { %v3704_v54 = vadd.f32 %v8826_v17, %v6715_v52  ;;  %v3698_v56 = vpop.f32.mrb[57].mxu1  ;;  %6873 = vmatmul.mubr.msk.f32.gmra.mrb[162].mxu1 %vm535_vm0, %v433_v48  ;;  %v2419_v57 = vadd.f32 %v8826_v17, %v2418_v55  ;;  %6491 = vmatprep.mubr.msk.f32.mxu0 %vm535_vm0, %v178_v49  ;;  %v444_v47 = vld [vmem:[%s11683_s0 + $0xd70] sm:$0xff] }
 0x14e   :  { %v3699_v58 = vadd.f32 %v8826_v17, %v3698_v56  ;;  %6875 = vmatprep.mubr.msk.f32.mxu1 %vm535_vm0, %v434_v50  ;;  %4755 = vst.msk [vmem:[%s11685_s3 + $0x1c8] sm:$0xff] %vm4697_vm1, %v2424_v53  ;;  %v189_v56 = vld [vmem:[%s11683_s0 + $0x578] sm:$0xff] }
 0x14f   :  { %5011 = vst.msk [vmem:[%s11685_s3 + $0x9c8] sm:$0xff] %vm4697_vm1, %v3704_v54  ;;  %4754 = vst.msk [vmem:[%s11685_s3 + $0x1c0] sm:$0xff] %vm4697_vm1, %v2419_v57  ;;  %v6334_v63 = vpop.f32.mrb[58].mxu0  ;;  %v445_v57 = vld [vmem:[%s11683_s0 + $0xd78] sm:$0xff] }
 0x150   :  { %5010 = vst.msk [vmem:[%s11685_s3 + $0x9c0] sm:$0xff] %vm4697_vm1, %v3699_v58  ;;  %v6718_v0 = vpop.f32.mrb[58].mxu1  ;;  %v2434_v1 = vadd.f32 %v8826_v17, %v6334_v63  ;;  %v2428_v3 = vpop.f32.mrb[59].mxu0  ;;  %6492 = vmatmul.mubr.msk.f32.gmra.mrb[164].mxu0 %vm535_vm0, %v179_v59  ;;  %v190_v58 = vld [vmem:[%s11683_s0 + $0x580] sm:$0xff] }
 0x151   :  { %v3714_v2 = vadd.f32 %v8826_v17, %v6718_v0  ;;  %v3708_v4 = vpop.f32.mrb[59].mxu1  ;;  %6876 = vmatmul.mubr.msk.f32.gmra.mrb[164].mxu1 %vm535_vm0, %v435_v60  ;;  %v2429_v5 = vadd.f32 %v8826_v17, %v2428_v3  ;;  %6494 = vmatprep.mubr.msk.f32.mxu0 %vm535_vm0, %v180_v61  ;;  %v446_v59 = vld [vmem:[%s11683_s0 + $0xd80] sm:$0xff] }
 0x152   :  { %v3709_v6 = vadd.f32 %v8826_v17, %v3708_v4  ;;  %6878 = vmatprep.mubr.msk.f32.mxu1 %vm535_vm0, %v436_v62  ;;  %4757 = vst.msk [vmem:[%s11685_s3 + $0x1d8] sm:$0xff] %vm4697_vm1, %v2434_v1  ;;  %v191_v4 = vld [vmem:[%s11683_s0 + $0x588] sm:$0xff] }
 0x153   :  { %5013 = vst.msk [vmem:[%s11685_s3 + $0x9d8] sm:$0xff] %vm4697_vm1, %v3714_v2  ;;  %4756 = vst.msk [vmem:[%s11685_s3 + $0x1d0] sm:$0xff] %vm4697_vm1, %v2429_v5  ;;  %v6337_v11 = vpop.f32.mrb[60].mxu0  ;;  %v447_v5 = vld [vmem:[%s11683_s0 + $0xd88] sm:$0xff] }
 0x154   :  { %5012 = vst.msk [vmem:[%s11685_s3 + $0x9d0] sm:$0xff] %vm4697_vm1, %v3709_v6  ;;  %v6721_v12 = vpop.f32.mrb[60].mxu1  ;;  %v2444_v13 = vadd.f32 %v8826_v17, %v6337_v11  ;;  %v2438_v15 = vpop.f32.mrb[61].mxu0  ;;  %6495 = vmatmul.mubr.msk.f32.gmra.mrb[166].mxu0 %vm535_vm0, %v181_v7  ;;  %v192_v6 = vld [vmem:[%s11683_s0 + $0x590] sm:$0xff] }
 0x155   :  { %v3724_v14 = vadd.f32 %v8826_v17, %v6721_v12  ;;  %v3718_v16 = vpop.f32.mrb[61].mxu1  ;;  %6879 = vmatmul.mubr.msk.f32.gmra.mrb[166].mxu1 %vm535_vm0, %v437_v8  ;;  %v2439_v18 = vadd.f32 %v8826_v17, %v2438_v15  ;;  %6497 = vmatprep.mubr.msk.f32.mxu0 %vm535_vm0, %v182_v9  ;;  %v448_v7 = vld [vmem:[%s11683_s0 + $0xd90] sm:$0xff] }
 0x156   :  { %v3719_v19 = vadd.f32 %v8826_v17, %v3718_v16  ;;  %6881 = vmatprep.mubr.msk.f32.mxu1 %vm535_vm0, %v438_v10  ;;  %4759 = vst.msk [vmem:[%s11685_s3 + $0x1e8] sm:$0xff] %vm4697_vm1, %v2444_v13  ;;  %v193_v16 = vld [vmem:[%s11683_s0 + $0x598] sm:$0xff] }
 0x157   :  { %5015 = vst.msk [vmem:[%s11685_s3 + $0x9e8] sm:$0xff] %vm4697_vm1, %v3724_v14  ;;  %4758 = vst.msk [vmem:[%s11685_s3 + $0x1e0] sm:$0xff] %vm4697_vm1, %v2439_v18  ;;  %v6340_v23 = vpop.f32.mrb[62].mxu0  ;;  %v449_v18 = vld [vmem:[%s11683_s0 + $0xd98] sm:$0xff] }
 0x158   :  { %5014 = vst.msk [vmem:[%s11685_s3 + $0x9e0] sm:$0xff] %vm4697_vm1, %v3719_v19  ;;  %v6724_v24 = vpop.f32.mrb[62].mxu1  ;;  %v2454_v26 = vadd.f32 %v8826_v17, %v6340_v23  ;;  %v2448_v28 = vpop.f32.mrb[63].mxu0  ;;  %6498 = vmatmul.mubr.msk.f32.gmra.mrb[168].mxu0 %vm535_vm0, %v183_v20  ;;  %v194_v19 = vld [vmem:[%s11683_s0 + $0x5a0] sm:$0xff] }
 0x159   :  { %v3734_v27 = vadd.f32 %v8826_v17, %v6724_v24  ;;  %v3728_v29 = vpop.f32.mrb[63].mxu1  ;;  %6882 = vmatmul.mubr.msk.f32.gmra.mrb[168].mxu1 %vm535_vm0, %v439_v21  ;;  %v2449_v30 = vadd.f32 %v8826_v17, %v2448_v28  ;;  %6500 = vmatprep.mubr.msk.f32.mxu0 %vm535_vm0, %v184_v22  ;;  %v450_v20 = vld [vmem:[%s11683_s0 + $0xda0] sm:$0xff] }
 0x15a   :  { %v3729_v31 = vadd.f32 %v8826_v17, %v3728_v29  ;;  %6884 = vmatprep.mubr.msk.f32.mxu1 %vm535_vm0, %v440_v25  ;;  %4761 = vst.msk [vmem:[%s11685_s3 + $0x1f8] sm:$0xff] %vm4697_vm1, %v2454_v26  ;;  %v195_v29 = vld [vmem:[%s11683_s0 + $0x5a8] sm:$0xff] }
 0x15b   :  { %5017 = vst.msk [vmem:[%s11685_s3 + $0x9f8] sm:$0xff] %vm4697_vm1, %v3734_v27  ;;  %4760 = vst.msk [vmem:[%s11685_s3 + $0x1f0] sm:$0xff] %vm4697_vm1, %v2449_v30  ;;  %v6343_v36 = vpop.f32.mrb[64].mxu0  ;;  %v451_v30 = vld [vmem:[%s11683_s0 + $0xda8] sm:$0xff] }
 0x15c   :  { %5016 = vst.msk [vmem:[%s11685_s3 + $0x9f0] sm:$0xff] %vm4697_vm1, %v3729_v31  ;;  %v6727_v37 = vpop.f32.mrb[64].mxu1  ;;  %v2464_v38 = vadd.f32 %v8826_v17, %v6343_v36  ;;  %v2458_v40 = vpop.f32.mrb[65].mxu0  ;;  %6501 = vmatmul.mubr.msk.f32.gmra.mrb[170].mxu0 %vm535_vm0, %v185_v32  ;;  %v196_v31 = vld [vmem:[%s11683_s0 + $0x5b0] sm:$0xff] }
 0x15d   :  { %v3744_v39 = vadd.f32 %v8826_v17, %v6727_v37  ;;  %v3738_v41 = vpop.f32.mrb[65].mxu1  ;;  %6885 = vmatmul.mubr.msk.f32.gmra.mrb[170].mxu1 %vm535_vm0, %v441_v33  ;;  %v2459_v42 = vadd.f32 %v8826_v17, %v2458_v40  ;;  %6503 = vmatprep.mubr.msk.f32.mxu0 %vm535_vm0, %v186_v34  ;;  %v452_v32 = vld [vmem:[%s11683_s0 + $0xdb0] sm:$0xff] }
 0x15e   :  { %v3739_v43 = vadd.f32 %v8826_v17, %v3738_v41  ;;  %6887 = vmatprep.mubr.msk.f32.mxu1 %vm535_vm0, %v442_v35  ;;  %4763 = vst.msk [vmem:[%s11685_s3 + $0x208] sm:$0xff] %vm4697_vm1, %v2464_v38  ;;  %v197_v41 = vld [vmem:[%s11683_s0 + $0x5b8] sm:$0xff] }
 0x15f   :  { %5019 = vst.msk [vmem:[%s11685_s3 + $0xa08] sm:$0xff] %vm4697_vm1, %v3744_v39  ;;  %4762 = vst.msk [vmem:[%s11685_s3 + $0x200] sm:$0xff] %vm4697_vm1, %v2459_v42  ;;  %v6346_v48 = vpop.f32.mrb[66].mxu0  ;;  %v453_v42 = vld [vmem:[%s11683_s0 + $0xdb8] sm:$0xff] }
 0x160   :  { %5018 = vst.msk [vmem:[%s11685_s3 + $0xa00] sm:$0xff] %vm4697_vm1, %v3739_v43  ;;  %v6730_v49 = vpop.f32.mrb[66].mxu1  ;;  %v2474_v50 = vadd.f32 %v8826_v17, %v6346_v48  ;;  %v2468_v52 = vpop.f32.mrb[67].mxu0  ;;  %6504 = vmatmul.mubr.msk.f32.gmra.mrb[172].mxu0 %vm535_vm0, %v187_v44  ;;  %v198_v43 = vld [vmem:[%s11683_s0 + $0x5c0] sm:$0xff] }
 0x161   :  { %v3754_v51 = vadd.f32 %v8826_v17, %v6730_v49  ;;  %v3748_v53 = vpop.f32.mrb[67].mxu1  ;;  %6888 = vmatmul.mubr.msk.f32.gmra.mrb[172].mxu1 %vm535_vm0, %v443_v45  ;;  %v2469_v54 = vadd.f32 %v8826_v17, %v2468_v52  ;;  %6506 = vmatprep.mubr.msk.f32.mxu0 %vm535_vm0, %v188_v46  ;;  %v454_v44 = vld [vmem:[%s11683_s0 + $0xdc0] sm:$0xff] }
 0x162   :  { %v3749_v55 = vadd.f32 %v8826_v17, %v3748_v53  ;;  %6890 = vmatprep.mubr.msk.f32.mxu1 %vm535_vm0, %v444_v47  ;;  %4765 = vst.msk [vmem:[%s11685_s3 + $0x218] sm:$0xff] %vm4697_vm1, %v2474_v50  ;;  %v199_v53 = vld [vmem:[%s11683_s0 + $0x5c8] sm:$0xff] }
 0x163   :  { %5021 = vst.msk [vmem:[%s11685_s3 + $0xa18] sm:$0xff] %vm4697_vm1, %v3754_v51  ;;  %4764 = vst.msk [vmem:[%s11685_s3 + $0x210] sm:$0xff] %vm4697_vm1, %v2469_v54  ;;  %v6349_v60 = vpop.f32.mrb[68].mxu0  ;;  %v455_v54 = vld [vmem:[%s11683_s0 + $0xdc8] sm:$0xff] }
 0x164   :  { %5020 = vst.msk [vmem:[%s11685_s3 + $0xa10] sm:$0xff] %vm4697_vm1, %v3749_v55  ;;  %v6733_v61 = vpop.f32.mrb[68].mxu1  ;;  %v2484_v62 = vadd.f32 %v8826_v17, %v6349_v60  ;;  %v2478_v0 = vpop.f32.mrb[69].mxu0  ;;  %6507 = vmatmul.mubr.msk.f32.gmra.mrb[174].mxu0 %vm535_vm0, %v189_v56  ;;  %v200_v55 = vld [vmem:[%s11683_s0 + $0x5d0] sm:$0xff] }
 0x165   :  { %v3764_v63 = vadd.f32 %v8826_v17, %v6733_v61  ;;  %v3758_v1 = vpop.f32.mrb[69].mxu1  ;;  %6891 = vmatmul.mubr.msk.f32.gmra.mrb[174].mxu1 %vm535_vm0, %v445_v57  ;;  %v2479_v2 = vadd.f32 %v8826_v17, %v2478_v0  ;;  %6509 = vmatprep.mubr.msk.f32.mxu0 %vm535_vm0, %v190_v58  ;;  %v456_v56 = vld [vmem:[%s11683_s0 + $0xdd0] sm:$0xff] }
 0x166   :  { %v3759_v3 = vadd.f32 %v8826_v17, %v3758_v1  ;;  %6893 = vmatprep.mubr.msk.f32.mxu1 %vm535_vm0, %v446_v59  ;;  %4767 = vst.msk [vmem:[%s11685_s3 + $0x228] sm:$0xff] %vm4697_vm1, %v2484_v62  ;;  %v201_v1 = vld [vmem:[%s11683_s0 + $0x5d8] sm:$0xff] }
 0x167   :  { %5023 = vst.msk [vmem:[%s11685_s3 + $0xa28] sm:$0xff] %vm4697_vm1, %v3764_v63  ;;  %4766 = vst.msk [vmem:[%s11685_s3 + $0x220] sm:$0xff] %vm4697_vm1, %v2479_v2  ;;  %v6352_v8 = vpop.f32.mrb[70].mxu0  ;;  %v457_v2 = vld [vmem:[%s11683_s0 + $0xdd8] sm:$0xff] }
 0x168   :  { %5022 = vst.msk [vmem:[%s11685_s3 + $0xa20] sm:$0xff] %vm4697_vm1, %v3759_v3  ;;  %v6736_v9 = vpop.f32.mrb[70].mxu1  ;;  %v2494_v10 = vadd.f32 %v8826_v17, %v6352_v8  ;;  %v2488_v12 = vpop.f32.mrb[71].mxu0  ;;  %6510 = vmatmul.mubr.msk.f32.gmra.mrb[176].mxu0 %vm535_vm0, %v191_v4  ;;  %v202_v3 = vld [vmem:[%s11683_s0 + $0x5e0] sm:$0xff] }
 0x169   :  { %v3774_v11 = vadd.f32 %v8826_v17, %v6736_v9  ;;  %v3768_v13 = vpop.f32.mrb[71].mxu1  ;;  %6894 = vmatmul.mubr.msk.f32.gmra.mrb[176].mxu1 %vm535_vm0, %v447_v5  ;;  %v2489_v14 = vadd.f32 %v8826_v17, %v2488_v12  ;;  %6512 = vmatprep.mubr.msk.f32.mxu0 %vm535_vm0, %v192_v6  ;;  %v458_v4 = vld [vmem:[%s11683_s0 + $0xde0] sm:$0xff] }
 0x16a   :  { %v3769_v15 = vadd.f32 %v8826_v17, %v3768_v13  ;;  %6896 = vmatprep.mubr.msk.f32.mxu1 %vm535_vm0, %v448_v7  ;;  %4769 = vst.msk [vmem:[%s11685_s3 + $0x238] sm:$0xff] %vm4697_vm1, %v2494_v10  ;;  %v203_v13 = vld [vmem:[%s11683_s0 + $0x5e8] sm:$0xff] }
 0x16b   :  { %5025 = vst.msk [vmem:[%s11685_s3 + $0xa38] sm:$0xff] %vm4697_vm1, %v3774_v11  ;;  %4768 = vst.msk [vmem:[%s11685_s3 + $0x230] sm:$0xff] %vm4697_vm1, %v2489_v14  ;;  %v6355_v21 = vpop.f32.mrb[72].mxu0  ;;  %v459_v14 = vld [vmem:[%s11683_s0 + $0xde8] sm:$0xff] }
 0x16c   :  { %5024 = vst.msk [vmem:[%s11685_s3 + $0xa30] sm:$0xff] %vm4697_vm1, %v3769_v15  ;;  %v6739_v22 = vpop.f32.mrb[72].mxu1  ;;  %v2504_v25 = vadd.f32 %v8826_v17, %v6355_v21  ;;  %v2498_v24 = vpop.f32.mrb[73].mxu0  ;;  %6513 = vmatmul.mubr.msk.f32.gmra.mrb[178].mxu0 %vm535_vm0, %v193_v16  ;;  %v204_v15 = vld [vmem:[%s11683_s0 + $0x5f0] sm:$0xff] }
 0x16d   :  { %v3784_v23 = vadd.f32 %v8826_v17, %v6739_v22  ;;  %v3778_v26 = vpop.f32.mrb[73].mxu1  ;;  %6897 = vmatmul.mubr.msk.f32.gmra.mrb[178].mxu1 %vm535_vm0, %v449_v18  ;;  %v2499_v27 = vadd.f32 %v8826_v17, %v2498_v24  ;;  %6515 = vmatprep.mubr.msk.f32.mxu0 %vm535_vm0, %v194_v19  ;;  %v460_v16 = vld [vmem:[%s11683_s0 + $0xdf0] sm:$0xff] }
 0x16e   :  { %v3779_v28 = vadd.f32 %v8826_v17, %v3778_v26  ;;  %6899 = vmatprep.mubr.msk.f32.mxu1 %vm535_vm0, %v450_v20  ;;  %4771 = vst.msk [vmem:[%s11685_s3 + $0x248] sm:$0xff] %vm4697_vm1, %v2504_v25  ;;  %v205_v26 = vld [vmem:[%s11683_s0 + $0x5f8] sm:$0xff] }
 0x16f   :  { %5027 = vst.msk [vmem:[%s11685_s3 + $0xa48] sm:$0xff] %vm4697_vm1, %v3784_v23  ;;  %4770 = vst.msk [vmem:[%s11685_s3 + $0x240] sm:$0xff] %vm4697_vm1, %v2499_v27  ;;  %v6358_v33 = vpop.f32.mrb[74].mxu0  ;;  %v461_v27 = vld [vmem:[%s11683_s0 + $0xdf8] sm:$0xff] }
 0x170   :  { %5026 = vst.msk [vmem:[%s11685_s3 + $0xa40] sm:$0xff] %vm4697_vm1, %v3779_v28  ;;  %v6742_v34 = vpop.f32.mrb[74].mxu1  ;;  %v2514_v35 = vadd.f32 %v8826_v17, %v6358_v33  ;;  %v2508_v37 = vpop.f32.mrb[75].mxu0  ;;  %6516 = vmatmul.mubr.msk.f32.gmra.mrb[180].mxu0 %vm535_vm0, %v195_v29  ;;  %v206_v28 = vld [vmem:[%s11683_s0 + $0x600] sm:$0xff] }
 0x171   :  { %v3794_v36 = vadd.f32 %v8826_v17, %v6742_v34  ;;  %v3788_v38 = vpop.f32.mrb[75].mxu1  ;;  %6900 = vmatmul.mubr.msk.f32.gmra.mrb[180].mxu1 %vm535_vm0, %v451_v30  ;;  %v2509_v39 = vadd.f32 %v8826_v17, %v2508_v37  ;;  %6518 = vmatprep.mubr.msk.f32.mxu0 %vm535_vm0, %v196_v31  ;;  %v462_v29 = vld [vmem:[%s11683_s0 + $0xe00] sm:$0xff] }
 0x172   :  { %v3789_v40 = vadd.f32 %v8826_v17, %v3788_v38  ;;  %6902 = vmatprep.mubr.msk.f32.mxu1 %vm535_vm0, %v452_v32  ;;  %4773 = vst.msk [vmem:[%s11685_s3 + $0x258] sm:$0xff] %vm4697_vm1, %v2514_v35  ;;  %v207_v38 = vld [vmem:[%s11683_s0 + $0x608] sm:$0xff] }
 0x173   :  { %5029 = vst.msk [vmem:[%s11685_s3 + $0xa58] sm:$0xff] %vm4697_vm1, %v3794_v36  ;;  %4772 = vst.msk [vmem:[%s11685_s3 + $0x250] sm:$0xff] %vm4697_vm1, %v2509_v39  ;;  %v6361_v45 = vpop.f32.mrb[76].mxu0  ;;  %v463_v39 = vld [vmem:[%s11683_s0 + $0xe08] sm:$0xff] }
 0x174   :  { %5028 = vst.msk [vmem:[%s11685_s3 + $0xa50] sm:$0xff] %vm4697_vm1, %v3789_v40  ;;  %v6745_v46 = vpop.f32.mrb[76].mxu1  ;;  %v2524_v47 = vadd.f32 %v8826_v17, %v6361_v45  ;;  %v2518_v49 = vpop.f32.mrb[77].mxu0  ;;  %6519 = vmatmul.mubr.msk.f32.gmra.mrb[182].mxu0 %vm535_vm0, %v197_v41  ;;  %v208_v40 = vld [vmem:[%s11683_s0 + $0x610] sm:$0xff] }
 0x175   :  { %v3804_v48 = vadd.f32 %v8826_v17, %v6745_v46  ;;  %v3798_v50 = vpop.f32.mrb[77].mxu1  ;;  %6903 = vmatmul.mubr.msk.f32.gmra.mrb[182].mxu1 %vm535_vm0, %v453_v42  ;;  %v2519_v51 = vadd.f32 %v8826_v17, %v2518_v49  ;;  %6521 = vmatprep.mubr.msk.f32.mxu0 %vm535_vm0, %v198_v43  ;;  %v464_v41 = vld [vmem:[%s11683_s0 + $0xe10] sm:$0xff] }
 0x176   :  { %v3799_v52 = vadd.f32 %v8826_v17, %v3798_v50  ;;  %6905 = vmatprep.mubr.msk.f32.mxu1 %vm535_vm0, %v454_v44  ;;  %4775 = vst.msk [vmem:[%s11685_s3 + $0x268] sm:$0xff] %vm4697_vm1, %v2524_v47  ;;  %v209_v50 = vld [vmem:[%s11683_s0 + $0x618] sm:$0xff] }
 0x177   :  { %5031 = vst.msk [vmem:[%s11685_s3 + $0xa68] sm:$0xff] %vm4697_vm1, %v3804_v48  ;;  %4774 = vst.msk [vmem:[%s11685_s3 + $0x260] sm:$0xff] %vm4697_vm1, %v2519_v51  ;;  %v6364_v57 = vpop.f32.mrb[78].mxu0  ;;  %v465_v51 = vld [vmem:[%s11683_s0 + $0xe18] sm:$0xff] }
 0x178   :  { %5030 = vst.msk [vmem:[%s11685_s3 + $0xa60] sm:$0xff] %vm4697_vm1, %v3799_v52  ;;  %v6748_v58 = vpop.f32.mrb[78].mxu1  ;;  %v2534_v59 = vadd.f32 %v8826_v17, %v6364_v57  ;;  %v2528_v61 = vpop.f32.mrb[79].mxu0  ;;  %6522 = vmatmul.mubr.msk.f32.gmra.mrb[184].mxu0 %vm535_vm0, %v199_v53  ;;  %v210_v52 = vld [vmem:[%s11683_s0 + $0x620] sm:$0xff] }
 0x179   :  { %v3814_v60 = vadd.f32 %v8826_v17, %v6748_v58  ;;  %v3808_v62 = vpop.f32.mrb[79].mxu1  ;;  %6906 = vmatmul.mubr.msk.f32.gmra.mrb[184].mxu1 %vm535_vm0, %v455_v54  ;;  %v2529_v63 = vadd.f32 %v8826_v17, %v2528_v61  ;;  %6524 = vmatprep.mubr.msk.f32.mxu0 %vm535_vm0, %v200_v55  ;;  %v466_v53 = vld [vmem:[%s11683_s0 + $0xe20] sm:$0xff] }
 0x17a   :  { %v3809_v0 = vadd.f32 %v8826_v17, %v3808_v62  ;;  %6908 = vmatprep.mubr.msk.f32.mxu1 %vm535_vm0, %v456_v56  ;;  %4777 = vst.msk [vmem:[%s11685_s3 + $0x278] sm:$0xff] %vm4697_vm1, %v2534_v59  ;;  %v211_v62 = vld [vmem:[%s11683_s0 + $0x628] sm:$0xff] }
 0x17b   :  { %5033 = vst.msk [vmem:[%s11685_s3 + $0xa78] sm:$0xff] %vm4697_vm1, %v3814_v60  ;;  %4776 = vst.msk [vmem:[%s11685_s3 + $0x270] sm:$0xff] %vm4697_vm1, %v2529_v63  ;;  %v6367_v5 = vpop.f32.mrb[80].mxu0  ;;  %v467_v63 = vld [vmem:[%s11683_s0 + $0xe28] sm:$0xff] }
 0x17c   :  { %5032 = vst.msk [vmem:[%s11685_s3 + $0xa70] sm:$0xff] %vm4697_vm1, %v3809_v0  ;;  %v6751_v6 = vpop.f32.mrb[80].mxu1  ;;  %v2544_v7 = vadd.f32 %v8826_v17, %v6367_v5  ;;  %v2538_v9 = vpop.f32.mrb[81].mxu0  ;;  %6525 = vmatmul.mubr.msk.f32.gmra.mrb[186].mxu0 %vm535_vm0, %v201_v1  ;;  %v212_v0 = vld [vmem:[%s11683_s0 + $0x630] sm:$0xff] }
 0x17d   :  { %v3824_v8 = vadd.f32 %v8826_v17, %v6751_v6  ;;  %v3818_v10 = vpop.f32.mrb[81].mxu1  ;;  %6909 = vmatmul.mubr.msk.f32.gmra.mrb[186].mxu1 %vm535_vm0, %v457_v2  ;;  %v2539_v11 = vadd.f32 %v8826_v17, %v2538_v9  ;;  %6527 = vmatprep.mubr.msk.f32.mxu0 %vm535_vm0, %v202_v3  ;;  %v468_v1 = vld [vmem:[%s11683_s0 + $0xe30] sm:$0xff] }
 0x17e   :  { %v3819_v12 = vadd.f32 %v8826_v17, %v3818_v10  ;;  %6911 = vmatprep.mubr.msk.f32.mxu1 %vm535_vm0, %v458_v4  ;;  %4779 = vst.msk [vmem:[%s11685_s3 + $0x288] sm:$0xff] %vm4697_vm1, %v2544_v7  ;;  %v213_v10 = vld [vmem:[%s11683_s0 + $0x638] sm:$0xff] }
 0x17f   :  { %5035 = vst.msk [vmem:[%s11685_s3 + $0xa88] sm:$0xff] %vm4697_vm1, %v3824_v8  ;;  %4778 = vst.msk [vmem:[%s11685_s3 + $0x280] sm:$0xff] %vm4697_vm1, %v2539_v11  ;;  %v6370_v18 = vpop.f32.mrb[82].mxu0  ;;  %v469_v11 = vld [vmem:[%s11683_s0 + $0xe38] sm:$0xff] }
 0x180   :  { %5034 = vst.msk [vmem:[%s11685_s3 + $0xa80] sm:$0xff] %vm4697_vm1, %v3819_v12  ;;  %v6754_v19 = vpop.f32.mrb[82].mxu1  ;;  %v2554_v20 = vadd.f32 %v8826_v17, %v6370_v18  ;;  %v2548_v22 = vpop.f32.mrb[83].mxu0  ;;  %6528 = vmatmul.mubr.msk.f32.gmra.mrb[188].mxu0 %vm535_vm0, %v203_v13  ;;  %v214_v12 = vld [vmem:[%s11683_s0 + $0x640] sm:$0xff] }
 0x181   :  { %v3834_v21 = vadd.f32 %v8826_v17, %v6754_v19  ;;  %v3828_v25 = vpop.f32.mrb[83].mxu1  ;;  %6912 = vmatmul.mubr.msk.f32.gmra.mrb[188].mxu1 %vm535_vm0, %v459_v14  ;;  %v2549_v23 = vadd.f32 %v8826_v17, %v2548_v22  ;;  %6530 = vmatprep.mubr.msk.f32.mxu0 %vm535_vm0, %v204_v15  ;;  %v470_v13 = vld [vmem:[%s11683_s0 + $0xe40] sm:$0xff] }
 0x182   :  { %v3829_v24 = vadd.f32 %v8826_v17, %v3828_v25  ;;  %6914 = vmatprep.mubr.msk.f32.mxu1 %vm535_vm0, %v460_v16  ;;  %4781 = vst.msk [vmem:[%s11685_s3 + $0x298] sm:$0xff] %vm4697_vm1, %v2554_v20  ;;  %v215_v25 = vld [vmem:[%s11683_s0 + $0x648] sm:$0xff] }
 0x183   :  { %5037 = vst.msk [vmem:[%s11685_s3 + $0xa98] sm:$0xff] %vm4697_vm1, %v3834_v21  ;;  %4780 = vst.msk [vmem:[%s11685_s3 + $0x290] sm:$0xff] %vm4697_vm1, %v2549_v23  ;;  %v6373_v30 = vpop.f32.mrb[84].mxu0  ;;  %v471_v23 = vld [vmem:[%s11683_s0 + $0xe48] sm:$0xff] }
 0x184   :  { %5036 = vst.msk [vmem:[%s11685_s3 + $0xa90] sm:$0xff] %vm4697_vm1, %v3829_v24  ;;  %v6757_v31 = vpop.f32.mrb[84].mxu1  ;;  %v2564_v32 = vadd.f32 %v8826_v17, %v6373_v30  ;;  %v2558_v34 = vpop.f32.mrb[85].mxu0  ;;  %6531 = vmatmul.mubr.msk.f32.gmra.mrb[190].mxu0 %vm535_vm0, %v205_v26  ;;  %v216_v24 = vld [vmem:[%s11683_s0 + $0x650] sm:$0xff] }
 0x185   :  { %v3844_v33 = vadd.f32 %v8826_v17, %v6757_v31  ;;  %v3838_v35 = vpop.f32.mrb[85].mxu1  ;;  %6915 = vmatmul.mubr.msk.f32.gmra.mrb[190].mxu1 %vm535_vm0, %v461_v27  ;;  %v2559_v36 = vadd.f32 %v8826_v17, %v2558_v34  ;;  %6533 = vmatprep.mubr.msk.f32.mxu0 %vm535_vm0, %v206_v28  ;;  %v472_v26 = vld [vmem:[%s11683_s0 + $0xe50] sm:$0xff] }
 0x186   :  { %v3839_v37 = vadd.f32 %v8826_v17, %v3838_v35  ;;  %6917 = vmatprep.mubr.msk.f32.mxu1 %vm535_vm0, %v462_v29  ;;  %4783 = vst.msk [vmem:[%s11685_s3 + $0x2a8] sm:$0xff] %vm4697_vm1, %v2564_v32  ;;  %v217_v35 = vld [vmem:[%s11683_s0 + $0x658] sm:$0xff] }
 0x187   :  { %5039 = vst.msk [vmem:[%s11685_s3 + $0xaa8] sm:$0xff] %vm4697_vm1, %v3844_v33  ;;  %4782 = vst.msk [vmem:[%s11685_s3 + $0x2a0] sm:$0xff] %vm4697_vm1, %v2559_v36  ;;  %v6376_v42 = vpop.f32.mrb[86].mxu0  ;;  %v473_v36 = vld [vmem:[%s11683_s0 + $0xe58] sm:$0xff] }
 0x188   :  { %5038 = vst.msk [vmem:[%s11685_s3 + $0xaa0] sm:$0xff] %vm4697_vm1, %v3839_v37  ;;  %v6760_v43 = vpop.f32.mrb[86].mxu1  ;;  %v2574_v44 = vadd.f32 %v8826_v17, %v6376_v42  ;;  %v2568_v46 = vpop.f32.mrb[87].mxu0  ;;  %6534 = vmatmul.mubr.msk.f32.gmra.mrb[192].mxu0 %vm535_vm0, %v207_v38  ;;  %v218_v37 = vld [vmem:[%s11683_s0 + $0x660] sm:$0xff] }
 0x189   :  { %v3854_v45 = vadd.f32 %v8826_v17, %v6760_v43  ;;  %v3848_v47 = vpop.f32.mrb[87].mxu1  ;;  %6918 = vmatmul.mubr.msk.f32.gmra.mrb[192].mxu1 %vm535_vm0, %v463_v39  ;;  %v2569_v48 = vadd.f32 %v8826_v17, %v2568_v46  ;;  %6536 = vmatprep.mubr.msk.f32.mxu0 %vm535_vm0, %v208_v40  ;;  %v474_v38 = vld [vmem:[%s11683_s0 + $0xe60] sm:$0xff] }
 0x18a   :  { %v3849_v49 = vadd.f32 %v8826_v17, %v3848_v47  ;;  %6920 = vmatprep.mubr.msk.f32.mxu1 %vm535_vm0, %v464_v41  ;;  %4785 = vst.msk [vmem:[%s11685_s3 + $0x2b8] sm:$0xff] %vm4697_vm1, %v2574_v44  ;;  %v219_v47 = vld [vmem:[%s11683_s0 + $0x668] sm:$0xff] }
 0x18b   :  { %5041 = vst.msk [vmem:[%s11685_s3 + $0xab8] sm:$0xff] %vm4697_vm1, %v3854_v45  ;;  %4784 = vst.msk [vmem:[%s11685_s3 + $0x2b0] sm:$0xff] %vm4697_vm1, %v2569_v48  ;;  %v6379_v54 = vpop.f32.mrb[88].mxu0  ;;  %v475_v48 = vld [vmem:[%s11683_s0 + $0xe68] sm:$0xff] }
 0x18c   :  { %5040 = vst.msk [vmem:[%s11685_s3 + $0xab0] sm:$0xff] %vm4697_vm1, %v3849_v49  ;;  %v6763_v55 = vpop.f32.mrb[88].mxu1  ;;  %v2584_v56 = vadd.f32 %v8826_v17, %v6379_v54  ;;  %v2578_v58 = vpop.f32.mrb[89].mxu0  ;;  %6537 = vmatmul.mubr.msk.f32.gmra.mrb[194].mxu0 %vm535_vm0, %v209_v50  ;;  %v220_v49 = vld [vmem:[%s11683_s0 + $0x670] sm:$0xff] }
 0x18d   :  { %v3864_v57 = vadd.f32 %v8826_v17, %v6763_v55  ;;  %v3858_v59 = vpop.f32.mrb[89].mxu1  ;;  %6921 = vmatmul.mubr.msk.f32.gmra.mrb[194].mxu1 %vm535_vm0, %v465_v51  ;;  %v2579_v60 = vadd.f32 %v8826_v17, %v2578_v58  ;;  %6539 = vmatprep.mubr.msk.f32.mxu0 %vm535_vm0, %v210_v52  ;;  %v476_v50 = vld [vmem:[%s11683_s0 + $0xe70] sm:$0xff] }
 0x18e   :  { %v3859_v61 = vadd.f32 %v8826_v17, %v3858_v59  ;;  %6923 = vmatprep.mubr.msk.f32.mxu1 %vm535_vm0, %v466_v53  ;;  %4787 = vst.msk [vmem:[%s11685_s3 + $0x2c8] sm:$0xff] %vm4697_vm1, %v2584_v56  ;;  %v221_v59 = vld [vmem:[%s11683_s0 + $0x678] sm:$0xff] }
 0x18f   :  { %5043 = vst.msk [vmem:[%s11685_s3 + $0xac8] sm:$0xff] %vm4697_vm1, %v3864_v57  ;;  %4786 = vst.msk [vmem:[%s11685_s3 + $0x2c0] sm:$0xff] %vm4697_vm1, %v2579_v60  ;;  %v6382_v2 = vpop.f32.mrb[90].mxu0  ;;  %v477_v60 = vld [vmem:[%s11683_s0 + $0xe78] sm:$0xff] }
 0x190   :  { %5042 = vst.msk [vmem:[%s11685_s3 + $0xac0] sm:$0xff] %vm4697_vm1, %v3859_v61  ;;  %v6766_v3 = vpop.f32.mrb[90].mxu1  ;;  %v2594_v4 = vadd.f32 %v8826_v17, %v6382_v2  ;;  %v2588_v6 = vpop.f32.mrb[91].mxu0  ;;  %6540 = vmatmul.mubr.msk.f32.gmra.mrb[196].mxu0 %vm535_vm0, %v211_v62  ;;  %v222_v61 = vld [vmem:[%s11683_s0 + $0x680] sm:$0xff] }
 0x191   :  { %v3874_v5 = vadd.f32 %v8826_v17, %v6766_v3  ;;  %v3868_v7 = vpop.f32.mrb[91].mxu1  ;;  %6924 = vmatmul.mubr.msk.f32.gmra.mrb[196].mxu1 %vm535_vm0, %v467_v63  ;;  %v2589_v8 = vadd.f32 %v8826_v17, %v2588_v6  ;;  %6542 = vmatprep.mubr.msk.f32.mxu0 %vm535_vm0, %v212_v0  ;;  %v478_v62 = vld [vmem:[%s11683_s0 + $0xe80] sm:$0xff] }
 0x192   :  { %v3869_v9 = vadd.f32 %v8826_v17, %v3868_v7  ;;  %6926 = vmatprep.mubr.msk.f32.mxu1 %vm535_vm0, %v468_v1  ;;  %4789 = vst.msk [vmem:[%s11685_s3 + $0x2d8] sm:$0xff] %vm4697_vm1, %v2594_v4  ;;  %v223_v7 = vld [vmem:[%s11683_s0 + $0x688] sm:$0xff] }
 0x193   :  { %5045 = vst.msk [vmem:[%s11685_s3 + $0xad8] sm:$0xff] %vm4697_vm1, %v3874_v5  ;;  %4788 = vst.msk [vmem:[%s11685_s3 + $0x2d0] sm:$0xff] %vm4697_vm1, %v2589_v8  ;;  %v6385_v14 = vpop.f32.mrb[92].mxu0  ;;  %v479_v8 = vld [vmem:[%s11683_s0 + $0xe88] sm:$0xff] }
 0x194   :  { %5044 = vst.msk [vmem:[%s11685_s3 + $0xad0] sm:$0xff] %vm4697_vm1, %v3869_v9  ;;  %v6769_v15 = vpop.f32.mrb[92].mxu1  ;;  %v2604_v16 = vadd.f32 %v8826_v17, %v6385_v14  ;;  %v2598_v19 = vpop.f32.mrb[93].mxu0  ;;  %6543 = vmatmul.mubr.msk.f32.gmra.mrb[198].mxu0 %vm535_vm0, %v213_v10  ;;  %v480_v9 = vld [vmem:[%s11683_s0 + $0xe90] sm:$0xff] }
 0x195   :  { %v3884_v18 = vadd.f32 %v8826_v17, %v6769_v15  ;;  %v3878_v20 = vpop.f32.mrb[93].mxu1  ;;  %6927 = vmatmul.mubr.msk.f32.gmra.mrb[198].mxu1 %vm535_vm0, %v469_v11  ;;  %v2599_v21 = vadd.f32 %v8826_v17, %v2598_v19  ;;  %6545 = vmatprep.mubr.msk.f32.mxu0 %vm535_vm0, %v214_v12  ;;  %v9766_v12 = vld [vmem:[%s11684_s2] ss:$0 sm:$0xff] }
 0x196   :  { %v3879_v22 = vadd.f32 %v8826_v17, %v3878_v20  ;;  %6929 = vmatprep.mubr.msk.f32.mxu1 %vm535_vm0, %v470_v13  ;;  %4791 = vst.msk [vmem:[%s11685_s3 + $0x2e8] sm:$0xff] %vm4697_vm1, %v2604_v16  ;;  %v225_v20 = vld [vmem:[%s11683_s0 + $0x698] sm:$0xff] }
 0x197   :  { %5047 = vst.msk [vmem:[%s11685_s3 + $0xae8] sm:$0xff] %vm4697_vm1, %v3884_v18  ;;  %4790 = vst.msk [vmem:[%s11685_s3 + $0x2e0] sm:$0xff] %vm4697_vm1, %v2599_v21  ;;  %v6388_v27 = vpop.f32.mrb[94].mxu0  ;;  %v481_v21 = vld [vmem:[%s11683_s0 + $0xe98] sm:$0xff] }
 0x198   :  { %5046 = vst.msk [vmem:[%s11685_s3 + $0xae0] sm:$0xff] %vm4697_vm1, %v3879_v22  ;;  %v6772_v28 = vpop.f32.mrb[94].mxu1  ;;  %v2614_v29 = vadd.f32 %v8826_v17, %v6388_v27  ;;  %v2608_v31 = vpop.f32.mrb[95].mxu0  ;;  %6546 = vmatmul.mubr.msk.f32.gmra.mrb[200].mxu0 %vm535_vm0, %v215_v25  ;;  %v226_v22 = vld [vmem:[%s11683_s0 + $0x6a0] sm:$0xff] }
 0x199   :  { %v3894_v30 = vadd.f32 %v8826_v17, %v6772_v28  ;;  %v3888_v32 = vpop.f32.mrb[95].mxu1  ;;  %6930 = vmatmul.mubr.msk.f32.gmra.mrb[200].mxu1 %vm535_vm0, %v471_v23  ;;  %v2609_v33 = vadd.f32 %v8826_v17, %v2608_v31  ;;  %6548 = vmatprep.mubr.msk.f32.mxu0 %vm535_vm0, %v216_v24  ;;  %v482_v25 = vld [vmem:[%s11683_s0 + $0xea0] sm:$0xff] }
 0x19a   :  { %v3889_v34 = vadd.f32 %v8826_v17, %v3888_v32  ;;  %6932 = vmatprep.mubr.msk.f32.mxu1 %vm535_vm0, %v472_v26  ;;  %4793 = vst.msk [vmem:[%s11685_s3 + $0x2f8] sm:$0xff] %vm4697_vm1, %v2614_v29  ;;  %v227_v32 = vld [vmem:[%s11683_s0 + $0x6a8] sm:$0xff] }
 0x19b   :  { %5049 = vst.msk [vmem:[%s11685_s3 + $0xaf8] sm:$0xff] %vm4697_vm1, %v3894_v30  ;;  %4792 = vst.msk [vmem:[%s11685_s3 + $0x2f0] sm:$0xff] %vm4697_vm1, %v2609_v33  ;;  %v6391_v39 = vpop.f32.mrb[96].mxu0  ;;  %v483_v33 = vld [vmem:[%s11683_s0 + $0xea8] sm:$0xff] }
 0x19c   :  { %5048 = vst.msk [vmem:[%s11685_s3 + $0xaf0] sm:$0xff] %vm4697_vm1, %v3889_v34  ;;  %v6775_v40 = vpop.f32.mrb[96].mxu1  ;;  %v2624_v41 = vadd.f32 %v8826_v17, %v6391_v39  ;;  %v2618_v43 = vpop.f32.mrb[97].mxu0  ;;  %6549 = vmatmul.mubr.msk.f32.gmra.mrb[202].mxu0 %vm535_vm0, %v217_v35  ;;  %v228_v34 = vld [vmem:[%s11683_s0 + $0x6b0] sm:$0xff] }
 0x19d   :  { %v3904_v42 = vadd.f32 %v8826_v17, %v6775_v40  ;;  %v3898_v44 = vpop.f32.mrb[97].mxu1  ;;  %6933 = vmatmul.mubr.msk.f32.gmra.mrb[202].mxu1 %vm535_vm0, %v473_v36  ;;  %v2619_v45 = vadd.f32 %v8826_v17, %v2618_v43  ;;  %6551 = vmatprep.mubr.msk.f32.mxu0 %vm535_vm0, %v218_v37  ;;  %v484_v35 = vld [vmem:[%s11683_s0 + $0xeb0] sm:$0xff] }
 0x19e   :  { %v3899_v46 = vadd.f32 %v8826_v17, %v3898_v44  ;;  %6935 = vmatprep.mubr.msk.f32.mxu1 %vm535_vm0, %v474_v38  ;;  %4795 = vst.msk [vmem:[%s11685_s3 + $0x308] sm:$0xff] %vm4697_vm1, %v2624_v41  ;;  %v229_v44 = vld [vmem:[%s11683_s0 + $0x6b8] sm:$0xff] }
 0x19f   :  { %5051 = vst.msk [vmem:[%s11685_s3 + $0xb08] sm:$0xff] %vm4697_vm1, %v3904_v42  ;;  %4794 = vst.msk [vmem:[%s11685_s3 + $0x300] sm:$0xff] %vm4697_vm1, %v2619_v45  ;;  %v6394_v51 = vpop.f32.mrb[98].mxu0  ;;  %v485_v45 = vld [vmem:[%s11683_s0 + $0xeb8] sm:$0xff] }
 0x1a0   :  { %5050 = vst.msk [vmem:[%s11685_s3 + $0xb00] sm:$0xff] %vm4697_vm1, %v3899_v46  ;;  %v6778_v52 = vpop.f32.mrb[98].mxu1  ;;  %v2634_v53 = vadd.f32 %v8826_v17, %v6394_v51  ;;  %v2628_v55 = vpop.f32.mrb[99].mxu0  ;;  %6552 = vmatmul.mubr.msk.f32.gmra.mrb[204].mxu0 %vm535_vm0, %v219_v47  ;;  %v230_v46 = vld [vmem:[%s11683_s0 + $0x6c0] sm:$0xff] }
 0x1a1   :  { %v3914_v54 = vadd.f32 %v8826_v17, %v6778_v52  ;;  %v3908_v56 = vpop.f32.mrb[99].mxu1  ;;  %6936 = vmatmul.mubr.msk.f32.gmra.mrb[204].mxu1 %vm535_vm0, %v475_v48  ;;  %v2629_v57 = vadd.f32 %v8826_v17, %v2628_v55  ;;  %6554 = vmatprep.mubr.msk.f32.mxu0 %vm535_vm0, %v220_v49  ;;  %v486_v47 = vld [vmem:[%s11683_s0 + $0xec0] sm:$0xff] }
 0x1a2   :  { %v3909_v58 = vadd.f32 %v8826_v17, %v3908_v56  ;;  %6938 = vmatprep.mubr.msk.f32.mxu1 %vm535_vm0, %v476_v50  ;;  %4797 = vst.msk [vmem:[%s11685_s3 + $0x318] sm:$0xff] %vm4697_vm1, %v2634_v53  ;;  %v231_v56 = vld [vmem:[%s11683_s0 + $0x6c8] sm:$0xff] }
 0x1a3   :  { %5053 = vst.msk [vmem:[%s11685_s3 + $0xb18] sm:$0xff] %vm4697_vm1, %v3914_v54  ;;  %4796 = vst.msk [vmem:[%s11685_s3 + $0x310] sm:$0xff] %vm4697_vm1, %v2629_v57  ;;  %v6397_v63 = vpop.f32.mrb[100].mxu0  ;;  %v487_v57 = vld [vmem:[%s11683_s0 + $0xec8] sm:$0xff] }
 0x1a4   :  { %5052 = vst.msk [vmem:[%s11685_s3 + $0xb10] sm:$0xff] %vm4697_vm1, %v3909_v58  ;;  %v6781_v0 = vpop.f32.mrb[100].mxu1  ;;  %v2644_v1 = vadd.f32 %v8826_v17, %v6397_v63  ;;  %v2638_v3 = vpop.f32.mrb[101].mxu0  ;;  %6555 = vmatmul.mubr.msk.f32.gmra.mrb[206].mxu0 %vm535_vm0, %v221_v59  ;;  %v232_v58 = vld [vmem:[%s11683_s0 + $0x6d0] sm:$0xff] }
 0x1a5   :  { %v3924_v2 = vadd.f32 %v8826_v17, %v6781_v0  ;;  %v3918_v4 = vpop.f32.mrb[101].mxu1  ;;  %6939 = vmatmul.mubr.msk.f32.gmra.mrb[206].mxu1 %vm535_vm0, %v477_v60  ;;  %v2639_v5 = vadd.f32 %v8826_v17, %v2638_v3  ;;  %6557 = vmatprep.mubr.msk.f32.mxu0 %vm535_vm0, %v222_v61  ;;  %v488_v59 = vld [vmem:[%s11683_s0 + $0xed0] sm:$0xff] }
 0x1a6   :  { %v3919_v6 = vadd.f32 %v8826_v17, %v3918_v4  ;;  %6941 = vmatprep.mubr.msk.f32.mxu1 %vm535_vm0, %v478_v62  ;;  %4799 = vst.msk [vmem:[%s11685_s3 + $0x328] sm:$0xff] %vm4697_vm1, %v2644_v1  ;;  %v224_v17 = vld [vmem:[%s11683_s0 + $0x690] sm:$0xff]  ;;  %v233_v4 = vld [vmem:[%s11683_s0 + $0x6d8] sm:$0xff] }
 0x1a7   :  { %5055 = vst.msk [vmem:[%s11685_s3 + $0xb28] sm:$0xff] %vm4697_vm1, %v3924_v2  ;;  %4798 = vst.msk [vmem:[%s11685_s3 + $0x320] sm:$0xff] %vm4697_vm1, %v2639_v5  ;;  %v6400_v10 = vpop.f32.mrb[102].mxu0  ;;  %v489_v5 = vld [vmem:[%s11683_s0 + $0xed8] sm:$0xff] }
 0x1a8   :  { %5054 = vst.msk [vmem:[%s11685_s3 + $0xb20] sm:$0xff] %vm4697_vm1, %v3919_v6  ;;  %v6784_v11 = vpop.f32.mrb[102].mxu1  ;;  %v2654_v13 = vadd.f32 %v9766_v12, %v6400_v10  ;;  %v2648_v15 = vpop.f32.mrb[103].mxu0  ;;  %6558 = vmatmul.mubr.msk.f32.gmra.mrb[208].mxu0 %vm535_vm0, %v223_v7  ;;  %v234_v6 = vld [vmem:[%s11683_s0 + $0x6e0] sm:$0xff] }
 0x1a9   :  { %v3934_v14 = vadd.f32 %v9766_v12, %v6784_v11  ;;  %v3928_v16 = vpop.f32.mrb[103].mxu1  ;;  %6942 = vmatmul.mubr.msk.f32.gmra.mrb[208].mxu1 %vm535_vm0, %v479_v8  ;;  %v2649_v18 = vadd.f32 %v9766_v12, %v2648_v15  ;;  %6560 = vmatprep.mubr.msk.f32.mxu0 %vm535_vm0, %v224_v17  ;;  %v490_v7 = vld [vmem:[%s11683_s0 + $0xee0] sm:$0xff] }
 0x1aa   :  { %v3929_v19 = vadd.f32 %v9766_v12, %v3928_v16  ;;  %6944 = vmatprep.mubr.msk.f32.mxu1 %vm535_vm0, %v480_v9  ;;  %4801 = vst.msk [vmem:[%s11685_s3 + $0x338] sm:$0xff] %vm4697_vm1, %v2654_v13  ;;  %v235_v16 = vld [vmem:[%s11683_s0 + $0x6e8] sm:$0xff] }
 0x1ab   :  { %5057 = vst.msk [vmem:[%s11685_s3 + $0xb38] sm:$0xff] %vm4697_vm1, %v3934_v14  ;;  %4800 = vst.msk [vmem:[%s11685_s3 + $0x330] sm:$0xff] %vm4697_vm1, %v2649_v18  ;;  %v6403_v23 = vpop.f32.mrb[104].mxu0  ;;  %v491_v18 = vld [vmem:[%s11683_s0 + $0xee8] sm:$0xff] }
 0x1ac   :  { %5056 = vst.msk [vmem:[%s11685_s3 + $0xb30] sm:$0xff] %vm4697_vm1, %v3929_v19  ;;  %v6787_v24 = vpop.f32.mrb[104].mxu1  ;;  %v2664_v26 = vadd.f32 %v9766_v12, %v6403_v23  ;;  %v2658_v28 = vpop.f32.mrb[105].mxu0  ;;  %6561 = vmatmul.mubr.msk.f32.gmra.mrb[210].mxu0 %vm535_vm0, %v225_v20  ;;  %v236_v19 = vld [vmem:[%s11683_s0 + $0x6f0] sm:$0xff] }
 0x1ad   :  { %v3944_v27 = vadd.f32 %v9766_v12, %v6787_v24  ;;  %v3938_v29 = vpop.f32.mrb[105].mxu1  ;;  %6945 = vmatmul.mubr.msk.f32.gmra.mrb[210].mxu1 %vm535_vm0, %v481_v21  ;;  %v2659_v30 = vadd.f32 %v9766_v12, %v2658_v28  ;;  %6563 = vmatprep.mubr.msk.f32.mxu0 %vm535_vm0, %v226_v22  ;;  %v492_v20 = vld [vmem:[%s11683_s0 + $0xef0] sm:$0xff] }
 0x1ae   :  { %v3939_v31 = vadd.f32 %v9766_v12, %v3938_v29  ;;  %6947 = vmatprep.mubr.msk.f32.mxu1 %vm535_vm0, %v482_v25  ;;  %4803 = vst.msk [vmem:[%s11685_s3 + $0x348] sm:$0xff] %vm4697_vm1, %v2664_v26  ;;  %v237_v29 = vld [vmem:[%s11683_s0 + $0x6f8] sm:$0xff] }
 0x1af   :  { %5059 = vst.msk [vmem:[%s11685_s3 + $0xb48] sm:$0xff] %vm4697_vm1, %v3944_v27  ;;  %4802 = vst.msk [vmem:[%s11685_s3 + $0x340] sm:$0xff] %vm4697_vm1, %v2659_v30  ;;  %v6406_v36 = vpop.f32.mrb[106].mxu0  ;;  %v493_v30 = vld [vmem:[%s11683_s0 + $0xef8] sm:$0xff] }
 0x1b0   :  { %5058 = vst.msk [vmem:[%s11685_s3 + $0xb40] sm:$0xff] %vm4697_vm1, %v3939_v31  ;;  %v6790_v37 = vpop.f32.mrb[106].mxu1  ;;  %v2674_v38 = vadd.f32 %v9766_v12, %v6406_v36  ;;  %v2668_v40 = vpop.f32.mrb[107].mxu0  ;;  %6564 = vmatmul.mubr.msk.f32.gmra.mrb[212].mxu0 %vm535_vm0, %v227_v32  ;;  %v238_v31 = vld [vmem:[%s11683_s0 + $0x700] sm:$0xff] }
 0x1b1   :  { %v3954_v39 = vadd.f32 %v9766_v12, %v6790_v37  ;;  %v3948_v41 = vpop.f32.mrb[107].mxu1  ;;  %6948 = vmatmul.mubr.msk.f32.gmra.mrb[212].mxu1 %vm535_vm0, %v483_v33  ;;  %v2669_v42 = vadd.f32 %v9766_v12, %v2668_v40  ;;  %6566 = vmatprep.mubr.msk.f32.mxu0 %vm535_vm0, %v228_v34  ;;  %v494_v32 = vld [vmem:[%s11683_s0 + $0xf00] sm:$0xff] }
 0x1b2   :  { %v3949_v43 = vadd.f32 %v9766_v12, %v3948_v41  ;;  %6950 = vmatprep.mubr.msk.f32.mxu1 %vm535_vm0, %v484_v35  ;;  %4805 = vst.msk [vmem:[%s11685_s3 + $0x358] sm:$0xff] %vm4697_vm1, %v2674_v38  ;;  %v239_v41 = vld [vmem:[%s11683_s0 + $0x708] sm:$0xff] }
 0x1b3   :  { %5061 = vst.msk [vmem:[%s11685_s3 + $0xb58] sm:$0xff] %vm4697_vm1, %v3954_v39  ;;  %4804 = vst.msk [vmem:[%s11685_s3 + $0x350] sm:$0xff] %vm4697_vm1, %v2669_v42  ;;  %v6409_v48 = vpop.f32.mrb[108].mxu0  ;;  %v495_v42 = vld [vmem:[%s11683_s0 + $0xf08] sm:$0xff] }
 0x1b4   :  { %5060 = vst.msk [vmem:[%s11685_s3 + $0xb50] sm:$0xff] %vm4697_vm1, %v3949_v43  ;;  %v6793_v49 = vpop.f32.mrb[108].mxu1  ;;  %v2684_v50 = vadd.f32 %v9766_v12, %v6409_v48  ;;  %v2678_v52 = vpop.f32.mrb[109].mxu0  ;;  %6567 = vmatmul.mubr.msk.f32.gmra.mrb[214].mxu0 %vm535_vm0, %v229_v44  ;;  %v240_v43 = vld [vmem:[%s11683_s0 + $0x710] sm:$0xff] }
 0x1b5   :  { %v3964_v51 = vadd.f32 %v9766_v12, %v6793_v49  ;;  %v3958_v53 = vpop.f32.mrb[109].mxu1  ;;  %6951 = vmatmul.mubr.msk.f32.gmra.mrb[214].mxu1 %vm535_vm0, %v485_v45  ;;  %v2679_v54 = vadd.f32 %v9766_v12, %v2678_v52  ;;  %6569 = vmatprep.mubr.msk.f32.mxu0 %vm535_vm0, %v230_v46  ;;  %v496_v44 = vld [vmem:[%s11683_s0 + $0xf10] sm:$0xff] }
 0x1b6   :  { %v3959_v55 = vadd.f32 %v9766_v12, %v3958_v53  ;;  %6953 = vmatprep.mubr.msk.f32.mxu1 %vm535_vm0, %v486_v47  ;;  %4807 = vst.msk [vmem:[%s11685_s3 + $0x368] sm:$0xff] %vm4697_vm1, %v2684_v50  ;;  %v241_v53 = vld [vmem:[%s11683_s0 + $0x718] sm:$0xff] }
 0x1b7   :  { %5063 = vst.msk [vmem:[%s11685_s3 + $0xb68] sm:$0xff] %vm4697_vm1, %v3964_v51  ;;  %4806 = vst.msk [vmem:[%s11685_s3 + $0x360] sm:$0xff] %vm4697_vm1, %v2679_v54  ;;  %v6412_v60 = vpop.f32.mrb[110].mxu0  ;;  %v497_v54 = vld [vmem:[%s11683_s0 + $0xf18] sm:$0xff] }
 0x1b8   :  { %5062 = vst.msk [vmem:[%s11685_s3 + $0xb60] sm:$0xff] %vm4697_vm1, %v3959_v55  ;;  %v6796_v61 = vpop.f32.mrb[110].mxu1  ;;  %v2694_v62 = vadd.f32 %v9766_v12, %v6412_v60  ;;  %v2688_v0 = vpop.f32.mrb[111].mxu0  ;;  %6570 = vmatmul.mubr.msk.f32.gmra.mrb[216].mxu0 %vm535_vm0, %v231_v56  ;;  %v242_v55 = vld [vmem:[%s11683_s0 + $0x720] sm:$0xff] }
 0x1b9   :  { %v3974_v63 = vadd.f32 %v9766_v12, %v6796_v61  ;;  %v3968_v1 = vpop.f32.mrb[111].mxu1  ;;  %6954 = vmatmul.mubr.msk.f32.gmra.mrb[216].mxu1 %vm535_vm0, %v487_v57  ;;  %v2689_v2 = vadd.f32 %v9766_v12, %v2688_v0  ;;  %6572 = vmatprep.mubr.msk.f32.mxu0 %vm535_vm0, %v232_v58  ;;  %v498_v56 = vld [vmem:[%s11683_s0 + $0xf20] sm:$0xff] }
 0x1ba   :  { %v3969_v3 = vadd.f32 %v9766_v12, %v3968_v1  ;;  %6956 = vmatprep.mubr.msk.f32.mxu1 %vm535_vm0, %v488_v59  ;;  %4809 = vst.msk [vmem:[%s11685_s3 + $0x378] sm:$0xff] %vm4697_vm1, %v2694_v62  ;;  %v243_v1 = vld [vmem:[%s11683_s0 + $0x728] sm:$0xff] }
 0x1bb   :  { %5065 = vst.msk [vmem:[%s11685_s3 + $0xb78] sm:$0xff] %vm4697_vm1, %v3974_v63  ;;  %4808 = vst.msk [vmem:[%s11685_s3 + $0x370] sm:$0xff] %vm4697_vm1, %v2689_v2  ;;  %v6415_v8 = vpop.f32.mrb[112].mxu0  ;;  %v499_v2 = vld [vmem:[%s11683_s0 + $0xf28] sm:$0xff] }
 0x1bc   :  { %5064 = vst.msk [vmem:[%s11685_s3 + $0xb70] sm:$0xff] %vm4697_vm1, %v3969_v3  ;;  %v6799_v17 = vpop.f32.mrb[112].mxu1  ;;  %v2704_v9 = vadd.f32 %v9766_v12, %v6415_v8  ;;  %v2698_v11 = vpop.f32.mrb[113].mxu0  ;;  %6573 = vmatmul.mubr.msk.f32.gmra.mrb[218].mxu0 %vm535_vm0, %v233_v4  ;;  %v244_v3 = vld [vmem:[%s11683_s0 + $0x730] sm:$0xff] }
 0x1bd   :  { %v3984_v10 = vadd.f32 %v9766_v12, %v6799_v17  ;;  %v3978_v13 = vpop.f32.mrb[113].mxu1  ;;  %6957 = vmatmul.mubr.msk.f32.gmra.mrb[218].mxu1 %vm535_vm0, %v489_v5  ;;  %v2699_v14 = vadd.f32 %v9766_v12, %v2698_v11  ;;  %6575 = vmatprep.mubr.msk.f32.mxu0 %vm535_vm0, %v234_v6  ;;  %v500_v4 = vld [vmem:[%s11683_s0 + $0xf30] sm:$0xff] }
 0x1be   :  { %v3979_v15 = vadd.f32 %v9766_v12, %v3978_v13  ;;  %6959 = vmatprep.mubr.msk.f32.mxu1 %vm535_vm0, %v490_v7  ;;  %4811 = vst.msk [vmem:[%s11685_s3 + $0x388] sm:$0xff] %vm4697_vm1, %v2704_v9  ;;  %v245_v13 = vld [vmem:[%s11683_s0 + $0x738] sm:$0xff] }
 0x1bf   :  { %5067 = vst.msk [vmem:[%s11685_s3 + $0xb88] sm:$0xff] %vm4697_vm1, %v3984_v10  ;;  %4810 = vst.msk [vmem:[%s11685_s3 + $0x380] sm:$0xff] %vm4697_vm1, %v2699_v14  ;;  %v6418_v21 = vpop.f32.mrb[114].mxu0  ;;  %v501_v14 = vld [vmem:[%s11683_s0 + $0xf38] sm:$0xff] }
 0x1c0   :  { %5066 = vst.msk [vmem:[%s11685_s3 + $0xb80] sm:$0xff] %vm4697_vm1, %v3979_v15  ;;  %v6802_v22 = vpop.f32.mrb[114].mxu1  ;;  %v2714_v25 = vadd.f32 %v9766_v12, %v6418_v21  ;;  %v2708_v24 = vpop.f32.mrb[115].mxu0  ;;  %6576 = vmatmul.mubr.msk.f32.gmra.mrb[220].mxu0 %vm535_vm0, %v235_v16  ;;  %v246_v15 = vld [vmem:[%s11683_s0 + $0x740] sm:$0xff] }
 0x1c1   :  { %v3994_v23 = vadd.f32 %v9766_v12, %v6802_v22  ;;  %v3988_v26 = vpop.f32.mrb[115].mxu1  ;;  %6960 = vmatmul.mubr.msk.f32.gmra.mrb[220].mxu1 %vm535_vm0, %v491_v18  ;;  %v2709_v27 = vadd.f32 %v9766_v12, %v2708_v24  ;;  %6578 = vmatprep.mubr.msk.f32.mxu0 %vm535_vm0, %v236_v19  ;;  %v502_v16 = vld [vmem:[%s11683_s0 + $0xf40] sm:$0xff] }
 0x1c2   :  { %v3989_v28 = vadd.f32 %v9766_v12, %v3988_v26  ;;  %6962 = vmatprep.mubr.msk.f32.mxu1 %vm535_vm0, %v492_v20  ;;  %4813 = vst.msk [vmem:[%s11685_s3 + $0x398] sm:$0xff] %vm4697_vm1, %v2714_v25  ;;  %v247_v26 = vld [vmem:[%s11683_s0 + $0x748] sm:$0xff] }
 0x1c3   :  { %5069 = vst.msk [vmem:[%s11685_s3 + $0xb98] sm:$0xff] %vm4697_vm1, %v3994_v23  ;;  %4812 = vst.msk [vmem:[%s11685_s3 + $0x390] sm:$0xff] %vm4697_vm1, %v2709_v27  ;;  %v6421_v33 = vpop.f32.mrb[116].mxu0  ;;  %v503_v27 = vld [vmem:[%s11683_s0 + $0xf48] sm:$0xff] }
 0x1c4   :  { %5068 = vst.msk [vmem:[%s11685_s3 + $0xb90] sm:$0xff] %vm4697_vm1, %v3989_v28  ;;  %v6805_v34 = vpop.f32.mrb[116].mxu1  ;;  %v2724_v35 = vadd.f32 %v9766_v12, %v6421_v33  ;;  %v2718_v37 = vpop.f32.mrb[117].mxu0  ;;  %6579 = vmatmul.mubr.msk.f32.gmra.mrb[222].mxu0 %vm535_vm0, %v237_v29  ;;  %v248_v28 = vld [vmem:[%s11683_s0 + $0x750] sm:$0xff] }
 0x1c5   :  { %v4004_v36 = vadd.f32 %v9766_v12, %v6805_v34  ;;  %v3998_v38 = vpop.f32.mrb[117].mxu1  ;;  %6963 = vmatmul.mubr.msk.f32.gmra.mrb[222].mxu1 %vm535_vm0, %v493_v30  ;;  %v2719_v39 = vadd.f32 %v9766_v12, %v2718_v37  ;;  %6581 = vmatprep.mubr.msk.f32.mxu0 %vm535_vm0, %v238_v31  ;;  %v504_v29 = vld [vmem:[%s11683_s0 + $0xf50] sm:$0xff] }
 0x1c6   :  { %v3999_v40 = vadd.f32 %v9766_v12, %v3998_v38  ;;  %6965 = vmatprep.mubr.msk.f32.mxu1 %vm535_vm0, %v494_v32  ;;  %4815 = vst.msk [vmem:[%s11685_s3 + $0x3a8] sm:$0xff] %vm4697_vm1, %v2724_v35  ;;  %v249_v38 = vld [vmem:[%s11683_s0 + $0x758] sm:$0xff] }
 0x1c7   :  { %5071 = vst.msk [vmem:[%s11685_s3 + $0xba8] sm:$0xff] %vm4697_vm1, %v4004_v36  ;;  %4814 = vst.msk [vmem:[%s11685_s3 + $0x3a0] sm:$0xff] %vm4697_vm1, %v2719_v39  ;;  %v6424_v45 = vpop.f32.mrb[118].mxu0  ;;  %v505_v39 = vld [vmem:[%s11683_s0 + $0xf58] sm:$0xff] }
 0x1c8   :  { %5070 = vst.msk [vmem:[%s11685_s3 + $0xba0] sm:$0xff] %vm4697_vm1, %v3999_v40  ;;  %v6808_v46 = vpop.f32.mrb[118].mxu1  ;;  %v2734_v47 = vadd.f32 %v9766_v12, %v6424_v45  ;;  %v2728_v49 = vpop.f32.mrb[119].mxu0  ;;  %6582 = vmatmul.mubr.msk.f32.gmra.mrb[224].mxu0 %vm535_vm0, %v239_v41  ;;  %v250_v40 = vld [vmem:[%s11683_s0 + $0x760] sm:$0xff] }
 0x1c9   :  { %v4014_v48 = vadd.f32 %v9766_v12, %v6808_v46  ;;  %v4008_v50 = vpop.f32.mrb[119].mxu1  ;;  %6966 = vmatmul.mubr.msk.f32.gmra.mrb[224].mxu1 %vm535_vm0, %v495_v42  ;;  %v2729_v51 = vadd.f32 %v9766_v12, %v2728_v49  ;;  %6584 = vmatprep.mubr.msk.f32.mxu0 %vm535_vm0, %v240_v43  ;;  %v506_v41 = vld [vmem:[%s11683_s0 + $0xf60] sm:$0xff] }
 0x1ca   :  { %v4009_v52 = vadd.f32 %v9766_v12, %v4008_v50  ;;  %6968 = vmatprep.mubr.msk.f32.mxu1 %vm535_vm0, %v496_v44  ;;  %4817 = vst.msk [vmem:[%s11685_s3 + $0x3b8] sm:$0xff] %vm4697_vm1, %v2734_v47  ;;  %v251_v50 = vld [vmem:[%s11683_s0 + $0x768] sm:$0xff] }
 0x1cb   :  { %5073 = vst.msk [vmem:[%s11685_s3 + $0xbb8] sm:$0xff] %vm4697_vm1, %v4014_v48  ;;  %4816 = vst.msk [vmem:[%s11685_s3 + $0x3b0] sm:$0xff] %vm4697_vm1, %v2729_v51  ;;  %v6427_v57 = vpop.f32.mrb[120].mxu0  ;;  %v507_v51 = vld [vmem:[%s11683_s0 + $0xf68] sm:$0xff] }
 0x1cc   :  { %5072 = vst.msk [vmem:[%s11685_s3 + $0xbb0] sm:$0xff] %vm4697_vm1, %v4009_v52  ;;  %v6811_v58 = vpop.f32.mrb[120].mxu1  ;;  %v2744_v59 = vadd.f32 %v9766_v12, %v6427_v57  ;;  %v2738_v61 = vpop.f32.mrb[121].mxu0  ;;  %6585 = vmatmul.mubr.msk.f32.gmra.mrb[226].mxu0 %vm535_vm0, %v241_v53  ;;  %v252_v52 = vld [vmem:[%s11683_s0 + $0x770] sm:$0xff] }
 0x1cd   :  { %v4024_v60 = vadd.f32 %v9766_v12, %v6811_v58  ;;  %v4018_v62 = vpop.f32.mrb[121].mxu1  ;;  %6969 = vmatmul.mubr.msk.f32.gmra.mrb[226].mxu1 %vm535_vm0, %v497_v54  ;;  %v2739_v63 = vadd.f32 %v9766_v12, %v2738_v61  ;;  %6587 = vmatprep.mubr.msk.f32.mxu0 %vm535_vm0, %v242_v55  ;;  %v508_v53 = vld [vmem:[%s11683_s0 + $0xf70] sm:$0xff] }
 0x1ce   :  { %v4019_v0 = vadd.f32 %v9766_v12, %v4018_v62  ;;  %6971 = vmatprep.mubr.msk.f32.mxu1 %vm535_vm0, %v498_v56  ;;  %4819 = vst.msk [vmem:[%s11685_s3 + $0x3c8] sm:$0xff] %vm4697_vm1, %v2744_v59  ;;  %v253_v62 = vld [vmem:[%s11683_s0 + $0x778] sm:$0xff] }
 0x1cf   :  { %5075 = vst.msk [vmem:[%s11685_s3 + $0xbc8] sm:$0xff] %vm4697_vm1, %v4024_v60  ;;  %4818 = vst.msk [vmem:[%s11685_s3 + $0x3c0] sm:$0xff] %vm4697_vm1, %v2739_v63  ;;  %v6430_v5 = vpop.f32.mrb[122].mxu0  ;;  %v509_v63 = vld [vmem:[%s11683_s0 + $0xf78] sm:$0xff] }
 0x1d0   :  { %5074 = vst.msk [vmem:[%s11685_s3 + $0xbc0] sm:$0xff] %vm4697_vm1, %v4019_v0  ;;  %v6814_v6 = vpop.f32.mrb[122].mxu1  ;;  %v2754_v7 = vadd.f32 %v9766_v12, %v6430_v5  ;;  %v2748_v17 = vpop.f32.mrb[123].mxu0  ;;  %6588 = vmatmul.mubr.msk.f32.gmra.mrb[228].mxu0 %vm535_vm0, %v243_v1  ;;  %v254_v0 = vld [vmem:[%s11683_s0 + $0x780] sm:$0xff] }
 0x1d1   :  { %v4034_v8 = vadd.f32 %v9766_v12, %v6814_v6  ;;  %v4028_v9 = vpop.f32.mrb[123].mxu1  ;;  %6972 = vmatmul.mubr.msk.f32.gmra.mrb[228].mxu1 %vm535_vm0, %v499_v2  ;;  %v2749_v10 = vadd.f32 %v9766_v12, %v2748_v17  ;;  %6590 = vmatprep.mubr.msk.f32.mxu0 %vm535_vm0, %v244_v3  ;;  %v510_v1 = vld [vmem:[%s11683_s0 + $0xf80] sm:$0xff] }
 0x1d2   :  { %v4029_v11 = vadd.f32 %v9766_v12, %v4028_v9  ;;  %6974 = vmatprep.mubr.msk.f32.mxu1 %vm535_vm0, %v500_v4  ;;  %4821 = vst.msk [vmem:[%s11685_s3 + $0x3d8] sm:$0xff] %vm4697_vm1, %v2754_v7  ;;  %v255_v9 = vld [vmem:[%s11683_s0 + $0x788] sm:$0xff] }
 0x1d3   :  { %5077 = vst.msk [vmem:[%s11685_s3 + $0xbd8] sm:$0xff] %vm4697_vm1, %v4034_v8  ;;  %4820 = vst.msk [vmem:[%s11685_s3 + $0x3d0] sm:$0xff] %vm4697_vm1, %v2749_v10  ;;  %v6433_v18 = vpop.f32.mrb[124].mxu0  ;;  %v511_v10 = vld [vmem:[%s11683_s0 + $0xf88] sm:$0xff] }
 0x1d4   :  { %5076 = vst.msk [vmem:[%s11685_s3 + $0xbd0] sm:$0xff] %vm4697_vm1, %v4029_v11  ;;  %v6817_v19 = vpop.f32.mrb[124].mxu1  ;;  %v2764_v20 = vadd.f32 %v9766_v12, %v6433_v18  ;;  %v2758_v22 = vpop.f32.mrb[125].mxu0  ;;  %6591 = vmatmul.mubr.msk.f32.gmra.mrb[230].mxu0 %vm535_vm0, %v245_v13  ;;  %v256_v11 = vld [vmem:[%s11683_s0 + $0x790] sm:$0xff] }
 0x1d5   :  { %v4044_v21 = vadd.f32 %v9766_v12, %v6817_v19  ;;  %v4038_v25 = vpop.f32.mrb[125].mxu1  ;;  %6975 = vmatmul.mubr.msk.f32.gmra.mrb[230].mxu1 %vm535_vm0, %v501_v14  ;;  %v2759_v23 = vadd.f32 %v9766_v12, %v2758_v22  ;;  %6593 = vmatprep.mubr.msk.f32.mxu0 %vm535_vm0, %v246_v15  ;;  %v512_v13 = vld [vmem:[%s11683_s0 + $0xf90] sm:$0xff] }
 0x1d6   :  { %v4039_v24 = vadd.f32 %v9766_v12, %v4038_v25  ;;  %6977 = vmatprep.mubr.msk.f32.mxu1 %vm535_vm0, %v502_v16  ;;  %4823 = vst.msk [vmem:[%s11685_s3 + $0x3e8] sm:$0xff] %vm4697_vm1, %v2764_v20  ;;  %v257_v25 = vld [vmem:[%s11683_s0 + $0x798] sm:$0xff] }
 0x1d7   :  { %5079 = vst.msk [vmem:[%s11685_s3 + $0xbe8] sm:$0xff] %vm4697_vm1, %v4044_v21  ;;  %4822 = vst.msk [vmem:[%s11685_s3 + $0x3e0] sm:$0xff] %vm4697_vm1, %v2759_v23  ;;  %v6436_v30 = vpop.f32.mrb[126].mxu0  ;;  %v513_v23 = vld [vmem:[%s11683_s0 + $0xf98] sm:$0xff] }
 0x1d8   :  { %5078 = vst.msk [vmem:[%s11685_s3 + $0xbe0] sm:$0xff] %vm4697_vm1, %v4039_v24  ;;  %v6820_v31 = vpop.f32.mrb[126].mxu1  ;;  %v2774_v32 = vadd.f32 %v9766_v12, %v6436_v30  ;;  %v2768_v34 = vpop.f32.mrb[127].mxu0  ;;  %6594 = vmatmul.mubr.msk.f32.gmra.mrb[232].mxu0 %vm535_vm0, %v247_v26  ;;  %v258_v24 = vld [vmem:[%s11683_s0 + $0x7a0] sm:$0xff] }
 0x1d9   :  { %v4054_v33 = vadd.f32 %v9766_v12, %v6820_v31  ;;  %v4048_v35 = vpop.f32.mrb[127].mxu1  ;;  %6978 = vmatmul.mubr.msk.f32.gmra.mrb[232].mxu1 %vm535_vm0, %v503_v27  ;;  %v2769_v36 = vadd.f32 %v9766_v12, %v2768_v34  ;;  %6596 = vmatprep.mubr.msk.f32.mxu0 %vm535_vm0, %v248_v28  ;;  %v514_v26 = vld [vmem:[%s11683_s0 + $0xfa0] sm:$0xff] }
 0x1da   :  { %v4049_v37 = vadd.f32 %v9766_v12, %v4048_v35  ;;  %6980 = vmatprep.mubr.msk.f32.mxu1 %vm535_vm0, %v504_v29  ;;  %4825 = vst.msk [vmem:[%s11685_s3 + $0x3f8] sm:$0xff] %vm4697_vm1, %v2774_v32  ;;  %v259_v35 = vld [vmem:[%s11683_s0 + $0x7a8] sm:$0xff] }
 0x1db   :  { %5081 = vst.msk [vmem:[%s11685_s3 + $0xbf8] sm:$0xff] %vm4697_vm1, %v4054_v33  ;;  %4824 = vst.msk [vmem:[%s11685_s3 + $0x3f0] sm:$0xff] %vm4697_vm1, %v2769_v36  ;;  %v6439_v42 = vpop.f32.mrb[128].mxu0  ;;  %v515_v36 = vld [vmem:[%s11683_s0 + $0xfa8] sm:$0xff] }
 0x1dc   :  { %5080 = vst.msk [vmem:[%s11685_s3 + $0xbf0] sm:$0xff] %vm4697_vm1, %v4049_v37  ;;  %v6823_v43 = vpop.f32.mrb[128].mxu1  ;;  %v2784_v44 = vadd.f32 %v9766_v12, %v6439_v42  ;;  %v2778_v46 = vpop.f32.mrb[129].mxu0  ;;  %6597 = vmatmul.mubr.msk.f32.gmra.mrb[234].mxu0 %vm535_vm0, %v249_v38  ;;  %v260_v37 = vld [vmem:[%s11683_s0 + $0x7b0] sm:$0xff] }
 0x1dd   :  { %v4064_v45 = vadd.f32 %v9766_v12, %v6823_v43  ;;  %v4058_v47 = vpop.f32.mrb[129].mxu1  ;;  %6981 = vmatmul.mubr.msk.f32.gmra.mrb[234].mxu1 %vm535_vm0, %v505_v39  ;;  %v2779_v48 = vadd.f32 %v9766_v12, %v2778_v46  ;;  %6599 = vmatprep.mubr.msk.f32.mxu0 %vm535_vm0, %v250_v40  ;;  %v516_v38 = vld [vmem:[%s11683_s0 + $0xfb0] sm:$0xff] }
 0x1de   :  { %v4059_v49 = vadd.f32 %v9766_v12, %v4058_v47  ;;  %6983 = vmatprep.mubr.msk.f32.mxu1 %vm535_vm0, %v506_v41  ;;  %4827 = vst.msk [vmem:[%s11685_s3 + $0x408] sm:$0xff] %vm4697_vm1, %v2784_v44  ;;  %v261_v47 = vld [vmem:[%s11683_s0 + $0x7b8] sm:$0xff] }
 0x1df   :  { %5083 = vst.msk [vmem:[%s11685_s3 + $0xc08] sm:$0xff] %vm4697_vm1, %v4064_v45  ;;  %4826 = vst.msk [vmem:[%s11685_s3 + $0x400] sm:$0xff] %vm4697_vm1, %v2779_v48  ;;  %v6442_v54 = vpop.f32.mrb[130].mxu0  ;;  %v517_v48 = vld [vmem:[%s11683_s0 + $0xfb8] sm:$0xff] }
 0x1e0   :  { %5082 = vst.msk [vmem:[%s11685_s3 + $0xc00] sm:$0xff] %vm4697_vm1, %v4059_v49  ;;  %v6826_v55 = vpop.f32.mrb[130].mxu1  ;;  %v2794_v56 = vadd.f32 %v9766_v12, %v6442_v54  ;;  %v2788_v58 = vpop.f32.mrb[131].mxu0  ;;  %6600 = vmatmul.mubr.msk.f32.gmra.mrb[236].mxu0 %vm535_vm0, %v251_v50  ;;  %v262_v49 = vld [vmem:[%s11683_s0 + $0x7c0] sm:$0xff] }
 0x1e1   :  { %v4074_v57 = vadd.f32 %v9766_v12, %v6826_v55  ;;  %v4068_v59 = vpop.f32.mrb[131].mxu1  ;;  %6984 = vmatmul.mubr.msk.f32.gmra.mrb[236].mxu1 %vm535_vm0, %v507_v51  ;;  %v2789_v60 = vadd.f32 %v9766_v12, %v2788_v58  ;;  %6602 = vmatprep.mubr.msk.f32.mxu0 %vm535_vm0, %v252_v52  ;;  %v518_v50 = vld [vmem:[%s11683_s0 + $0xfc0] sm:$0xff] }
 0x1e2   :  { %v4069_v61 = vadd.f32 %v9766_v12, %v4068_v59  ;;  %6986 = vmatprep.mubr.msk.f32.mxu1 %vm535_vm0, %v508_v53  ;;  %4829 = vst.msk [vmem:[%s11685_s3 + $0x418] sm:$0xff] %vm4697_vm1, %v2794_v56  ;;  %v263_v59 = vld [vmem:[%s11683_s0 + $0x7c8] sm:$0xff] }
 0x1e3   :  { %5085 = vst.msk [vmem:[%s11685_s3 + $0xc18] sm:$0xff] %vm4697_vm1, %v4074_v57  ;;  %4828 = vst.msk [vmem:[%s11685_s3 + $0x410] sm:$0xff] %vm4697_vm1, %v2789_v60  ;;  %v6445_v2 = vpop.f32.mrb[132].mxu0  ;;  %v519_v60 = vld [vmem:[%s11683_s0 + $0xfc8] sm:$0xff] }
 0x1e4   :  { %5084 = vst.msk [vmem:[%s11685_s3 + $0xc10] sm:$0xff] %vm4697_vm1, %v4069_v61  ;;  %v6829_v3 = vpop.f32.mrb[132].mxu1  ;;  %v2804_v4 = vadd.f32 %v9766_v12, %v6445_v2  ;;  %v2798_v6 = vpop.f32.mrb[133].mxu0  ;;  %6603 = vmatmul.mubr.msk.f32.gmra.mrb[238].mxu0 %vm535_vm0, %v253_v62  ;;  %v264_v61 = vld [vmem:[%s11683_s0 + $0x7d0] sm:$0xff] }
 0x1e5   :  { %v4084_v5 = vadd.f32 %v9766_v12, %v6829_v3  ;;  %v4078_v7 = vpop.f32.mrb[133].mxu1  ;;  %6987 = vmatmul.mubr.msk.f32.gmra.mrb[238].mxu1 %vm535_vm0, %v509_v63  ;;  %v2799_v8 = vadd.f32 %v9766_v12, %v2798_v6  ;;  %6605 = vmatprep.mubr.msk.f32.mxu0 %vm535_vm0, %v254_v0  ;;  %v520_v62 = vld [vmem:[%s11683_s0 + $0xfd0] sm:$0xff] }
 0x1e6   :  { %v4079_v17 = vadd.f32 %v9766_v12, %v4078_v7  ;;  %6989 = vmatprep.mubr.msk.f32.mxu1 %vm535_vm0, %v510_v1  ;;  %4831 = vst.msk [vmem:[%s11685_s3 + $0x428] sm:$0xff] %vm4697_vm1, %v2804_v4  ;;  %v265_v7 = vld [vmem:[%s11683_s0 + $0x7d8] sm:$0xff] }
 0x1e7   :  { %5087 = vst.msk [vmem:[%s11685_s3 + $0xc28] sm:$0xff] %vm4697_vm1, %v4084_v5  ;;  %4830 = vst.msk [vmem:[%s11685_s3 + $0x420] sm:$0xff] %vm4697_vm1, %v2799_v8  ;;  %v6448_v14 = vpop.f32.mrb[134].mxu0  ;;  %v521_v8 = vld [vmem:[%s11683_s0 + $0xfd8] sm:$0xff] }
 0x1e8   :  { %5086 = vst.msk [vmem:[%s11685_s3 + $0xc20] sm:$0xff] %vm4697_vm1, %v4079_v17  ;;  %v6832_v15 = vpop.f32.mrb[134].mxu1  ;;  %v2814_v16 = vadd.f32 %v9766_v12, %v6448_v14  ;;  %v2808_v19 = vpop.f32.mrb[135].mxu0  ;;  %6606 = vmatmul.mubr.msk.f32.gmra.mrb[240].mxu0 %vm535_vm0, %v255_v9  ;;  %v266_v17 = vld [vmem:[%s11683_s0 + $0x7e0] sm:$0xff] }
 0x1e9   :  { %v4094_v18 = vadd.f32 %v9766_v12, %v6832_v15  ;;  %v4088_v20 = vpop.f32.mrb[135].mxu1  ;;  %6990 = vmatmul.mubr.msk.f32.gmra.mrb[240].mxu1 %vm535_vm0, %v511_v10  ;;  %v2809_v21 = vadd.f32 %v9766_v12, %v2808_v19  ;;  %6608 = vmatprep.mubr.msk.f32.mxu0 %vm535_vm0, %v256_v11  ;;  %v522_v9 = vld [vmem:[%s11683_s0 + $0xfe0] sm:$0xff] }
 0x1ea   :  { %v4089_v22 = vadd.f32 %v9766_v12, %v4088_v20  ;;  %6992 = vmatprep.mubr.msk.f32.mxu1 %vm535_vm0, %v512_v13  ;;  %4833 = vst.msk [vmem:[%s11685_s3 + $0x438] sm:$0xff] %vm4697_vm1, %v2814_v16  ;;  %v267_v20 = vld [vmem:[%s11683_s0 + $0x7e8] sm:$0xff] }
 0x1eb   :  { %5089 = vst.msk [vmem:[%s11685_s3 + $0xc38] sm:$0xff] %vm4697_vm1, %v4094_v18  ;;  %4832 = vst.msk [vmem:[%s11685_s3 + $0x430] sm:$0xff] %vm4697_vm1, %v2809_v21  ;;  %v6451_v27 = vpop.f32.mrb[136].mxu0  ;;  %v523_v21 = vld [vmem:[%s11683_s0 + $0xfe8] sm:$0xff] }
 0x1ec   :  { %5088 = vst.msk [vmem:[%s11685_s3 + $0xc30] sm:$0xff] %vm4697_vm1, %v4089_v22  ;;  %v6835_v28 = vpop.f32.mrb[136].mxu1  ;;  %v2824_v29 = vadd.f32 %v9766_v12, %v6451_v27  ;;  %v2818_v31 = vpop.f32.mrb[137].mxu0  ;;  %6609 = vmatmul.mubr.msk.f32.gmra.mrb[242].mxu0 %vm535_vm0, %v257_v25  ;;  %v268_v22 = vld [vmem:[%s11683_s0 + $0x7f0] sm:$0xff] }
 0x1ed   :  { %v4104_v30 = vadd.f32 %v9766_v12, %v6835_v28  ;;  %v4098_v32 = vpop.f32.mrb[137].mxu1  ;;  %6993 = vmatmul.mubr.msk.f32.gmra.mrb[242].mxu1 %vm535_vm0, %v513_v23  ;;  %v2819_v33 = vadd.f32 %v9766_v12, %v2818_v31  ;;  %6611 = vmatprep.mubr.msk.f32.mxu0 %vm535_vm0, %v258_v24  ;;  %v524_v25 = vld [vmem:[%s11683_s0 + $0xff0] sm:$0xff] }
 0x1ee   :  { %v4099_v34 = vadd.f32 %v9766_v12, %v4098_v32  ;;  %6995 = vmatprep.mubr.msk.f32.mxu1 %vm535_vm0, %v514_v26  ;;  %4835 = vst.msk [vmem:[%s11685_s3 + $0x448] sm:$0xff] %vm4697_vm1, %v2824_v29  ;;  %v269_v32 = vld [vmem:[%s11683_s0 + $0x7f8] sm:$0xff] }
 0x1ef   :  { %5091 = vst.msk [vmem:[%s11685_s3 + $0xc48] sm:$0xff] %vm4697_vm1, %v4104_v30  ;;  %4834 = vst.msk [vmem:[%s11685_s3 + $0x440] sm:$0xff] %vm4697_vm1, %v2819_v33  ;;  %v6454_v39 = vpop.f32.mrb[138].mxu0  ;;  %v525_v33 = vld [vmem:[%s11683_s0 + $0xff8] sm:$0xff] }
 0x1f0   :  { %5090 = vst.msk [vmem:[%s11685_s3 + $0xc40] sm:$0xff] %vm4697_vm1, %v4099_v34  ;;  %v6838_v40 = vpop.f32.mrb[138].mxu1  ;;  %v2834_v41 = vadd.f32 %v9766_v12, %v6454_v39  ;;  %v2828_v43 = vpop.f32.mrb[139].mxu0  ;;  %6612 = vmatmul.mubr.msk.f32.gmra.mrb[244].mxu0 %vm535_vm0, %v259_v35 }
 0x1f1   :  { %v4114_v42 = vadd.f32 %v9766_v12, %v6838_v40  ;;  %v4108_v44 = vpop.f32.mrb[139].mxu1  ;;  %6996 = vmatmul.mubr.msk.f32.gmra.mrb[244].mxu1 %vm535_vm0, %v515_v36  ;;  %v2829_v45 = vadd.f32 %v9766_v12, %v2828_v43  ;;  %6614 = vmatprep.mubr.msk.f32.mxu0 %vm535_vm0, %v260_v37 }
 0x1f2   :  { %v4109_v46 = vadd.f32 %v9766_v12, %v4108_v44  ;;  %6998 = vmatprep.mubr.msk.f32.mxu1 %vm535_vm0, %v516_v38  ;;  %4837 = vst.msk [vmem:[%s11685_s3 + $0x458] sm:$0xff] %vm4697_vm1, %v2834_v41 }
 0x1f3   :  { %5093 = vst.msk [vmem:[%s11685_s3 + $0xc58] sm:$0xff] %vm4697_vm1, %v4114_v42  ;;  %4836 = vst.msk [vmem:[%s11685_s3 + $0x450] sm:$0xff] %vm4697_vm1, %v2829_v45  ;;  %v6457_v51 = vpop.f32.mrb[140].mxu0 }
 0x1f4   :  { %5092 = vst.msk [vmem:[%s11685_s3 + $0xc50] sm:$0xff] %vm4697_vm1, %v4109_v46  ;;  %v6841_v52 = vpop.f32.mrb[140].mxu1  ;;  %v2844_v53 = vadd.f32 %v9766_v12, %v6457_v51  ;;  %v2838_v55 = vpop.f32.mrb[141].mxu0  ;;  %6615 = vmatmul.mubr.msk.f32.gmra.mrb[246].mxu0 %vm535_vm0, %v261_v47 }
 0x1f5   :  { %v4124_v54 = vadd.f32 %v9766_v12, %v6841_v52  ;;  %v4118_v56 = vpop.f32.mrb[141].mxu1  ;;  %6999 = vmatmul.mubr.msk.f32.gmra.mrb[246].mxu1 %vm535_vm0, %v517_v48  ;;  %v2839_v57 = vadd.f32 %v9766_v12, %v2838_v55  ;;  %6617 = vmatprep.mubr.msk.f32.mxu0 %vm535_vm0, %v262_v49 }
 0x1f6   :  { %v4119_v58 = vadd.f32 %v9766_v12, %v4118_v56  ;;  %7001 = vmatprep.mubr.msk.f32.mxu1 %vm535_vm0, %v518_v50  ;;  %4839 = vst.msk [vmem:[%s11685_s3 + $0x468] sm:$0xff] %vm4697_vm1, %v2844_v53 }
 0x1f7   :  { %5095 = vst.msk [vmem:[%s11685_s3 + $0xc68] sm:$0xff] %vm4697_vm1, %v4124_v54  ;;  %4838 = vst.msk [vmem:[%s11685_s3 + $0x460] sm:$0xff] %vm4697_vm1, %v2839_v57  ;;  %v6460_v63 = vpop.f32.mrb[142].mxu0 }
 0x1f8   :  { %5094 = vst.msk [vmem:[%s11685_s3 + $0xc60] sm:$0xff] %vm4697_vm1, %v4119_v58  ;;  %v6844_v0 = vpop.f32.mrb[142].mxu1  ;;  %v2854_v1 = vadd.f32 %v9766_v12, %v6460_v63  ;;  %v2848_v3 = vpop.f32.mrb[143].mxu0  ;;  %6618 = vmatmul.mubr.msk.f32.gmra.mrb[248].mxu0 %vm535_vm0, %v263_v59 }
 0x1f9   :  { %v4134_v2 = vadd.f32 %v9766_v12, %v6844_v0  ;;  %v4128_v4 = vpop.f32.mrb[143].mxu1  ;;  %7002 = vmatmul.mubr.msk.f32.gmra.mrb[248].mxu1 %vm535_vm0, %v519_v60  ;;  %v2849_v5 = vadd.f32 %v9766_v12, %v2848_v3  ;;  %6620 = vmatprep.mubr.msk.f32.mxu0 %vm535_vm0, %v264_v61 }
 0x1fa   :  { %v4129_v6 = vadd.f32 %v9766_v12, %v4128_v4  ;;  %7004 = vmatprep.mubr.msk.f32.mxu1 %vm535_vm0, %v520_v62  ;;  %4841 = vst.msk [vmem:[%s11685_s3 + $0x478] sm:$0xff] %vm4697_vm1, %v2854_v1 }
 0x1fb   :  { %5097 = vst.msk [vmem:[%s11685_s3 + $0xc78] sm:$0xff] %vm4697_vm1, %v4134_v2  ;;  %4840 = vst.msk [vmem:[%s11685_s3 + $0x470] sm:$0xff] %vm4697_vm1, %v2849_v5  ;;  %v6463_v10 = vpop.f32.mrb[144].mxu0 }
 0x1fc   :  { %5096 = vst.msk [vmem:[%s11685_s3 + $0xc70] sm:$0xff] %vm4697_vm1, %v4129_v6  ;;  %v6847_v11 = vpop.f32.mrb[144].mxu1  ;;  %v2864_v13 = vadd.f32 %v9766_v12, %v6463_v10  ;;  %v2858_v15 = vpop.f32.mrb[145].mxu0  ;;  %6621 = vmatmul.mubr.msk.f32.gmra.mrb[250].mxu0 %vm535_vm0, %v265_v7 }
 0x1fd   :  { %v4144_v14 = vadd.f32 %v9766_v12, %v6847_v11  ;;  %v4138_v16 = vpop.f32.mrb[145].mxu1  ;;  %7005 = vmatmul.mubr.msk.f32.gmra.mrb[250].mxu1 %vm535_vm0, %v521_v8  ;;  %v2859_v18 = vadd.f32 %v9766_v12, %v2858_v15  ;;  %6623 = vmatprep.mubr.msk.f32.mxu0 %vm535_vm0, %v266_v17  ;;  %v10677_v8 = vld [vmem:[%s11684_s2] ss:$0 sm:$0xff] }
 0x1fe   :  { %v4139_v19 = vadd.f32 %v9766_v12, %v4138_v16  ;;  %7007 = vmatprep.mubr.msk.f32.mxu1 %vm535_vm0, %v522_v9  ;;  %4843 = vst.msk [vmem:[%s11685_s3 + $0x488] sm:$0xff] %vm4697_vm1, %v2864_v13 }
 0x1ff   :  { %5099 = vst.msk [vmem:[%s11685_s3 + $0xc88] sm:$0xff] %vm4697_vm1, %v4144_v14  ;;  %4842 = vst.msk [vmem:[%s11685_s3 + $0x480] sm:$0xff] %vm4697_vm1, %v2859_v18  ;;  %v6466_v23 = vpop.f32.mrb[146].mxu0 }
 0x200   :  { %5098 = vst.msk [vmem:[%s11685_s3 + $0xc80] sm:$0xff] %vm4697_vm1, %v4139_v19  ;;  %v6850_v24 = vpop.f32.mrb[146].mxu1  ;;  %v2874_v26 = vadd.f32 %v9766_v12, %v6466_v23  ;;  %v2868_v28 = vpop.f32.mrb[147].mxu0  ;;  %6624 = vmatmul.mubr.msk.f32.gmra.mrb[252].mxu0 %vm535_vm0, %v267_v20 }
 0x201   :  { %v4154_v27 = vadd.f32 %v9766_v12, %v6850_v24  ;;  %v4148_v29 = vpop.f32.mrb[147].mxu1  ;;  %7008 = vmatmul.mubr.msk.f32.gmra.mrb[252].mxu1 %vm535_vm0, %v523_v21  ;;  %v2869_v30 = vadd.f32 %v9766_v12, %v2868_v28  ;;  %6626 = vmatprep.mubr.msk.f32.mxu0 %vm535_vm0, %v268_v22 }
 0x202   :  { %v4149_v31 = vadd.f32 %v9766_v12, %v4148_v29  ;;  %7010 = vmatprep.mubr.msk.f32.mxu1 %vm535_vm0, %v524_v25  ;;  %4845 = vst.msk [vmem:[%s11685_s3 + $0x498] sm:$0xff] %vm4697_vm1, %v2874_v26 }
 0x203   :  { %5101 = vst.msk [vmem:[%s11685_s3 + $0xc98] sm:$0xff] %vm4697_vm1, %v4154_v27  ;;  %4844 = vst.msk [vmem:[%s11685_s3 + $0x490] sm:$0xff] %vm4697_vm1, %v2869_v30  ;;  %v6469_v34 = vpop.f32.mrb[148].mxu0 }
 0x204   :  { %5100 = vst.msk [vmem:[%s11685_s3 + $0xc90] sm:$0xff] %vm4697_vm1, %v4149_v31  ;;  %v6853_v35 = vpop.f32.mrb[148].mxu1  ;;  %v2884_v36 = vadd.f32 %v9766_v12, %v6469_v34  ;;  %v2878_v38 = vpop.f32.mrb[149].mxu0  ;;  %6627 = vmatmul.mubr.msk.f32.gmra.mrb[254].mxu0 %vm535_vm0, %v269_v32 }
 0x205   :  { %v4164_v37 = vadd.f32 %v9766_v12, %v6853_v35  ;;  %v4158_v39 = vpop.f32.mrb[149].mxu1  ;;  %7011 = vmatmul.mubr.msk.f32.gmra.mrb[254].mxu1 %vm535_vm0, %v525_v33  ;;  %v2879_v40 = vadd.f32 %v9766_v12, %v2878_v38 }
 0x206   :  { %v4159_v41 = vadd.f32 %v9766_v12, %v4158_v39  ;;  %4847 = vst.msk [vmem:[%s11685_s3 + $0x4a8] sm:$0xff] %vm4697_vm1, %v2884_v36 }
 0x207   :  { %5103 = vst.msk [vmem:[%s11685_s3 + $0xca8] sm:$0xff] %vm4697_vm1, %v4164_v37  ;;  %4846 = vst.msk [vmem:[%s11685_s3 + $0x4a0] sm:$0xff] %vm4697_vm1, %v2879_v40  ;;  %v6472_v42 = vpop.f32.mrb[150].mxu0 }
 0x208   :  { %5102 = vst.msk [vmem:[%s11685_s3 + $0xca0] sm:$0xff] %vm4697_vm1, %v4159_v41  ;;  %v6856_v43 = vpop.f32.mrb[150].mxu1  ;;  %v2894_v44 = vadd.f32 %v9766_v12, %v6472_v42  ;;  %v2888_v46 = vpop.f32.mrb[151].mxu0 }
 0x209   :  { %v4174_v45 = vadd.f32 %v9766_v12, %v6856_v43  ;;  %v4168_v47 = vpop.f32.mrb[151].mxu1  ;;  %v2889_v48 = vadd.f32 %v9766_v12, %v2888_v46 }
 0x20a   :  { %v4169_v49 = vadd.f32 %v9766_v12, %v4168_v47  ;;  %4849 = vst.msk [vmem:[%s11685_s3 + $0x4b8] sm:$0xff] %vm4697_vm1, %v2894_v44 }
 0x20b   :  { %5105 = vst.msk [vmem:[%s11685_s3 + $0xcb8] sm:$0xff] %vm4697_vm1, %v4174_v45  ;;  %4848 = vst.msk [vmem:[%s11685_s3 + $0x4b0] sm:$0xff] %vm4697_vm1, %v2889_v48  ;;  %v6475_v50 = vpop.f32.mrb[152].mxu0 }
 0x20c   :  { %5104 = vst.msk [vmem:[%s11685_s3 + $0xcb0] sm:$0xff] %vm4697_vm1, %v4169_v49  ;;  %v6859_v51 = vpop.f32.mrb[152].mxu1  ;;  %v2904_v52 = vadd.f32 %v9766_v12, %v6475_v50  ;;  %v2898_v54 = vpop.f32.mrb[153].mxu0 }
 0x20d   :  { %v4184_v53 = vadd.f32 %v9766_v12, %v6859_v51  ;;  %v4178_v55 = vpop.f32.mrb[153].mxu1  ;;  %v2899_v56 = vadd.f32 %v9766_v12, %v2898_v54 }
 0x20e   :  { %v4179_v57 = vadd.f32 %v9766_v12, %v4178_v55  ;;  %4851 = vst.msk [vmem:[%s11685_s3 + $0x4c8] sm:$0xff] %vm4697_vm1, %v2904_v52 }
 0x20f   :  { %5107 = vst.msk [vmem:[%s11685_s3 + $0xcc8] sm:$0xff] %vm4697_vm1, %v4184_v53  ;;  %4850 = vst.msk [vmem:[%s11685_s3 + $0x4c0] sm:$0xff] %vm4697_vm1, %v2899_v56  ;;  %v6478_v58 = vpop.f32.mrb[154].mxu0 }
 0x210   :  { %5106 = vst.msk [vmem:[%s11685_s3 + $0xcc0] sm:$0xff] %vm4697_vm1, %v4179_v57  ;;  %v6862_v59 = vpop.f32.mrb[154].mxu1  ;;  %v2914_v60 = vadd.f32 %v9766_v12, %v6478_v58  ;;  %v2908_v62 = vpop.f32.mrb[155].mxu0 }
 0x211   :  { %v4194_v61 = vadd.f32 %v9766_v12, %v6862_v59  ;;  %v4188_v63 = vpop.f32.mrb[155].mxu1  ;;  %v2909_v0 = vadd.f32 %v9766_v12, %v2908_v62 }
 0x212   :  { %v4189_v1 = vadd.f32 %v9766_v12, %v4188_v63  ;;  %4853 = vst.msk [vmem:[%s11685_s3 + $0x4d8] sm:$0xff] %vm4697_vm1, %v2914_v60 }
 0x213   :  { %5109 = vst.msk [vmem:[%s11685_s3 + $0xcd8] sm:$0xff] %vm4697_vm1, %v4194_v61  ;;  %4852 = vst.msk [vmem:[%s11685_s3 + $0x4d0] sm:$0xff] %vm4697_vm1, %v2909_v0  ;;  %v6481_v2 = vpop.f32.mrb[156].mxu0 }
 0x214   :  { %5108 = vst.msk [vmem:[%s11685_s3 + $0xcd0] sm:$0xff] %vm4697_vm1, %v4189_v1  ;;  %v6865_v3 = vpop.f32.mrb[156].mxu1  ;;  %v2924_v4 = vadd.f32 %v9766_v12, %v6481_v2  ;;  %v2918_v6 = vpop.f32.mrb[157].mxu0 }
 0x215   :  { %v4204_v5 = vadd.f32 %v9766_v12, %v6865_v3  ;;  %v4198_v7 = vpop.f32.mrb[157].mxu1  ;;  %v2919_v17 = vadd.f32 %v10677_v8, %v2918_v6 }
 0x216   :  { %v4199_v9 = vadd.f32 %v10677_v8, %v4198_v7  ;;  %4855 = vst.msk [vmem:[%s11685_s3 + $0x4e8] sm:$0xff] %vm4697_vm1, %v2924_v4 }
 0x217   :  { %5111 = vst.msk [vmem:[%s11685_s3 + $0xce8] sm:$0xff] %vm4697_vm1, %v4204_v5  ;;  %4854 = vst.msk [vmem:[%s11685_s3 + $0x4e0] sm:$0xff] %vm4697_vm1, %v2919_v17  ;;  %v6484_v12 = vpop.f32.mrb[158].mxu0 }
 0x218   :  { %5110 = vst.msk [vmem:[%s11685_s3 + $0xce0] sm:$0xff] %vm4697_vm1, %v4199_v9  ;;  %v6868_v10 = vpop.f32.mrb[158].mxu1  ;;  %v2934_v11 = vadd.f32 %v10677_v8, %v6484_v12  ;;  %v2928_v14 = vpop.f32.mrb[159].mxu0 }
 0x219   :  { %v4214_v13 = vadd.f32 %v10677_v8, %v6868_v10  ;;  %v4208_v15 = vpop.f32.mrb[159].mxu1  ;;  %v2929_v16 = vadd.f32 %v10677_v8, %v2928_v14 }
 0x21a   :  { %v4209_v18 = vadd.f32 %v10677_v8, %v4208_v15  ;;  %4857 = vst.msk [vmem:[%s11685_s3 + $0x4f8] sm:$0xff] %vm4697_vm1, %v2934_v11 }
 0x21b   :  { %5113 = vst.msk [vmem:[%s11685_s3 + $0xcf8] sm:$0xff] %vm4697_vm1, %v4214_v13  ;;  %4856 = vst.msk [vmem:[%s11685_s3 + $0x4f0] sm:$0xff] %vm4697_vm1, %v2929_v16  ;;  %v6487_v19 = vpop.f32.mrb[160].mxu0 }
 0x21c   :  { %5112 = vst.msk [vmem:[%s11685_s3 + $0xcf0] sm:$0xff] %vm4697_vm1, %v4209_v18  ;;  %v6871_v20 = vpop.f32.mrb[160].mxu1  ;;  %v2944_v21 = vadd.f32 %v10677_v8, %v6487_v19  ;;  %v2938_v25 = vpop.f32.mrb[161].mxu0 }
 0x21d   :  { %v4224_v22 = vadd.f32 %v10677_v8, %v6871_v20  ;;  %v4218_v23 = vpop.f32.mrb[161].mxu1  ;;  %v2939_v24 = vadd.f32 %v10677_v8, %v2938_v25 }
 0x21e   :  { %v4219_v26 = vadd.f32 %v10677_v8, %v4218_v23  ;;  %4859 = vst.msk [vmem:[%s11685_s3 + $0x508] sm:$0xff] %vm4697_vm1, %v2944_v21 }
 0x21f   :  { %5115 = vst.msk [vmem:[%s11685_s3 + $0xd08] sm:$0xff] %vm4697_vm1, %v4224_v22  ;;  %4858 = vst.msk [vmem:[%s11685_s3 + $0x500] sm:$0xff] %vm4697_vm1, %v2939_v24  ;;  %v6490_v27 = vpop.f32.mrb[162].mxu0 }
 0x220   :  { %5114 = vst.msk [vmem:[%s11685_s3 + $0xd00] sm:$0xff] %vm4697_vm1, %v4219_v26  ;;  %v6874_v28 = vpop.f32.mrb[162].mxu1  ;;  %v2954_v29 = vadd.f32 %v10677_v8, %v6490_v27  ;;  %v2948_v31 = vpop.f32.mrb[163].mxu0 }
 0x221   :  { %v4234_v30 = vadd.f32 %v10677_v8, %v6874_v28  ;;  %v4228_v32 = vpop.f32.mrb[163].mxu1  ;;  %v2949_v33 = vadd.f32 %v10677_v8, %v2948_v31 }
 0x222   :  { %v4229_v34 = vadd.f32 %v10677_v8, %v4228_v32  ;;  %4861 = vst.msk [vmem:[%s11685_s3 + $0x518] sm:$0xff] %vm4697_vm1, %v2954_v29 }
 0x223   :  { %5117 = vst.msk [vmem:[%s11685_s3 + $0xd18] sm:$0xff] %vm4697_vm1, %v4234_v30  ;;  %4860 = vst.msk [vmem:[%s11685_s3 + $0x510] sm:$0xff] %vm4697_vm1, %v2949_v33  ;;  %v6493_v35 = vpop.f32.mrb[164].mxu0 }
 0x224   :  { %5116 = vst.msk [vmem:[%s11685_s3 + $0xd10] sm:$0xff] %vm4697_vm1, %v4229_v34  ;;  %v6877_v36 = vpop.f32.mrb[164].mxu1  ;;  %v2964_v37 = vadd.f32 %v10677_v8, %v6493_v35  ;;  %v2958_v39 = vpop.f32.mrb[165].mxu0 }
 0x225   :  { %v4244_v38 = vadd.f32 %v10677_v8, %v6877_v36  ;;  %v4238_v40 = vpop.f32.mrb[165].mxu1  ;;  %v2959_v41 = vadd.f32 %v10677_v8, %v2958_v39 }
 0x226   :  { %v4239_v42 = vadd.f32 %v10677_v8, %v4238_v40  ;;  %4863 = vst.msk [vmem:[%s11685_s3 + $0x528] sm:$0xff] %vm4697_vm1, %v2964_v37 }
 0x227   :  { %5119 = vst.msk [vmem:[%s11685_s3 + $0xd28] sm:$0xff] %vm4697_vm1, %v4244_v38  ;;  %4862 = vst.msk [vmem:[%s11685_s3 + $0x520] sm:$0xff] %vm4697_vm1, %v2959_v41  ;;  %v6496_v43 = vpop.f32.mrb[166].mxu0 }
 0x228   :  { %5118 = vst.msk [vmem:[%s11685_s3 + $0xd20] sm:$0xff] %vm4697_vm1, %v4239_v42  ;;  %v6880_v44 = vpop.f32.mrb[166].mxu1  ;;  %v2974_v45 = vadd.f32 %v10677_v8, %v6496_v43  ;;  %v2968_v47 = vpop.f32.mrb[167].mxu0 }
 0x229   :  { %v4254_v46 = vadd.f32 %v10677_v8, %v6880_v44  ;;  %v4248_v48 = vpop.f32.mrb[167].mxu1  ;;  %v2969_v49 = vadd.f32 %v10677_v8, %v2968_v47 }
 0x22a   :  { %v4249_v50 = vadd.f32 %v10677_v8, %v4248_v48  ;;  %4865 = vst.msk [vmem:[%s11685_s3 + $0x538] sm:$0xff] %vm4697_vm1, %v2974_v45 }
 0x22b   :  { %5121 = vst.msk [vmem:[%s11685_s3 + $0xd38] sm:$0xff] %vm4697_vm1, %v4254_v46  ;;  %4864 = vst.msk [vmem:[%s11685_s3 + $0x530] sm:$0xff] %vm4697_vm1, %v2969_v49  ;;  %v6499_v51 = vpop.f32.mrb[168].mxu0 }
 0x22c   :  { %5120 = vst.msk [vmem:[%s11685_s3 + $0xd30] sm:$0xff] %vm4697_vm1, %v4249_v50  ;;  %v6883_v52 = vpop.f32.mrb[168].mxu1  ;;  %v2984_v53 = vadd.f32 %v10677_v8, %v6499_v51  ;;  %v2978_v55 = vpop.f32.mrb[169].mxu0 }
 0x22d   :  { %v4264_v54 = vadd.f32 %v10677_v8, %v6883_v52  ;;  %v4258_v56 = vpop.f32.mrb[169].mxu1  ;;  %v2979_v57 = vadd.f32 %v10677_v8, %v2978_v55 }
 0x22e   :  { %v4259_v58 = vadd.f32 %v10677_v8, %v4258_v56  ;;  %4867 = vst.msk [vmem:[%s11685_s3 + $0x548] sm:$0xff] %vm4697_vm1, %v2984_v53 }
 0x22f   :  { %5123 = vst.msk [vmem:[%s11685_s3 + $0xd48] sm:$0xff] %vm4697_vm1, %v4264_v54  ;;  %4866 = vst.msk [vmem:[%s11685_s3 + $0x540] sm:$0xff] %vm4697_vm1, %v2979_v57  ;;  %v6502_v59 = vpop.f32.mrb[170].mxu0 }
 0x230   :  { %5122 = vst.msk [vmem:[%s11685_s3 + $0xd40] sm:$0xff] %vm4697_vm1, %v4259_v58  ;;  %v6886_v60 = vpop.f32.mrb[170].mxu1  ;;  %v2994_v61 = vadd.f32 %v10677_v8, %v6502_v59  ;;  %v2988_v63 = vpop.f32.mrb[171].mxu0 }
 0x231   :  { %v4274_v62 = vadd.f32 %v10677_v8, %v6886_v60  ;;  %v4268_v0 = vpop.f32.mrb[171].mxu1  ;;  %v2989_v1 = vadd.f32 %v10677_v8, %v2988_v63 }
 0x232   :  { %v4269_v2 = vadd.f32 %v10677_v8, %v4268_v0  ;;  %4869 = vst.msk [vmem:[%s11685_s3 + $0x558] sm:$0xff] %vm4697_vm1, %v2994_v61 }
 0x233   :  { %5125 = vst.msk [vmem:[%s11685_s3 + $0xd58] sm:$0xff] %vm4697_vm1, %v4274_v62  ;;  %4868 = vst.msk [vmem:[%s11685_s3 + $0x550] sm:$0xff] %vm4697_vm1, %v2989_v1  ;;  %v6505_v3 = vpop.f32.mrb[172].mxu0 }
 0x234   :  { %5124 = vst.msk [vmem:[%s11685_s3 + $0xd50] sm:$0xff] %vm4697_vm1, %v4269_v2  ;;  %v6889_v4 = vpop.f32.mrb[172].mxu1  ;;  %v3004_v5 = vadd.f32 %v10677_v8, %v6505_v3  ;;  %v2998_v7 = vpop.f32.mrb[173].mxu0 }
 0x235   :  { %v4284_v6 = vadd.f32 %v10677_v8, %v6889_v4  ;;  %v4278_v17 = vpop.f32.mrb[173].mxu1  ;;  %v2999_v9 = vadd.f32 %v10677_v8, %v2998_v7 }
 0x236   :  { %v4279_v12 = vadd.f32 %v10677_v8, %v4278_v17  ;;  %4871 = vst.msk [vmem:[%s11685_s3 + $0x568] sm:$0xff] %vm4697_vm1, %v3004_v5 }
 0x237   :  { %5127 = vst.msk [vmem:[%s11685_s3 + $0xd68] sm:$0xff] %vm4697_vm1, %v4284_v6  ;;  %4870 = vst.msk [vmem:[%s11685_s3 + $0x560] sm:$0xff] %vm4697_vm1, %v2999_v9  ;;  %v6508_v10 = vpop.f32.mrb[174].mxu0 }
 0x238   :  { %5126 = vst.msk [vmem:[%s11685_s3 + $0xd60] sm:$0xff] %vm4697_vm1, %v4279_v12  ;;  %v6892_v11 = vpop.f32.mrb[174].mxu1  ;;  %v3014_v13 = vadd.f32 %v10677_v8, %v6508_v10  ;;  %v3008_v15 = vpop.f32.mrb[175].mxu0 }
 0x239   :  { %v4294_v14 = vadd.f32 %v10677_v8, %v6892_v11  ;;  %v4288_v16 = vpop.f32.mrb[175].mxu1  ;;  %v3009_v18 = vadd.f32 %v10677_v8, %v3008_v15 }
 0x23a   :  { %v4289_v19 = vadd.f32 %v10677_v8, %v4288_v16  ;;  %4873 = vst.msk [vmem:[%s11685_s3 + $0x578] sm:$0xff] %vm4697_vm1, %v3014_v13 }
 0x23b   :  { %5129 = vst.msk [vmem:[%s11685_s3 + $0xd78] sm:$0xff] %vm4697_vm1, %v4294_v14  ;;  %4872 = vst.msk [vmem:[%s11685_s3 + $0x570] sm:$0xff] %vm4697_vm1, %v3009_v18  ;;  %v6511_v20 = vpop.f32.mrb[176].mxu0 }
 0x23c   :  { %5128 = vst.msk [vmem:[%s11685_s3 + $0xd70] sm:$0xff] %vm4697_vm1, %v4289_v19  ;;  %v6895_v21 = vpop.f32.mrb[176].mxu1  ;;  %v3024_v22 = vadd.f32 %v10677_v8, %v6511_v20  ;;  %v3018_v23 = vpop.f32.mrb[177].mxu0 }
 0x23d   :  { %v4304_v25 = vadd.f32 %v10677_v8, %v6895_v21  ;;  %v4298_v24 = vpop.f32.mrb[177].mxu1  ;;  %v3019_v26 = vadd.f32 %v10677_v8, %v3018_v23 }
 0x23e   :  { %v4299_v27 = vadd.f32 %v10677_v8, %v4298_v24  ;;  %4875 = vst.msk [vmem:[%s11685_s3 + $0x588] sm:$0xff] %vm4697_vm1, %v3024_v22 }
 0x23f   :  { %5131 = vst.msk [vmem:[%s11685_s3 + $0xd88] sm:$0xff] %vm4697_vm1, %v4304_v25  ;;  %4874 = vst.msk [vmem:[%s11685_s3 + $0x580] sm:$0xff] %vm4697_vm1, %v3019_v26  ;;  %v6514_v28 = vpop.f32.mrb[178].mxu0 }
 0x240   :  { %5130 = vst.msk [vmem:[%s11685_s3 + $0xd80] sm:$0xff] %vm4697_vm1, %v4299_v27  ;;  %v6898_v29 = vpop.f32.mrb[178].mxu1  ;;  %v3034_v30 = vadd.f32 %v10677_v8, %v6514_v28  ;;  %v3028_v32 = vpop.f32.mrb[179].mxu0 }
 0x241   :  { %v4314_v31 = vadd.f32 %v10677_v8, %v6898_v29  ;;  %v4308_v33 = vpop.f32.mrb[179].mxu1  ;;  %v3029_v34 = vadd.f32 %v10677_v8, %v3028_v32 }
 0x242   :  { %v4309_v35 = vadd.f32 %v10677_v8, %v4308_v33  ;;  %4877 = vst.msk [vmem:[%s11685_s3 + $0x598] sm:$0xff] %vm4697_vm1, %v3034_v30 }
 0x243   :  { %5133 = vst.msk [vmem:[%s11685_s3 + $0xd98] sm:$0xff] %vm4697_vm1, %v4314_v31  ;;  %4876 = vst.msk [vmem:[%s11685_s3 + $0x590] sm:$0xff] %vm4697_vm1, %v3029_v34  ;;  %v6517_v36 = vpop.f32.mrb[180].mxu0 }
 0x244   :  { %5132 = vst.msk [vmem:[%s11685_s3 + $0xd90] sm:$0xff] %vm4697_vm1, %v4309_v35  ;;  %v6901_v37 = vpop.f32.mrb[180].mxu1  ;;  %v3044_v38 = vadd.f32 %v10677_v8, %v6517_v36  ;;  %v3038_v40 = vpop.f32.mrb[181].mxu0 }
 0x245   :  { %v4324_v39 = vadd.f32 %v10677_v8, %v6901_v37  ;;  %v4318_v41 = vpop.f32.mrb[181].mxu1  ;;  %v3039_v42 = vadd.f32 %v10677_v8, %v3038_v40 }
 0x246   :  { %v4319_v43 = vadd.f32 %v10677_v8, %v4318_v41  ;;  %4879 = vst.msk [vmem:[%s11685_s3 + $0x5a8] sm:$0xff] %vm4697_vm1, %v3044_v38 }
 0x247   :  { %5135 = vst.msk [vmem:[%s11685_s3 + $0xda8] sm:$0xff] %vm4697_vm1, %v4324_v39  ;;  %4878 = vst.msk [vmem:[%s11685_s3 + $0x5a0] sm:$0xff] %vm4697_vm1, %v3039_v42  ;;  %v6520_v44 = vpop.f32.mrb[182].mxu0 }
 0x248   :  { %5134 = vst.msk [vmem:[%s11685_s3 + $0xda0] sm:$0xff] %vm4697_vm1, %v4319_v43  ;;  %v6904_v45 = vpop.f32.mrb[182].mxu1  ;;  %v3054_v46 = vadd.f32 %v10677_v8, %v6520_v44  ;;  %v3048_v48 = vpop.f32.mrb[183].mxu0 }
 0x249   :  { %v4334_v47 = vadd.f32 %v10677_v8, %v6904_v45  ;;  %v4328_v49 = vpop.f32.mrb[183].mxu1  ;;  %v3049_v50 = vadd.f32 %v10677_v8, %v3048_v48 }
 0x24a   :  { %v4329_v51 = vadd.f32 %v10677_v8, %v4328_v49  ;;  %4881 = vst.msk [vmem:[%s11685_s3 + $0x5b8] sm:$0xff] %vm4697_vm1, %v3054_v46 }
 0x24b   :  { %5137 = vst.msk [vmem:[%s11685_s3 + $0xdb8] sm:$0xff] %vm4697_vm1, %v4334_v47  ;;  %4880 = vst.msk [vmem:[%s11685_s3 + $0x5b0] sm:$0xff] %vm4697_vm1, %v3049_v50  ;;  %v6523_v52 = vpop.f32.mrb[184].mxu0 }
 0x24c   :  { %5136 = vst.msk [vmem:[%s11685_s3 + $0xdb0] sm:$0xff] %vm4697_vm1, %v4329_v51  ;;  %v6907_v53 = vpop.f32.mrb[184].mxu1  ;;  %v3064_v54 = vadd.f32 %v10677_v8, %v6523_v52  ;;  %v3058_v56 = vpop.f32.mrb[185].mxu0 }
 0x24d   :  { %v4344_v55 = vadd.f32 %v10677_v8, %v6907_v53  ;;  %v4338_v57 = vpop.f32.mrb[185].mxu1  ;;  %v3059_v58 = vadd.f32 %v10677_v8, %v3058_v56 }
 0x24e   :  { %v4339_v59 = vadd.f32 %v10677_v8, %v4338_v57  ;;  %4883 = vst.msk [vmem:[%s11685_s3 + $0x5c8] sm:$0xff] %vm4697_vm1, %v3064_v54 }
 0x24f   :  { %5139 = vst.msk [vmem:[%s11685_s3 + $0xdc8] sm:$0xff] %vm4697_vm1, %v4344_v55  ;;  %4882 = vst.msk [vmem:[%s11685_s3 + $0x5c0] sm:$0xff] %vm4697_vm1, %v3059_v58  ;;  %v6526_v60 = vpop.f32.mrb[186].mxu0 }
 0x250   :  { %5138 = vst.msk [vmem:[%s11685_s3 + $0xdc0] sm:$0xff] %vm4697_vm1, %v4339_v59  ;;  %v6910_v61 = vpop.f32.mrb[186].mxu1  ;;  %v3074_v62 = vadd.f32 %v10677_v8, %v6526_v60  ;;  %v3068_v0 = vpop.f32.mrb[187].mxu0 }
 0x251   :  { %v4354_v63 = vadd.f32 %v10677_v8, %v6910_v61  ;;  %v4348_v1 = vpop.f32.mrb[187].mxu1  ;;  %v3069_v2 = vadd.f32 %v10677_v8, %v3068_v0 }
 0x252   :  { %v4349_v3 = vadd.f32 %v10677_v8, %v4348_v1  ;;  %4885 = vst.msk [vmem:[%s11685_s3 + $0x5d8] sm:$0xff] %vm4697_vm1, %v3074_v62 }
 0x253   :  { %5141 = vst.msk [vmem:[%s11685_s3 + $0xdd8] sm:$0xff] %vm4697_vm1, %v4354_v63  ;;  %4884 = vst.msk [vmem:[%s11685_s3 + $0x5d0] sm:$0xff] %vm4697_vm1, %v3069_v2  ;;  %v6529_v4 = vpop.f32.mrb[188].mxu0 }
 0x254   :  { %5140 = vst.msk [vmem:[%s11685_s3 + $0xdd0] sm:$0xff] %vm4697_vm1, %v4349_v3  ;;  %v6913_v5 = vpop.f32.mrb[188].mxu1  ;;  %v3084_v6 = vadd.f32 %v10677_v8, %v6529_v4  ;;  %v3078_v17 = vpop.f32.mrb[189].mxu0 }
 0x255   :  { %v4364_v7 = vadd.f32 %v10677_v8, %v6913_v5  ;;  %v4358_v9 = vpop.f32.mrb[189].mxu1  ;;  %v3079_v12 = vadd.f32 %v10677_v8, %v3078_v17 }
 0x256   :  { %v4359_v10 = vadd.f32 %v10677_v8, %v4358_v9  ;;  %4887 = vst.msk [vmem:[%s11685_s3 + $0x5e8] sm:$0xff] %vm4697_vm1, %v3084_v6 }
 0x257   :  { %5143 = vst.msk [vmem:[%s11685_s3 + $0xde8] sm:$0xff] %vm4697_vm1, %v4364_v7  ;;  %4886 = vst.msk [vmem:[%s11685_s3 + $0x5e0] sm:$0xff] %vm4697_vm1, %v3079_v12  ;;  %v6532_v11 = vpop.f32.mrb[190].mxu0 }
 0x258   :  { %5142 = vst.msk [vmem:[%s11685_s3 + $0xde0] sm:$0xff] %vm4697_vm1, %v4359_v10  ;;  %v6916_v13 = vpop.f32.mrb[190].mxu1  ;;  %v3094_v14 = vadd.f32 %v10677_v8, %v6532_v11  ;;  %v3088_v16 = vpop.f32.mrb[191].mxu0 }
 0x259   :  { %v4374_v15 = vadd.f32 %v10677_v8, %v6916_v13  ;;  %v4368_v18 = vpop.f32.mrb[191].mxu1  ;;  %v3089_v19 = vadd.f32 %v10677_v8, %v3088_v16 }
 0x25a   :  { %v4369_v20 = vadd.f32 %v10677_v8, %v4368_v18  ;;  %4889 = vst.msk [vmem:[%s11685_s3 + $0x5f8] sm:$0xff] %vm4697_vm1, %v3094_v14 }
 0x25b   :  { %5145 = vst.msk [vmem:[%s11685_s3 + $0xdf8] sm:$0xff] %vm4697_vm1, %v4374_v15  ;;  %4888 = vst.msk [vmem:[%s11685_s3 + $0x5f0] sm:$0xff] %vm4697_vm1, %v3089_v19  ;;  %v6535_v21 = vpop.f32.mrb[192].mxu0 }
 0x25c   :  { %5144 = vst.msk [vmem:[%s11685_s3 + $0xdf0] sm:$0xff] %vm4697_vm1, %v4369_v20  ;;  %v6919_v22 = vpop.f32.mrb[192].mxu1  ;;  %v3104_v25 = vadd.f32 %v10677_v8, %v6535_v21  ;;  %v3098_v24 = vpop.f32.mrb[193].mxu0 }
 0x25d   :  { %v4384_v23 = vadd.f32 %v10677_v8, %v6919_v22  ;;  %v4378_v26 = vpop.f32.mrb[193].mxu1  ;;  %v3099_v27 = vadd.f32 %v10677_v8, %v3098_v24 }
 0x25e   :  { %v4379_v28 = vadd.f32 %v10677_v8, %v4378_v26  ;;  %4891 = vst.msk [vmem:[%s11685_s3 + $0x608] sm:$0xff] %vm4697_vm1, %v3104_v25 }
 0x25f   :  { %5147 = vst.msk [vmem:[%s11685_s3 + $0xe08] sm:$0xff] %vm4697_vm1, %v4384_v23  ;;  %4890 = vst.msk [vmem:[%s11685_s3 + $0x600] sm:$0xff] %vm4697_vm1, %v3099_v27  ;;  %v6538_v29 = vpop.f32.mrb[194].mxu0 }
 0x260   :  { %5146 = vst.msk [vmem:[%s11685_s3 + $0xe00] sm:$0xff] %vm4697_vm1, %v4379_v28  ;;  %v6922_v30 = vpop.f32.mrb[194].mxu1  ;;  %v3114_v31 = vadd.f32 %v10677_v8, %v6538_v29  ;;  %v3108_v33 = vpop.f32.mrb[195].mxu0 }
 0x261   :  { %v4394_v32 = vadd.f32 %v10677_v8, %v6922_v30  ;;  %v4388_v34 = vpop.f32.mrb[195].mxu1  ;;  %v3109_v35 = vadd.f32 %v10677_v8, %v3108_v33 }
 0x262   :  { %v4389_v36 = vadd.f32 %v10677_v8, %v4388_v34  ;;  %4893 = vst.msk [vmem:[%s11685_s3 + $0x618] sm:$0xff] %vm4697_vm1, %v3114_v31 }
 0x263   :  { %5149 = vst.msk [vmem:[%s11685_s3 + $0xe18] sm:$0xff] %vm4697_vm1, %v4394_v32  ;;  %4892 = vst.msk [vmem:[%s11685_s3 + $0x610] sm:$0xff] %vm4697_vm1, %v3109_v35  ;;  %v6541_v37 = vpop.f32.mrb[196].mxu0 }
 0x264   :  { %5148 = vst.msk [vmem:[%s11685_s3 + $0xe10] sm:$0xff] %vm4697_vm1, %v4389_v36  ;;  %v6925_v38 = vpop.f32.mrb[196].mxu1  ;;  %v3124_v39 = vadd.f32 %v10677_v8, %v6541_v37  ;;  %v3118_v41 = vpop.f32.mrb[197].mxu0 }
 0x265   :  { %v4404_v40 = vadd.f32 %v10677_v8, %v6925_v38  ;;  %v4398_v42 = vpop.f32.mrb[197].mxu1  ;;  %v3119_v43 = vadd.f32 %v10677_v8, %v3118_v41 }
 0x266   :  { %v4399_v44 = vadd.f32 %v10677_v8, %v4398_v42  ;;  %4895 = vst.msk [vmem:[%s11685_s3 + $0x628] sm:$0xff] %vm4697_vm1, %v3124_v39 }
 0x267   :  { %5151 = vst.msk [vmem:[%s11685_s3 + $0xe28] sm:$0xff] %vm4697_vm1, %v4404_v40  ;;  %4894 = vst.msk [vmem:[%s11685_s3 + $0x620] sm:$0xff] %vm4697_vm1, %v3119_v43  ;;  %v6544_v45 = vpop.f32.mrb[198].mxu0 }
 0x268   :  { %5150 = vst.msk [vmem:[%s11685_s3 + $0xe20] sm:$0xff] %vm4697_vm1, %v4399_v44  ;;  %v6928_v46 = vpop.f32.mrb[198].mxu1  ;;  %v3134_v47 = vadd.f32 %v10677_v8, %v6544_v45  ;;  %v3128_v49 = vpop.f32.mrb[199].mxu0 }
 0x269   :  { %v4414_v48 = vadd.f32 %v10677_v8, %v6928_v46  ;;  %v4408_v50 = vpop.f32.mrb[199].mxu1  ;;  %v3129_v51 = vadd.f32 %v10677_v8, %v3128_v49 }
 0x26a   :  { %v4409_v52 = vadd.f32 %v10677_v8, %v4408_v50  ;;  %4897 = vst.msk [vmem:[%s11685_s3 + $0x638] sm:$0xff] %vm4697_vm1, %v3134_v47 }
 0x26b   :  { %5153 = vst.msk [vmem:[%s11685_s3 + $0xe38] sm:$0xff] %vm4697_vm1, %v4414_v48  ;;  %4896 = vst.msk [vmem:[%s11685_s3 + $0x630] sm:$0xff] %vm4697_vm1, %v3129_v51  ;;  %v6547_v53 = vpop.f32.mrb[200].mxu0 }
 0x26c   :  { %5152 = vst.msk [vmem:[%s11685_s3 + $0xe30] sm:$0xff] %vm4697_vm1, %v4409_v52  ;;  %v6931_v54 = vpop.f32.mrb[200].mxu1  ;;  %v3144_v55 = vadd.f32 %v10677_v8, %v6547_v53  ;;  %v3138_v57 = vpop.f32.mrb[201].mxu0 }
 0x26d   :  { %v4424_v56 = vadd.f32 %v10677_v8, %v6931_v54  ;;  %v4418_v58 = vpop.f32.mrb[201].mxu1  ;;  %v3139_v59 = vadd.f32 %v10677_v8, %v3138_v57 }
 0x26e   :  { %v4419_v60 = vadd.f32 %v10677_v8, %v4418_v58  ;;  %4899 = vst.msk [vmem:[%s11685_s3 + $0x648] sm:$0xff] %vm4697_vm1, %v3144_v55 }
 0x26f   :  { %5155 = vst.msk [vmem:[%s11685_s3 + $0xe48] sm:$0xff] %vm4697_vm1, %v4424_v56  ;;  %4898 = vst.msk [vmem:[%s11685_s3 + $0x640] sm:$0xff] %vm4697_vm1, %v3139_v59  ;;  %v6550_v61 = vpop.f32.mrb[202].mxu0 }
 0x270   :  { %5154 = vst.msk [vmem:[%s11685_s3 + $0xe40] sm:$0xff] %vm4697_vm1, %v4419_v60  ;;  %v6934_v62 = vpop.f32.mrb[202].mxu1  ;;  %v3154_v63 = vadd.f32 %v10677_v8, %v6550_v61  ;;  %v3148_v1 = vpop.f32.mrb[203].mxu0 }
 0x271   :  { %v4434_v0 = vadd.f32 %v10677_v8, %v6934_v62  ;;  %v4428_v2 = vpop.f32.mrb[203].mxu1  ;;  %v3149_v3 = vadd.f32 %v10677_v8, %v3148_v1 }
 0x272   :  { %v4429_v4 = vadd.f32 %v10677_v8, %v4428_v2  ;;  %4901 = vst.msk [vmem:[%s11685_s3 + $0x658] sm:$0xff] %vm4697_vm1, %v3154_v63 }
 0x273   :  { %5157 = vst.msk [vmem:[%s11685_s3 + $0xe58] sm:$0xff] %vm4697_vm1, %v4434_v0  ;;  %4900 = vst.msk [vmem:[%s11685_s3 + $0x650] sm:$0xff] %vm4697_vm1, %v3149_v3  ;;  %v6553_v5 = vpop.f32.mrb[204].mxu0 }
 0x274   :  { %5156 = vst.msk [vmem:[%s11685_s3 + $0xe50] sm:$0xff] %vm4697_vm1, %v4429_v4  ;;  %v6937_v6 = vpop.f32.mrb[204].mxu1  ;;  %v3164_v7 = vadd.f32 %v10677_v8, %v6553_v5  ;;  %v3158_v9 = vpop.f32.mrb[205].mxu0 }
 0x275   :  { %v4444_v17 = vadd.f32 %v10677_v8, %v6937_v6  ;;  %v4438_v12 = vpop.f32.mrb[205].mxu1  ;;  %v3159_v10 = vadd.f32 %v10677_v8, %v3158_v9 }
 0x276   :  { %v4439_v11 = vadd.f32 %v10677_v8, %v4438_v12  ;;  %4903 = vst.msk [vmem:[%s11685_s3 + $0x668] sm:$0xff] %vm4697_vm1, %v3164_v7 }
 0x277   :  { %5159 = vst.msk [vmem:[%s11685_s3 + $0xe68] sm:$0xff] %vm4697_vm1, %v4444_v17  ;;  %4902 = vst.msk [vmem:[%s11685_s3 + $0x660] sm:$0xff] %vm4697_vm1, %v3159_v10  ;;  %v6556_v13 = vpop.f32.mrb[206].mxu0 }
 0x278   :  { %5158 = vst.msk [vmem:[%s11685_s3 + $0xe60] sm:$0xff] %vm4697_vm1, %v4439_v11  ;;  %v6940_v14 = vpop.f32.mrb[206].mxu1  ;;  %v3174_v15 = vadd.f32 %v10677_v8, %v6556_v13  ;;  %v3168_v18 = vpop.f32.mrb[207].mxu0 }
 0x279   :  { %v4454_v16 = vadd.f32 %v10677_v8, %v6940_v14  ;;  %v4448_v19 = vpop.f32.mrb[207].mxu1  ;;  %v3169_v20 = vadd.f32 %v10677_v8, %v3168_v18 }
 0x27a   :  { %v4449_v21 = vadd.f32 %v10677_v8, %v4448_v19  ;;  %4905 = vst.msk [vmem:[%s11685_s3 + $0x678] sm:$0xff] %vm4697_vm1, %v3174_v15 }
 0x27b   :  { %5161 = vst.msk [vmem:[%s11685_s3 + $0xe78] sm:$0xff] %vm4697_vm1, %v4454_v16  ;;  %4904 = vst.msk [vmem:[%s11685_s3 + $0x670] sm:$0xff] %vm4697_vm1, %v3169_v20  ;;  %v6559_v22 = vpop.f32.mrb[208].mxu0 }
 0x27c   :  { %5160 = vst.msk [vmem:[%s11685_s3 + $0xe70] sm:$0xff] %vm4697_vm1, %v4449_v21  ;;  %v6943_v25 = vpop.f32.mrb[208].mxu1  ;;  %v3184_v23 = vadd.f32 %v10677_v8, %v6559_v22  ;;  %v3178_v26 = vpop.f32.mrb[209].mxu0 }
 0x27d   :  { %v4464_v24 = vadd.f32 %v10677_v8, %v6943_v25  ;;  %v4458_v27 = vpop.f32.mrb[209].mxu1  ;;  %v3179_v28 = vadd.f32 %v10677_v8, %v3178_v26 }
 0x27e   :  { %v4459_v29 = vadd.f32 %v10677_v8, %v4458_v27  ;;  %4907 = vst.msk [vmem:[%s11685_s3 + $0x688] sm:$0xff] %vm4697_vm1, %v3184_v23 }
 0x27f   :  { %5163 = vst.msk [vmem:[%s11685_s3 + $0xe88] sm:$0xff] %vm4697_vm1, %v4464_v24  ;;  %4906 = vst.msk [vmem:[%s11685_s3 + $0x680] sm:$0xff] %vm4697_vm1, %v3179_v28  ;;  %v6562_v30 = vpop.f32.mrb[210].mxu0 }
 0x280   :  { %5162 = vst.msk [vmem:[%s11685_s3 + $0xe80] sm:$0xff] %vm4697_vm1, %v4459_v29  ;;  %v6946_v31 = vpop.f32.mrb[210].mxu1  ;;  %v3194_v32 = vadd.f32 %v10677_v8, %v6562_v30  ;;  %v3188_v34 = vpop.f32.mrb[211].mxu0 }
 0x281   :  { %v4474_v33 = vadd.f32 %v10677_v8, %v6946_v31  ;;  %v4468_v35 = vpop.f32.mrb[211].mxu1  ;;  %v3189_v36 = vadd.f32 %v10677_v8, %v3188_v34 }
 0x282   :  { %v4469_v37 = vadd.f32 %v10677_v8, %v4468_v35  ;;  %4909 = vst.msk [vmem:[%s11685_s3 + $0x698] sm:$0xff] %vm4697_vm1, %v3194_v32 }
 0x283   :  { %5165 = vst.msk [vmem:[%s11685_s3 + $0xe98] sm:$0xff] %vm4697_vm1, %v4474_v33  ;;  %4908 = vst.msk [vmem:[%s11685_s3 + $0x690] sm:$0xff] %vm4697_vm1, %v3189_v36  ;;  %v6565_v38 = vpop.f32.mrb[212].mxu0 }
 0x284   :  { %5164 = vst.msk [vmem:[%s11685_s3 + $0xe90] sm:$0xff] %vm4697_vm1, %v4469_v37  ;;  %v6949_v39 = vpop.f32.mrb[212].mxu1  ;;  %v3204_v40 = vadd.f32 %v10677_v8, %v6565_v38  ;;  %v3198_v42 = vpop.f32.mrb[213].mxu0 }
 0x285   :  { %v4484_v41 = vadd.f32 %v10677_v8, %v6949_v39  ;;  %v4478_v43 = vpop.f32.mrb[213].mxu1  ;;  %v3199_v44 = vadd.f32 %v10677_v8, %v3198_v42 }
 0x286   :  { %v4479_v45 = vadd.f32 %v10677_v8, %v4478_v43  ;;  %4911 = vst.msk [vmem:[%s11685_s3 + $0x6a8] sm:$0xff] %vm4697_vm1, %v3204_v40 }
 0x287   :  { %5167 = vst.msk [vmem:[%s11685_s3 + $0xea8] sm:$0xff] %vm4697_vm1, %v4484_v41  ;;  %4910 = vst.msk [vmem:[%s11685_s3 + $0x6a0] sm:$0xff] %vm4697_vm1, %v3199_v44  ;;  %v6568_v46 = vpop.f32.mrb[214].mxu0 }
 0x288   :  { %5166 = vst.msk [vmem:[%s11685_s3 + $0xea0] sm:$0xff] %vm4697_vm1, %v4479_v45  ;;  %v6952_v47 = vpop.f32.mrb[214].mxu1  ;;  %v3214_v48 = vadd.f32 %v10677_v8, %v6568_v46  ;;  %v3208_v50 = vpop.f32.mrb[215].mxu0 }
 0x289   :  { %v4494_v49 = vadd.f32 %v10677_v8, %v6952_v47  ;;  %v4488_v51 = vpop.f32.mrb[215].mxu1  ;;  %v3209_v52 = vadd.f32 %v10677_v8, %v3208_v50 }
 0x28a   :  { %v4489_v53 = vadd.f32 %v10677_v8, %v4488_v51  ;;  %4913 = vst.msk [vmem:[%s11685_s3 + $0x6b8] sm:$0xff] %vm4697_vm1, %v3214_v48 }
 0x28b   :  { %5169 = vst.msk [vmem:[%s11685_s3 + $0xeb8] sm:$0xff] %vm4697_vm1, %v4494_v49  ;;  %4912 = vst.msk [vmem:[%s11685_s3 + $0x6b0] sm:$0xff] %vm4697_vm1, %v3209_v52  ;;  %v6571_v54 = vpop.f32.mrb[216].mxu0 }
 0x28c   :  { %5168 = vst.msk [vmem:[%s11685_s3 + $0xeb0] sm:$0xff] %vm4697_vm1, %v4489_v53  ;;  %v6955_v55 = vpop.f32.mrb[216].mxu1  ;;  %v3224_v56 = vadd.f32 %v10677_v8, %v6571_v54  ;;  %v3218_v58 = vpop.f32.mrb[217].mxu0 }
 0x28d   :  { %v4504_v57 = vadd.f32 %v10677_v8, %v6955_v55  ;;  %v4498_v59 = vpop.f32.mrb[217].mxu1  ;;  %v3219_v60 = vadd.f32 %v10677_v8, %v3218_v58 }
 0x28e   :  { %v4499_v61 = vadd.f32 %v10677_v8, %v4498_v59  ;;  %4915 = vst.msk [vmem:[%s11685_s3 + $0x6c8] sm:$0xff] %vm4697_vm1, %v3224_v56 }
 0x28f   :  { %5171 = vst.msk [vmem:[%s11685_s3 + $0xec8] sm:$0xff] %vm4697_vm1, %v4504_v57  ;;  %4914 = vst.msk [vmem:[%s11685_s3 + $0x6c0] sm:$0xff] %vm4697_vm1, %v3219_v60  ;;  %v6574_v62 = vpop.f32.mrb[218].mxu0 }
 0x290   :  { %5170 = vst.msk [vmem:[%s11685_s3 + $0xec0] sm:$0xff] %vm4697_vm1, %v4499_v61  ;;  %v6958_v63 = vpop.f32.mrb[218].mxu1  ;;  %v3234_v0 = vadd.f32 %v10677_v8, %v6574_v62  ;;  %v3228_v2 = vpop.f32.mrb[219].mxu0 }
 0x291   :  { %v4514_v1 = vadd.f32 %v10677_v8, %v6958_v63  ;;  %v4508_v3 = vpop.f32.mrb[219].mxu1  ;;  %v3229_v4 = vadd.f32 %v10677_v8, %v3228_v2 }
 0x292   :  { %v4509_v5 = vadd.f32 %v10677_v8, %v4508_v3  ;;  %4917 = vst.msk [vmem:[%s11685_s3 + $0x6d8] sm:$0xff] %vm4697_vm1, %v3234_v0 }
 0x293   :  { %5173 = vst.msk [vmem:[%s11685_s3 + $0xed8] sm:$0xff] %vm4697_vm1, %v4514_v1  ;;  %4916 = vst.msk [vmem:[%s11685_s3 + $0x6d0] sm:$0xff] %vm4697_vm1, %v3229_v4  ;;  %v6577_v6 = vpop.f32.mrb[220].mxu0 }
 0x294   :  { %5172 = vst.msk [vmem:[%s11685_s3 + $0xed0] sm:$0xff] %vm4697_vm1, %v4509_v5  ;;  %v6961_v7 = vpop.f32.mrb[220].mxu1  ;;  %v3244_v17 = vadd.f32 %v10677_v8, %v6577_v6  ;;  %v3238_v12 = vpop.f32.mrb[221].mxu0 }
 0x295   :  { %v4524_v9 = vadd.f32 %v10677_v8, %v6961_v7  ;;  %v4518_v10 = vpop.f32.mrb[221].mxu1  ;;  %v3239_v11 = vadd.f32 %v10677_v8, %v3238_v12 }
 0x296   :  { %v4519_v13 = vadd.f32 %v10677_v8, %v4518_v10  ;;  %4919 = vst.msk [vmem:[%s11685_s3 + $0x6e8] sm:$0xff] %vm4697_vm1, %v3244_v17 }
 0x297   :  { %5175 = vst.msk [vmem:[%s11685_s3 + $0xee8] sm:$0xff] %vm4697_vm1, %v4524_v9  ;;  %4918 = vst.msk [vmem:[%s11685_s3 + $0x6e0] sm:$0xff] %vm4697_vm1, %v3239_v11  ;;  %v6580_v14 = vpop.f32.mrb[222].mxu0 }
 0x298   :  { %5174 = vst.msk [vmem:[%s11685_s3 + $0xee0] sm:$0xff] %vm4697_vm1, %v4519_v13  ;;  %v6964_v15 = vpop.f32.mrb[222].mxu1  ;;  %v3254_v16 = vadd.f32 %v10677_v8, %v6580_v14  ;;  %v3248_v19 = vpop.f32.mrb[223].mxu0 }
 0x299   :  { %v4534_v18 = vadd.f32 %v10677_v8, %v6964_v15  ;;  %v4528_v20 = vpop.f32.mrb[223].mxu1  ;;  %v3249_v21 = vadd.f32 %v10677_v8, %v3248_v19 }
 0x29a   :  { %v4529_v22 = vadd.f32 %v10677_v8, %v4528_v20  ;;  %4921 = vst.msk [vmem:[%s11685_s3 + $0x6f8] sm:$0xff] %vm4697_vm1, %v3254_v16 }
 0x29b   :  { %5177 = vst.msk [vmem:[%s11685_s3 + $0xef8] sm:$0xff] %vm4697_vm1, %v4534_v18  ;;  %4920 = vst.msk [vmem:[%s11685_s3 + $0x6f0] sm:$0xff] %vm4697_vm1, %v3249_v21  ;;  %v6583_v25 = vpop.f32.mrb[224].mxu0 }
 0x29c   :  { %5176 = vst.msk [vmem:[%s11685_s3 + $0xef0] sm:$0xff] %vm4697_vm1, %v4529_v22  ;;  %v6967_v23 = vpop.f32.mrb[224].mxu1  ;;  %v3264_v24 = vadd.f32 %v10677_v8, %v6583_v25  ;;  %v3258_v27 = vpop.f32.mrb[225].mxu0 }
 0x29d   :  { %v4544_v26 = vadd.f32 %v10677_v8, %v6967_v23  ;;  %v4538_v28 = vpop.f32.mrb[225].mxu1  ;;  %v3259_v29 = vadd.f32 %v10677_v8, %v3258_v27 }
 0x29e   :  { %v4539_v30 = vadd.f32 %v10677_v8, %v4538_v28  ;;  %4923 = vst.msk [vmem:[%s11685_s3 + $0x708] sm:$0xff] %vm4697_vm1, %v3264_v24 }
 0x29f   :  { %5179 = vst.msk [vmem:[%s11685_s3 + $0xf08] sm:$0xff] %vm4697_vm1, %v4544_v26  ;;  %4922 = vst.msk [vmem:[%s11685_s3 + $0x700] sm:$0xff] %vm4697_vm1, %v3259_v29  ;;  %v6586_v31 = vpop.f32.mrb[226].mxu0 }
 0x2a0   :  { %5178 = vst.msk [vmem:[%s11685_s3 + $0xf00] sm:$0xff] %vm4697_vm1, %v4539_v30  ;;  %v6970_v32 = vpop.f32.mrb[226].mxu1  ;;  %v3274_v33 = vadd.f32 %v10677_v8, %v6586_v31  ;;  %v3268_v35 = vpop.f32.mrb[227].mxu0 }
 0x2a1   :  { %v4554_v34 = vadd.f32 %v10677_v8, %v6970_v32  ;;  %v4548_v36 = vpop.f32.mrb[227].mxu1  ;;  %v3269_v37 = vadd.f32 %v10677_v8, %v3268_v35 }
 0x2a2   :  { %v4549_v38 = vadd.f32 %v10677_v8, %v4548_v36  ;;  %4925 = vst.msk [vmem:[%s11685_s3 + $0x718] sm:$0xff] %vm4697_vm1, %v3274_v33  ;;  %v11540_v33 = vld [vmem:[%s11684_s2] ss:$0 sm:$0xff] }
 0x2a3   :  { %5181 = vst.msk [vmem:[%s11685_s3 + $0xf18] sm:$0xff] %vm4697_vm1, %v4554_v34  ;;  %4924 = vst.msk [vmem:[%s11685_s3 + $0x710] sm:$0xff] %vm4697_vm1, %v3269_v37  ;;  %v6589_v39 = vpop.f32.mrb[228].mxu0 }
 0x2a4   :  { %5180 = vst.msk [vmem:[%s11685_s3 + $0xf10] sm:$0xff] %vm4697_vm1, %v4549_v38  ;;  %v6973_v40 = vpop.f32.mrb[228].mxu1  ;;  %v3284_v41 = vadd.f32 %v10677_v8, %v6589_v39  ;;  %v3278_v43 = vpop.f32.mrb[229].mxu0 }
 0x2a5   :  { %v4564_v42 = vadd.f32 %v10677_v8, %v6973_v40  ;;  %v4558_v44 = vpop.f32.mrb[229].mxu1  ;;  %v3279_v45 = vadd.f32 %v10677_v8, %v3278_v43 }
 0x2a6   :  { %v4559_v46 = vadd.f32 %v10677_v8, %v4558_v44  ;;  %4927 = vst.msk [vmem:[%s11685_s3 + $0x728] sm:$0xff] %vm4697_vm1, %v3284_v41 }
 0x2a7   :  { %5183 = vst.msk [vmem:[%s11685_s3 + $0xf28] sm:$0xff] %vm4697_vm1, %v4564_v42  ;;  %4926 = vst.msk [vmem:[%s11685_s3 + $0x720] sm:$0xff] %vm4697_vm1, %v3279_v45  ;;  %v6592_v47 = vpop.f32.mrb[230].mxu0 }
 0x2a8   :  { %5182 = vst.msk [vmem:[%s11685_s3 + $0xf20] sm:$0xff] %vm4697_vm1, %v4559_v46  ;;  %v6976_v48 = vpop.f32.mrb[230].mxu1  ;;  %v3294_v49 = vadd.f32 %v10677_v8, %v6592_v47  ;;  %v3288_v51 = vpop.f32.mrb[231].mxu0 }
 0x2a9   :  { %v4574_v50 = vadd.f32 %v10677_v8, %v6976_v48  ;;  %v4568_v52 = vpop.f32.mrb[231].mxu1  ;;  %v3289_v53 = vadd.f32 %v10677_v8, %v3288_v51 }
 0x2aa   :  { %v4569_v54 = vadd.f32 %v10677_v8, %v4568_v52  ;;  %4929 = vst.msk [vmem:[%s11685_s3 + $0x738] sm:$0xff] %vm4697_vm1, %v3294_v49 }
 0x2ab   :  { %5185 = vst.msk [vmem:[%s11685_s3 + $0xf38] sm:$0xff] %vm4697_vm1, %v4574_v50  ;;  %4928 = vst.msk [vmem:[%s11685_s3 + $0x730] sm:$0xff] %vm4697_vm1, %v3289_v53  ;;  %v6595_v55 = vpop.f32.mrb[232].mxu0 }
 0x2ac   :  { %5184 = vst.msk [vmem:[%s11685_s3 + $0xf30] sm:$0xff] %vm4697_vm1, %v4569_v54  ;;  %v6979_v56 = vpop.f32.mrb[232].mxu1  ;;  %v3304_v57 = vadd.f32 %v10677_v8, %v6595_v55  ;;  %v3298_v59 = vpop.f32.mrb[233].mxu0 }
 0x2ad   :  { %v4584_v58 = vadd.f32 %v10677_v8, %v6979_v56  ;;  %v4578_v60 = vpop.f32.mrb[233].mxu1  ;;  %v3299_v61 = vadd.f32 %v10677_v8, %v3298_v59 }
 0x2ae   :  { %v4579_v62 = vadd.f32 %v10677_v8, %v4578_v60  ;;  %4931 = vst.msk [vmem:[%s11685_s3 + $0x748] sm:$0xff] %vm4697_vm1, %v3304_v57 }
 0x2af   :  { %5187 = vst.msk [vmem:[%s11685_s3 + $0xf48] sm:$0xff] %vm4697_vm1, %v4584_v58  ;;  %4930 = vst.msk [vmem:[%s11685_s3 + $0x740] sm:$0xff] %vm4697_vm1, %v3299_v61  ;;  %v6598_v63 = vpop.f32.mrb[234].mxu0 }
 0x2b0   :  { %5186 = vst.msk [vmem:[%s11685_s3 + $0xf40] sm:$0xff] %vm4697_vm1, %v4579_v62  ;;  %v6982_v0 = vpop.f32.mrb[234].mxu1  ;;  %v3314_v1 = vadd.f32 %v10677_v8, %v6598_v63  ;;  %v3308_v3 = vpop.f32.mrb[235].mxu0 }
 0x2b1   :  { %v4594_v2 = vadd.f32 %v10677_v8, %v6982_v0  ;;  %v4588_v4 = vpop.f32.mrb[235].mxu1  ;;  %v3309_v5 = vadd.f32 %v10677_v8, %v3308_v3 }
 0x2b2   :  { %v4589_v6 = vadd.f32 %v10677_v8, %v4588_v4  ;;  %4933 = vst.msk [vmem:[%s11685_s3 + $0x758] sm:$0xff] %vm4697_vm1, %v3314_v1 }
 0x2b3   :  { %5189 = vst.msk [vmem:[%s11685_s3 + $0xf58] sm:$0xff] %vm4697_vm1, %v4594_v2  ;;  %4932 = vst.msk [vmem:[%s11685_s3 + $0x750] sm:$0xff] %vm4697_vm1, %v3309_v5  ;;  %v6601_v7 = vpop.f32.mrb[236].mxu0 }
 0x2b4   :  { %5188 = vst.msk [vmem:[%s11685_s3 + $0xf50] sm:$0xff] %vm4697_vm1, %v4589_v6  ;;  %v6985_v17 = vpop.f32.mrb[236].mxu1  ;;  %v3324_v9 = vadd.f32 %v10677_v8, %v6601_v7  ;;  %v3318_v10 = vpop.f32.mrb[237].mxu0 }
 0x2b5   :  { %v4604_v12 = vadd.f32 %v10677_v8, %v6985_v17  ;;  %v4598_v11 = vpop.f32.mrb[237].mxu1  ;;  %v3319_v13 = vadd.f32 %v10677_v8, %v3318_v10 }
 0x2b6   :  { %v4599_v14 = vadd.f32 %v10677_v8, %v4598_v11  ;;  %4935 = vst.msk [vmem:[%s11685_s3 + $0x768] sm:$0xff] %vm4697_vm1, %v3324_v9 }
 0x2b7   :  { %5191 = vst.msk [vmem:[%s11685_s3 + $0xf68] sm:$0xff] %vm4697_vm1, %v4604_v12  ;;  %4934 = vst.msk [vmem:[%s11685_s3 + $0x760] sm:$0xff] %vm4697_vm1, %v3319_v13  ;;  %v6604_v15 = vpop.f32.mrb[238].mxu0 }
 0x2b8   :  { %5190 = vst.msk [vmem:[%s11685_s3 + $0xf60] sm:$0xff] %vm4697_vm1, %v4599_v14  ;;  %v6988_v16 = vpop.f32.mrb[238].mxu1  ;;  %v3334_v18 = vadd.f32 %v10677_v8, %v6604_v15  ;;  %v3328_v20 = vpop.f32.mrb[239].mxu0 }
 0x2b9   :  { %v4614_v19 = vadd.f32 %v10677_v8, %v6988_v16  ;;  %v4608_v21 = vpop.f32.mrb[239].mxu1  ;;  %v3329_v22 = vadd.f32 %v10677_v8, %v3328_v20 }
 0x2ba   :  { %v4609_v25 = vadd.f32 %v10677_v8, %v4608_v21  ;;  %4937 = vst.msk [vmem:[%s11685_s3 + $0x778] sm:$0xff] %vm4697_vm1, %v3334_v18 }
 0x2bb   :  { %5193 = vst.msk [vmem:[%s11685_s3 + $0xf78] sm:$0xff] %vm4697_vm1, %v4614_v19  ;;  %4936 = vst.msk [vmem:[%s11685_s3 + $0x770] sm:$0xff] %vm4697_vm1, %v3329_v22  ;;  %v6607_v23 = vpop.f32.mrb[240].mxu0 }
 0x2bc   :  { %5192 = vst.msk [vmem:[%s11685_s3 + $0xf70] sm:$0xff] %vm4697_vm1, %v4609_v25  ;;  %v6991_v24 = vpop.f32.mrb[240].mxu1  ;;  %v3344_v26 = vadd.f32 %v10677_v8, %v6607_v23  ;;  %v3338_v28 = vpop.f32.mrb[241].mxu0 }
 0x2bd   :  { %v4624_v27 = vadd.f32 %v10677_v8, %v6991_v24  ;;  %v4618_v29 = vpop.f32.mrb[241].mxu1  ;;  %v3339_v30 = vadd.f32 %v10677_v8, %v3338_v28 }
 0x2be   :  { %v4619_v31 = vadd.f32 %v10677_v8, %v4618_v29  ;;  %4939 = vst.msk [vmem:[%s11685_s3 + $0x788] sm:$0xff] %vm4697_vm1, %v3344_v26 }
 0x2bf   :  { %5195 = vst.msk [vmem:[%s11685_s3 + $0xf88] sm:$0xff] %vm4697_vm1, %v4624_v27  ;;  %4938 = vst.msk [vmem:[%s11685_s3 + $0x780] sm:$0xff] %vm4697_vm1, %v3339_v30  ;;  %v6610_v8 = vpop.f32.mrb[242].mxu0 }
 0x2c0   :  { %5194 = vst.msk [vmem:[%s11685_s3 + $0xf80] sm:$0xff] %vm4697_vm1, %v4619_v31  ;;  %v6994_v32 = vpop.f32.mrb[242].mxu1  ;;  %v3354_v34 = vadd.f32 %v11540_v33, %v6610_v8  ;;  %v3348_v36 = vpop.f32.mrb[243].mxu0 }
 0x2c1   :  { %v4634_v35 = vadd.f32 %v11540_v33, %v6994_v32  ;;  %v4628_v37 = vpop.f32.mrb[243].mxu1  ;;  %v3349_v38 = vadd.f32 %v11540_v33, %v3348_v36 }
 0x2c2   :  { %v4629_v39 = vadd.f32 %v11540_v33, %v4628_v37  ;;  %4941 = vst.msk [vmem:[%s11685_s3 + $0x798] sm:$0xff] %vm4697_vm1, %v3354_v34 }
 0x2c3   :  { %5197 = vst.msk [vmem:[%s11685_s3 + $0xf98] sm:$0xff] %vm4697_vm1, %v4634_v35  ;;  %4940 = vst.msk [vmem:[%s11685_s3 + $0x790] sm:$0xff] %vm4697_vm1, %v3349_v38  ;;  %v6613_v40 = vpop.f32.mrb[244].mxu0 }
 0x2c4   :  { %5196 = vst.msk [vmem:[%s11685_s3 + $0xf90] sm:$0xff] %vm4697_vm1, %v4629_v39  ;;  %v6997_v41 = vpop.f32.mrb[244].mxu1  ;;  %v3364_v42 = vadd.f32 %v11540_v33, %v6613_v40  ;;  %v3358_v44 = vpop.f32.mrb[245].mxu0 }
 0x2c5   :  { %v4644_v43 = vadd.f32 %v11540_v33, %v6997_v41  ;;  %v4638_v45 = vpop.f32.mrb[245].mxu1  ;;  %v3359_v46 = vadd.f32 %v11540_v33, %v3358_v44 }
 0x2c6   :  { %v4639_v47 = vadd.f32 %v11540_v33, %v4638_v45  ;;  %4943 = vst.msk [vmem:[%s11685_s3 + $0x7a8] sm:$0xff] %vm4697_vm1, %v3364_v42 }
 0x2c7   :  { %5199 = vst.msk [vmem:[%s11685_s3 + $0xfa8] sm:$0xff] %vm4697_vm1, %v4644_v43  ;;  %4942 = vst.msk [vmem:[%s11685_s3 + $0x7a0] sm:$0xff] %vm4697_vm1, %v3359_v46  ;;  %v6616_v48 = vpop.f32.mrb[246].mxu0 }
 0x2c8   :  { %5198 = vst.msk [vmem:[%s11685_s3 + $0xfa0] sm:$0xff] %vm4697_vm1, %v4639_v47  ;;  %v7000_v49 = vpop.f32.mrb[246].mxu1  ;;  %v3374_v50 = vadd.f32 %v11540_v33, %v6616_v48  ;;  %v3368_v52 = vpop.f32.mrb[247].mxu0 }
 0x2c9   :  { %v4654_v51 = vadd.f32 %v11540_v33, %v7000_v49  ;;  %v4648_v53 = vpop.f32.mrb[247].mxu1  ;;  %v3369_v54 = vadd.f32 %v11540_v33, %v3368_v52 }
 0x2ca   :  { %v4649_v55 = vadd.f32 %v11540_v33, %v4648_v53  ;;  %4945 = vst.msk [vmem:[%s11685_s3 + $0x7b8] sm:$0xff] %vm4697_vm1, %v3374_v50 }
 0x2cb   :  { %5201 = vst.msk [vmem:[%s11685_s3 + $0xfb8] sm:$0xff] %vm4697_vm1, %v4654_v51  ;;  %4944 = vst.msk [vmem:[%s11685_s3 + $0x7b0] sm:$0xff] %vm4697_vm1, %v3369_v54  ;;  %v6619_v56 = vpop.f32.mrb[248].mxu0 }
 0x2cc   :  { %5200 = vst.msk [vmem:[%s11685_s3 + $0xfb0] sm:$0xff] %vm4697_vm1, %v4649_v55  ;;  %v7003_v57 = vpop.f32.mrb[248].mxu1  ;;  %v3384_v58 = vadd.f32 %v11540_v33, %v6619_v56  ;;  %v3378_v60 = vpop.f32.mrb[249].mxu0 }
 0x2cd   :  { %v4664_v59 = vadd.f32 %v11540_v33, %v7003_v57  ;;  %v4658_v61 = vpop.f32.mrb[249].mxu1  ;;  %v3379_v62 = vadd.f32 %v11540_v33, %v3378_v60 }
 0x2ce   :  { %v4659_v63 = vadd.f32 %v11540_v33, %v4658_v61  ;;  %4947 = vst.msk [vmem:[%s11685_s3 + $0x7c8] sm:$0xff] %vm4697_vm1, %v3384_v58 }
 0x2cf   :  { %5203 = vst.msk [vmem:[%s11685_s3 + $0xfc8] sm:$0xff] %vm4697_vm1, %v4664_v59  ;;  %4946 = vst.msk [vmem:[%s11685_s3 + $0x7c0] sm:$0xff] %vm4697_vm1, %v3379_v62  ;;  %v6622_v0 = vpop.f32.mrb[250].mxu0 }
 0x2d0   :  { %5202 = vst.msk [vmem:[%s11685_s3 + $0xfc0] sm:$0xff] %vm4697_vm1, %v4659_v63  ;;  %v7006_v1 = vpop.f32.mrb[250].mxu1  ;;  %v3394_v2 = vadd.f32 %v11540_v33, %v6622_v0  ;;  %v3388_v4 = vpop.f32.mrb[251].mxu0 }
 0x2d1   :  { %v4674_v3 = vadd.f32 %v11540_v33, %v7006_v1  ;;  %v4668_v5 = vpop.f32.mrb[251].mxu1  ;;  %v3389_v6 = vadd.f32 %v11540_v33, %v3388_v4 }
 0x2d2   :  { %v4669_v7 = vadd.f32 %v11540_v33, %v4668_v5  ;;  %4949 = vst.msk [vmem:[%s11685_s3 + $0x7d8] sm:$0xff] %vm4697_vm1, %v3394_v2 }
 0x2d3   :  { %5205 = vst.msk [vmem:[%s11685_s3 + $0xfd8] sm:$0xff] %vm4697_vm1, %v4674_v3  ;;  %4948 = vst.msk [vmem:[%s11685_s3 + $0x7d0] sm:$0xff] %vm4697_vm1, %v3389_v6  ;;  %v6625_v17 = vpop.f32.mrb[252].mxu0 }
 0x2d4   :  { %5204 = vst.msk [vmem:[%s11685_s3 + $0xfd0] sm:$0xff] %vm4697_vm1, %v4669_v7  ;;  %v7009_v9 = vpop.f32.mrb[252].mxu1  ;;  %v3404_v12 = vadd.f32 %v11540_v33, %v6625_v17  ;;  %v3398_v11 = vpop.f32.mrb[253].mxu0 }
 0x2d5   :  { %v4684_v10 = vadd.f32 %v11540_v33, %v7009_v9  ;;  %v4678_v13 = vpop.f32.mrb[253].mxu1  ;;  %v3399_v14 = vadd.f32 %v11540_v33, %v3398_v11 }
 0x2d6   :  { %v4679_v15 = vadd.f32 %v11540_v33, %v4678_v13  ;;  %4951 = vst.msk [vmem:[%s11685_s3 + $0x7e8] sm:$0xff] %vm4697_vm1, %v3404_v12 }
 0x2d7   :  { %5207 = vst.msk [vmem:[%s11685_s3 + $0xfe8] sm:$0xff] %vm4697_vm1, %v4684_v10  ;;  %4950 = vst.msk [vmem:[%s11685_s3 + $0x7e0] sm:$0xff] %vm4697_vm1, %v3399_v14  ;;  %v6628_v16 = vpop.f32.mrb[254].mxu0 }
 0x2d8   :  { %5206 = vst.msk [vmem:[%s11685_s3 + $0xfe0] sm:$0xff] %vm4697_vm1, %v4679_v15  ;;  %v7012_v18 = vpop.f32.mrb[254].mxu1  ;;  %v3414_v19 = vadd.f32 %v11540_v33, %v6628_v16  ;;  %v3408_v21 = vpop.f32.mrb[255].mxu0 }
 0x2d9   :  { %v4694_v20 = vadd.f32 %v11540_v33, %v7012_v18  ;;  %v4688_v22 = vpop.f32.mrb[255].mxu1  ;;  %v3409_v25 = vadd.f32 %v11540_v33, %v3408_v21 }
 0x2da   :  { %v4689_v23 = vadd.f32 %v11540_v33, %v4688_v22  ;;  %4953 = vst.msk [vmem:[%s11685_s3 + $0x7f8] sm:$0xff] %vm4697_vm1, %v3414_v19 }
 0x2db   :  { %5209 = vst.msk [vmem:[%s11685_s3 + $0xff8] sm:$0xff] %vm4697_vm1, %v4694_v20  ;;  %4952 = vst.msk [vmem:[%s11685_s3 + $0x7f0] sm:$0xff] %vm4697_vm1, %v3409_v25 }
 0x2dc   :  { %5208 = vst.msk [vmem:[%s11685_s3 + $0xff0] sm:$0xff] %vm4697_vm1, %v4689_v23 }

</bundles_post_ra>
